<compile_context>
chip_gen: v7x
topology: tpu7x:2x2x1
jax: 0.10.0
libtpu: 0.0.40
codegen_flags: <defaults>
</compile_context>

<pallas_src>
import jax
import jax.numpy as jnp
from jax import lax
from jax.experimental import pallas as pl
from jax.experimental.pallas import tpu as pltpu

NEG = float(jnp.finfo(jnp.float32).min)
BN_EPS = 1e-5


def _leaky(v):
    # LeakyReLU(0.1)
    return jnp.maximum(v, 0.1 * v)


def _mish(v):
    # x * tanh(softplus(x)), numerically stable softplus (exp/log/tanh ride the EUP slot)
    sp = jnp.maximum(v, 0.0) + jnp.log(1.0 + jnp.exp(-jnp.abs(v)))
    return v * jnp.tanh(sp)


# --------------------------------------------------------------------------------------
# Pallas kernel
# --------------------------------------------------------------------------------------
def _make_sppcsp_kernel(c1, c_, c2, H, W, pool_ks):
    N = H * W

    # Cascaded pool radii: k=(5,9,13) -> radius increments (2,2,2)
    assert all(k % 2 == 1 for k in pool_ks)
    radii = [k // 2 for k in pool_ks]
    incs = [radii[0]] + [radii[i] - radii[i - 1] for i in range(1, len(radii))]
    assert all(r > 0 for r in incs), "pool kernel sizes must be strictly increasing"
    max_inc = max(incs)
    dmax = max(1, max_inc)                         # largest horizontal shift we ever mask

    req = max(W + 1, max_inc * W)                  # largest flat shift ever taken
    PAD = ((req + 127) // 128) * 128               # lane-aligned pad on each side
    PADN = N + 2 * PAD

    def kernel(x_ref,
               w1_ref, s1_ref, b1_ref,
               w2_ref,
               w3_ref, s3_ref, b3_ref,
               w4_ref, s4_ref, b4_ref,
               w5_ref, s5_ref, b5_ref,
               w6_ref, s6_ref, b6_ref,
               sbn_ref, bbn_ref,
               w7_ref, s7_ref, b7_ref,
               o_ref,
               zbuf_ref, nbuf_ref, im2col_ref):
        # ---- one-time per-invocation setup -------------------------------------------
        # Pad strips written once; center stores below never touch them.
        zbuf_ref[:, :PAD] = jnp.zeros((c_, PAD), jnp.float32)
        zbuf_ref[:, PAD + N:] = jnp.zeros((c_, PAD), jnp.float32)
        nbuf_ref[:, :PAD] = jnp.full((c_, PAD), NEG, jnp.float32)
        nbuf_ref[:, PAD + N:] = jnp.full((c_, PAD), NEG, jnp.float32)

        # Column masks, built once and reused across all unrolled taps/pools.
        lane = lax.broadcasted_iota(jnp.int32, (c_, N), 1)
        if (W & (W - 1)) == 0:
            col = lane & (W - 1)
        else:
            col = lane % W
        mGE = {d: col >= d for d in range(1, dmax + 1)}          # valid when dx = -d
        mLE = {d: col <= W - 1 - d for d in range(1, dmax + 1)}  # valid when dx = +d

        # ---- building blocks -----------------------------------------------------------
        def conv1x1(v, w_ref, s_ref, b_ref):
            y = jnp.dot(w_ref[...], v.astype(jnp.bfloat16),
                        preferred_element_type=jnp.float32)
            return _leaky(y * s_ref[...] + b_ref[...])

        def conv3x3(v, w_ref, s_ref, b_ref):
            # im2col: 9 masked shifted slices -> (9*c_, N) bf16 scratch -> one K=9*c_ matmul
            zbuf_ref[:, PAD:PAD + N] = v
            for dy in (-1, 0, 1):
                for dx in (-1, 0, 1):
                    t = (dy + 1) * 3 + (dx + 1)
                    off = PAD + dy * W + dx
                    u = zbuf_ref[:, off:off + N]
                    if dx == -1:
                        u = jnp.where(mGE[1], u, 0.0)
                    elif dx == 1:
                        u = jnp.where(mLE[1], u, 0.0)
                    im2col_ref[t * c_:(t + 1) * c_, :] = u.astype(jnp.bfloat16)
            y = jnp.dot(w_ref[...], im2col_ref[...],
                        preferred_element_type=jnp.float32)
            return _leaky(y * s_ref[...] + b_ref[...])

        def maxpool_r(v, r):
            # separable stride-1 max-pool of radius r (kernel 2r+1), -inf padding
            # vertical pass: out-of-image rows resolved by the -inf pad strips
            nbuf_ref[:, PAD:PAD + N] = v
            vert = nbuf_ref[:, PAD - r * W:PAD - r * W + N]
            for dy in range(-r + 1, r + 1):
                off = PAD + dy * W
                vert = jnp.maximum(vert, nbuf_ref[:, off:off + N])
            # horizontal pass: wrapped columns masked to -inf
            nbuf_ref[:, PAD:PAD + N] = vert
            out = vert
            for dx in range(1, r + 1):
                out = jnp.maximum(out, jnp.where(mGE[dx],
                                                 nbuf_ref[:, PAD - dx:PAD - dx + N], NEG))
                out = jnp.maximum(out, jnp.where(mLE[dx],
                                                 nbuf_ref[:, PAD + dx:PAD + dx + N], NEG))
            return out

        # ---- forward ------------------------------------------------------------------
        x = x_ref[...]                                 # (c1, N) f32
        xb = x.astype(jnp.bfloat16)

        # x1 = cv4(cv3(cv1(x)))
        y = conv1x1(xb, w1_ref, s1_ref, b1_ref)
        y = conv3x3(y, w3_ref, s3_ref, b3_ref)
        x1 = conv1x1(y, w4_ref, s4_ref, b4_ref)

        # SPP: cascaded pools (equiv. to independent k=5/9/13 stride-1 pools)
        pools = []
        prev = x1
        for inc in incs:
            prev = maxpool_r(prev, inc)
            pools.append(prev)
        cat = jnp.concatenate([x1] + pools, axis=0)    # (4*c_, N), order [x1, p5, p9, p13]
        y5 = conv1x1(cat, w5_ref, s5_ref, b5_ref)
        y1 = conv3x3(y5, w6_ref, s6_ref, b6_ref)

        # y2 = cv2(x)  (plain 1x1 conv, no BN / activation)
        y2 = jnp.dot(w2_ref[...], xb, preferred_element_type=jnp.float32)

        # out = cv7( Mish( BN( concat(y1, y2) ) ) )
        z = jnp.concatenate([y1, y2], axis=0)          # (2*c_, N)
        z = _mish(z * sbn_ref[...] + bbn_ref[...])
        o_ref[...] = conv1x1(z, w7_ref, s7_ref, b7_ref).astype(o_ref.dtype)

    return kernel, PADN


def sppcsp_forward(x, params, pool_ks=(5, 9, 13)):
    """x: (B, c1, H, W) float32, NCHW like the PyTorch module."""
    B, c1, H, W = x.shape
    N = H * W
    c_ = params["w1"].shape[0]
    c2 = params["w7"].shape[0]

    kernel, PADN = _make_sppcsp_kernel(c1, c_, c2, H, W, pool_ks)

    x_flat = x.reshape(B, c1, N)

    def full(shape):
        return pl.BlockSpec(shape, lambda b: (0,) * len(shape))

    grid_spec = pltpu.PrefetchScalarGridSpec(
        num_scalar_prefetch=0,
        grid=(B,),
        in_specs=[
            pl.BlockSpec((None, c1, N), lambda b: (b, 0, 0)),       # x (batch dim squeezed)
            full((c_, c1)), full((c_, 1)), full((c_, 1)),           # cv1: w, scale, shift
            full((c_, c1)),                                         # cv2: w
            full((c_, 9 * c_)), full((c_, 1)), full((c_, 1)),       # cv3 (im2col weight)
            full((c_, c_)), full((c_, 1)), full((c_, 1)),           # cv4
            full((c_, 4 * c_)), full((c_, 1)), full((c_, 1)),       # cv5
            full((c_, 9 * c_)), full((c_, 1)), full((c_, 1)),       # cv6 (im2col weight)
            full((2 * c_, 1)), full((2 * c_, 1)),                   # standalone bn
            full((c2, 2 * c_)), full((c2, 1)), full((c2, 1)),       # cv7
        ],
        out_specs=pl.BlockSpec((None, c2, N), lambda b: (b, 0, 0)),
        scratch_shapes=[
            pltpu.VMEM((c_, PADN), jnp.float32),        # zero-padded shift buffer (convs)
            pltpu.VMEM((c_, PADN), jnp.float32),        # -inf-padded shift buffer (pools)
            pltpu.VMEM((9 * c_, N), jnp.bfloat16),      # im2col staging for the 3x3 convs
        ],
    )

    out = pl.pallas_call(
        kernel,
        out_shape=jax.ShapeDtypeStruct((B, c2, N), x.dtype),
        grid_spec=grid_spec,
        compiler_params=pltpu.CompilerParams(
            dimension_semantics=("parallel",)),
    )(x_flat,
      params["w1"], params["s1"], params["b1"],
      params["w2"],
      params["w3"], params["s3"], params["b3"],
      params["w4"], params["s4"], params["b4"],
      params["w5"], params["s5"], params["b5"],
      params["w6"], params["s6"], params["b6"],
      params["sbn"], params["bbn"],
      params["w7"], params["s7"], params["b7"])

    return out.reshape(B, c2, H, W)


# --------------------------------------------------------------------------------------
# Parameters (torch-like raw params + BN folding / bf16 weight prep)
# --------------------------------------------------------------------------------------
def init_raw_params(key, c1, c2, e=0.5):
    c_ = int(2 * c2 * e)
    keys = list(jax.random.split(key, 40))
    it = iter(keys)

    def conv_w(co, ci, k):
        scale = (ci * k * k) ** -0.5
        return jax.random.normal(next(it), (co, ci, k, k), jnp.float32) * scale

    def bn_p(pfx, c, raw):
        raw[pfx + "_g"] = 1.0 + 0.1 * jax.random.normal(next(it), (c,), jnp.float32)
        raw[pfx + "_b"] = 0.1 * jax.random.normal(next(it), (c,), jnp.float32)
        raw[pfx + "_m"] = 0.1 * jax.random.normal(next(it), (c,), jnp.float32)
        raw[pfx + "_v"] = 1.0 + 0.1 * jax.random.uniform(next(it), (c,), jnp.float32)

    raw = {}
    raw["cv1_w"] = conv_w(c_, c1, 1); bn_p("cv1", c_, raw)
    raw["cv2_w"] = conv_w(c_, c1, 1)                      # plain conv, no BN
    raw["cv3_w"] = conv_w(c_, c_, 3); bn_p("cv3", c_, raw)
    raw["cv4_w"] = conv_w(c_, c_, 1); bn_p("cv4", c_, raw)
    raw["cv5_w"] = conv_w(c_, 4 * c_, 1); bn_p("cv5", c_, raw)
    raw["cv6_w"] = conv_w(c_, c_, 3); bn_p("cv6", c_, raw)
    bn_p("bn", 2 * c_, raw)                               # standalone bn before Mish
    raw["cv7_w"] = conv_w(c2, 2 * c_, 1); bn_p("cv7", c2, raw)
    return raw


def fold_params(raw, eps=BN_EPS):
    def fold(pfx):
        s = raw[pfx + "_g"] / jnp.sqrt(raw[pfx + "_v"] + eps)
        return s.reshape(-1, 1), (raw[pfx + "_b"] - raw[pfx + "_m"] * s).reshape(-1, 1)

    def w1x1(w):
        return w[:, :, 0, 0].astype(jnp.bfloat16)

    def w3x3(w):
        # (co, ci, 3, 3) -> (co, 9*ci); column block t = ky*3+kx holds tap (ky, kx),
        # matching im2col row block t = (dy+1)*3 + (dx+1).
        co, ci = w.shape[:2]
        return jnp.transpose(w, (0, 2, 3, 1)).reshape(co, 9 * ci).astype(jnp.bfloat16)

    p = {}
    p["w1"] = w1x1(raw["cv1_w"]); p["s1"], p["b1"] = fold("cv1")
    p["w2"] = w1x1(raw["cv2_w"])
    p["w3"] = w3x3(raw["cv3_w"]); p["s3"], p["b3"] = fold("cv3")
    p["w4"] = w1x1(raw["cv4_w"]); p["s4"], p["b4"] = fold("cv4")
    p["w5"] = w1x1(raw["cv5_w"]); p["s5"], p["b5"] = fold("cv5")
    p["w6"] = w3x3(raw["cv6_w"]); p["s6"], p["b6"] = fold("cv6")
    p["sbn"], p["bbn"] = fold("bn")
    p["w7"] = w1x1(raw["cv7_w"]); p["s7"], p["b7"] = fold("cv7")
    return p


# --------------------------------------------------------------------------------------
# Pure-JAX reference (inference-mode BN, f32 HIGHEST), matching the PyTorch forward
# --------------------------------------------------------------------------------------
def sppcsp_reference(x, raw, pool_ks=(5, 9, 13), eps=BN_EPS):
    P = lax.Precision.HIGHEST

    def bn(v, pfx):
        inv = raw[pfx + "_g"] / jnp.sqrt(raw[pfx + "_v"] + eps)
        sh = raw[pfx + "_b"] - raw[pfx + "_m"] * inv
        return v * inv[None, :, None, None] + sh[None, :, None, None]

    def conv1x1(v, w):
        return jnp.einsum("oi,bihw->bohw", w[:, :, 0, 0], v, precision=P)

    def conv3x3(v, w):
        return lax.conv_general_dilated(
            v, w, window_strides=(1, 1), padding=((1, 1), (1, 1)),
            dimension_numbers=("NCHW", "OIHW", "NCHW"), precision=P)

    def maxpool(v, k):
        p = k // 2
        return lax.reduce_window(
            v, -jnp.inf, lax.max,
            window_dimensions=(1, 1, k, k), window_strides=(1, 1, 1, 1),
            padding=((0, 0), (0, 0), (p, p), (p, p)))

    def cba1(v, pfx):  # Conv 1x1 -> BN -> LeakyReLU
        return _leaky(bn(conv1x1(v, raw[pfx + "_w"]), pfx))

    def cba3(v, pfx):  # Conv 3x3 -> BN -> LeakyReLU
        return _leaky(bn(conv3x3(v, raw[pfx + "_w"]), pfx))

    x1 = cba1(x, "cv1")
    x1 = cba3(x1, "cv3")
    x1 = cba1(x1, "cv4")
    cat = jnp.concatenate([x1] + [maxpool(x1, k) for k in pool_ks], axis=1)
    y1 = cba3(cba1(cat, "cv5"), "cv6")
    y2 = conv1x1(x, raw["cv2_w"])
    z = _mish(bn(jnp.concatenate([y1, y2], axis=1), "bn"))
    return cba1(z, "cv7")


# --------------------------------------------------------------------------------------
if __name__ == "__main__":
    B, c1, c2, e = 2, 16, 16, 0.5     # c_ = int(2*c2*e) = 16
    H = W = 16                        # N = 256 -> lane-dense (multiple of 128)
    pool_ks = (5, 9, 13)

    key = jax.random.PRNGKey(0)
    k_param, k_x = jax.random.split(key)
    raw = init_raw_params(k_param, c1, c2, e)
    params = fold_params(raw)
    x = jax.random.normal(k_x, (B, c1, H, W), jnp.float32)

    out = sppcsp_forward(x, params, pool_ks)
    out = jax.block_until_ready(out)

    ref = sppcsp_reference(x, raw, pool_ks)
    assert out.shape == (B, c2, H, W)
    err = float(jnp.max(jnp.abs(out - ref)))
    ref_max = float(jnp.max(jnp.abs(ref)))
    # bf16 MXU operands (f32 accumulation) vs the HIGHEST-precision f32 XLA reference:
    # expected deviation is a few % of the output scale; a structural bug would be O(ref_max).
    tol = 3e-2 * max(1.0, ref_max) + 3e-2
    assert err < tol, f"max abs err {err} (ref max {ref_max}, tol {tol})"
    print("KERNEL_OK")
</pallas_src>

<mosaic_0001>
module attributes {stable_mosaic.version = 11 : i64} {
  func.func @kernel(%arg0: i32, %arg1: memref<1x16x256xf32, #tpu.memory_space<vmem>>, %arg2: memref<16x16xbf16, #tpu.memory_space<vmem>>, %arg3: memref<16x1xf32, #tpu.memory_space<vmem>>, %arg4: memref<16x1xf32, #tpu.memory_space<vmem>>, %arg5: memref<16x16xbf16, #tpu.memory_space<vmem>>, %arg6: memref<16x144xbf16, #tpu.memory_space<vmem>>, %arg7: memref<16x1xf32, #tpu.memory_space<vmem>>, %arg8: memref<16x1xf32, #tpu.memory_space<vmem>>, %arg9: memref<16x16xbf16, #tpu.memory_space<vmem>>, %arg10: memref<16x1xf32, #tpu.memory_space<vmem>>, %arg11: memref<16x1xf32, #tpu.memory_space<vmem>>, %arg12: memref<16x64xbf16, #tpu.memory_space<vmem>>, %arg13: memref<16x1xf32, #tpu.memory_space<vmem>>, %arg14: memref<16x1xf32, #tpu.memory_space<vmem>>, %arg15: memref<16x144xbf16, #tpu.memory_space<vmem>>, %arg16: memref<16x1xf32, #tpu.memory_space<vmem>>, %arg17: memref<16x1xf32, #tpu.memory_space<vmem>>, %arg18: memref<32x1xf32, #tpu.memory_space<vmem>>, %arg19: memref<32x1xf32, #tpu.memory_space<vmem>>, %arg20: memref<16x32xbf16, #tpu.memory_space<vmem>>, %arg21: memref<16x1xf32, #tpu.memory_space<vmem>>, %arg22: memref<16x1xf32, #tpu.memory_space<vmem>>, %arg23: memref<1x16x256xf32, #tpu.memory_space<vmem>>, %arg24: memref<16x512xf32, #tpu.memory_space<vmem>>, %arg25: memref<16x512xf32, #tpu.memory_space<vmem>>, %arg26: memref<144x256xbf16, #tpu.memory_space<vmem>>) attributes {dimension_semantics = [#tpu.dimension_semantics<parallel>], iteration_bounds = array<i64: 2>, scalar_prefetch = 0 : i64, scratch_operands = 3 : i64, tpu.core_type = #tpu.core_type<tc>, window_params = [{transform_indices = @transform_0, window_bounds = array<i64: 1, 16, 256>}, {pipeline_mode = #tpu.pipeline_mode<synchronous>, transform_indices = @transform_1, window_bounds = array<i64: 16, 16>}, {pipeline_mode = #tpu.pipeline_mode<synchronous>, transform_indices = @transform_2, window_bounds = array<i64: 16, 1>}, {pipeline_mode = #tpu.pipeline_mode<synchronous>, transform_indices = @transform_3, window_bounds = array<i64: 16, 1>}, {pipeline_mode = #tpu.pipeline_mode<synchronous>, transform_indices = @transform_4, window_bounds = array<i64: 16, 16>}, {pipeline_mode = #tpu.pipeline_mode<synchronous>, transform_indices = @transform_5, window_bounds = array<i64: 16, 144>}, {pipeline_mode = #tpu.pipeline_mode<synchronous>, transform_indices = @transform_6, window_bounds = array<i64: 16, 1>}, {pipeline_mode = #tpu.pipeline_mode<synchronous>, transform_indices = @transform_7, window_bounds = array<i64: 16, 1>}, {pipeline_mode = #tpu.pipeline_mode<synchronous>, transform_indices = @transform_8, window_bounds = array<i64: 16, 16>}, {pipeline_mode = #tpu.pipeline_mode<synchronous>, transform_indices = @transform_9, window_bounds = array<i64: 16, 1>}, {pipeline_mode = #tpu.pipeline_mode<synchronous>, transform_indices = @transform_10, window_bounds = array<i64: 16, 1>}, {pipeline_mode = #tpu.pipeline_mode<synchronous>, transform_indices = @transform_11, window_bounds = array<i64: 16, 64>}, {pipeline_mode = #tpu.pipeline_mode<synchronous>, transform_indices = @transform_12, window_bounds = array<i64: 16, 1>}, {pipeline_mode = #tpu.pipeline_mode<synchronous>, transform_indices = @transform_13, window_bounds = array<i64: 16, 1>}, {pipeline_mode = #tpu.pipeline_mode<synchronous>, transform_indices = @transform_14, window_bounds = array<i64: 16, 144>}, {pipeline_mode = #tpu.pipeline_mode<synchronous>, transform_indices = @transform_15, window_bounds = array<i64: 16, 1>}, {pipeline_mode = #tpu.pipeline_mode<synchronous>, transform_indices = @transform_16, window_bounds = array<i64: 16, 1>}, {pipeline_mode = #tpu.pipeline_mode<synchronous>, transform_indices = @transform_17, window_bounds = array<i64: 32, 1>}, {pipeline_mode = #tpu.pipeline_mode<synchronous>, transform_indices = @transform_18, window_bounds = array<i64: 32, 1>}, {pipeline_mode = #tpu.pipeline_mode<synchronous>, transform_indices = @transform_19, window_bounds = array<i64: 16, 32>}, {pipeline_mode = #tpu.pipeline_mode<synchronous>, transform_indices = @transform_20, window_bounds = array<i64: 16, 1>}, {pipeline_mode = #tpu.pipeline_mode<synchronous>, transform_indices = @transform_21, window_bounds = array<i64: 16, 1>}, {transform_indices = @transform_22, window_bounds = array<i64: 1, 16, 256>}]} {
    %cst = arith.constant 0.000000e+00 : f32
    %0 = vector.broadcast %cst : f32 to vector<16x128xf32>
    %c0 = arith.constant 0 : index
    %c0_0 = arith.constant 0 : index
    %1 = vector.load %arg24[%c0, %c0_0] : memref<16x512xf32, #tpu.memory_space<vmem>>, vector<16x128xf32>
    tpu.vector_store %arg24[%c0, %c0_0], %0 {strides = array<i32>} : memref<16x512xf32, #tpu.memory_space<vmem>>, vector<16x128xf32>,
    %cst_1 = arith.constant 0.000000e+00 : f32
    %2 = vector.broadcast %cst_1 : f32 to vector<16x128xf32>
    %c0_2 = arith.constant 0 : index
    %c384 = arith.constant 384 : index
    %3 = vector.load %arg24[%c0_2, %c384] : memref<16x512xf32, #tpu.memory_space<vmem>>, vector<16x128xf32>
    tpu.vector_store %arg24[%c0_2, %c384], %2 {strides = array<i32>} : memref<16x512xf32, #tpu.memory_space<vmem>>, vector<16x128xf32>,
    %cst_3 = arith.constant -3.40282347E+38 : f32
    %4 = vector.broadcast %cst_3 : f32 to vector<16x128xf32>
    %c0_4 = arith.constant 0 : index
    %c0_5 = arith.constant 0 : index
    %5 = vector.load %arg25[%c0_4, %c0_5] : memref<16x512xf32, #tpu.memory_space<vmem>>, vector<16x128xf32>
    tpu.vector_store %arg25[%c0_4, %c0_5], %4 {strides = array<i32>} : memref<16x512xf32, #tpu.memory_space<vmem>>, vector<16x128xf32>,
    %cst_6 = arith.constant -3.40282347E+38 : f32
    %6 = vector.broadcast %cst_6 : f32 to vector<16x128xf32>
    %c0_7 = arith.constant 0 : index
    %c384_8 = arith.constant 384 : index
    %7 = vector.load %arg25[%c0_7, %c384_8] : memref<16x512xf32, #tpu.memory_space<vmem>>, vector<16x128xf32>
    tpu.vector_store %arg25[%c0_7, %c384_8], %6 {strides = array<i32>} : memref<16x512xf32, #tpu.memory_space<vmem>>, vector<16x128xf32>,
    %8 = tpu.iota {dimensions = array<i32: 1>} : vector<16x256xi32>
    %c15_i32 = arith.constant 15 : i32
    %9 = vector.broadcast %c15_i32 : i32 to vector<16x256xi32>
    %10 = arith.andi %8, %9 : vector<16x256xi32>
    %c1_i32 = arith.constant 1 : i32
    %11 = vector.broadcast %c1_i32 : i32 to vector<16x256xi32>
    %12 = arith.cmpi sge, %10, %11 : vector<16x256xi32>
    %c2_i32 = arith.constant 2 : i32
    %13 = vector.broadcast %c2_i32 : i32 to vector<16x256xi32>
    %14 = arith.cmpi sge, %10, %13 : vector<16x256xi32>
    %c14_i32 = arith.constant 14 : i32
    %15 = vector.broadcast %c14_i32 : i32 to vector<16x256xi32>
    %16 = arith.cmpi sle, %10, %15 : vector<16x256xi32>
    %c13_i32 = arith.constant 13 : i32
    %17 = vector.broadcast %c13_i32 : i32 to vector<16x256xi32>
    %18 = arith.cmpi sle, %10, %17 : vector<16x256xi32>
    %c0_9 = arith.constant 0 : index
    %c0_10 = arith.constant 0 : index
    %c0_11 = arith.constant 0 : index
    %19 = vector.load %arg1[%c0_9, %c0_10, %c0_11] : memref<1x16x256xf32, #tpu.memory_space<vmem>>, vector<1x16x256xf32>
    %20 = vector.shape_cast %19 : vector<1x16x256xf32> to vector<16x256xf32>
    %21 = arith.truncf %20 : vector<16x256xf32> to vector<16x256xbf16>
    %c0_12 = arith.constant 0 : index
    %c0_13 = arith.constant 0 : index
    %22 = vector.load %arg2[%c0_12, %c0_13] : memref<16x16xbf16, #tpu.memory_space<vmem>>, vector<16x16xbf16>
    %cst_14 = arith.constant dense<0.000000e+00> : vector<16x256xf32>
    %23 = tpu.matmul %22, %21, %cst_14 {dimension_numbers = #tpu.dot_dimension_numbers<[1], [0], [0], [1], [0, 0, 1, 1], [], []>} : vector<16x16xbf16>, vector<16x256xbf16>, vector<16x256xf32> -> vector<16x256xf32>
    %c0_15 = arith.constant 0 : index
    %c0_16 = arith.constant 0 : index
    %24 = vector.load %arg3[%c0_15, %c0_16] : memref<16x1xf32, #tpu.memory_space<vmem>>, vector<16x1xf32>
    %25 = vector.broadcast %24 : vector<16x1xf32> to vector<16x256xf32>
    %26 = arith.mulf %23, %25 : vector<16x256xf32>
    %c0_17 = arith.constant 0 : index
    %c0_18 = arith.constant 0 : index
    %27 = vector.load %arg4[%c0_17, %c0_18] : memref<16x1xf32, #tpu.memory_space<vmem>>, vector<16x1xf32>
    %28 = vector.broadcast %27 : vector<16x1xf32> to vector<16x256xf32>
    %29 = arith.addf %26, %28 : vector<16x256xf32>
    %cst_19 = arith.constant 1.000000e-01 : f32
    %30 = vector.broadcast %cst_19 : f32 to vector<16x256xf32>
    %31 = arith.mulf %30, %29 : vector<16x256xf32>
    %32 = arith.maximumf %29, %31 : vector<16x256xf32>
    %c0_20 = arith.constant 0 : index
    %c128 = arith.constant 128 : index
    %33 = vector.load %arg24[%c0_20, %c128] : memref<16x512xf32, #tpu.memory_space<vmem>>, vector<16x256xf32>
    tpu.vector_store %arg24[%c0_20, %c128], %32 {strides = array<i32>} : memref<16x512xf32, #tpu.memory_space<vmem>>, vector<16x256xf32>,
    %c0_21 = arith.constant 0 : index
    %c111 = arith.constant 111 : index
    %34 = vector.load %arg24[%c0_21, %c111] : memref<16x512xf32, #tpu.memory_space<vmem>>, vector<16x256xf32>
    %cst_22 = arith.constant 0.000000e+00 : f32
    %35 = vector.broadcast %cst_22 : f32 to vector<16x256xf32>
    %36 = arith.select %12, %34, %35 : vector<16x256xi1>, vector<16x256xf32>
    %37 = arith.truncf %36 : vector<16x256xf32> to vector<16x256xbf16>
    %c0_23 = arith.constant 0 : index
    %c0_24 = arith.constant 0 : index
    %38 = vector.load %arg26[%c0_23, %c0_24] : memref<144x256xbf16, #tpu.memory_space<vmem>>, vector<16x256xbf16>
    tpu.vector_store %arg26[%c0_23, %c0_24], %37 {strides = array<i32>} : memref<144x256xbf16, #tpu.memory_space<vmem>>, vector<16x256xbf16>,
    %c0_25 = arith.constant 0 : index
    %c112 = arith.constant 112 : index
    %39 = vector.load %arg24[%c0_25, %c112] : memref<16x512xf32, #tpu.memory_space<vmem>>, vector<16x256xf32>
    %40 = arith.truncf %39 : vector<16x256xf32> to vector<16x256xbf16>
    %c16 = arith.constant 16 : index
    %c0_26 = arith.constant 0 : index
    %41 = vector.load %arg26[%c16, %c0_26] : memref<144x256xbf16, #tpu.memory_space<vmem>>, vector<16x256xbf16>
    tpu.vector_store %arg26[%c16, %c0_26], %40 {strides = array<i32>} : memref<144x256xbf16, #tpu.memory_space<vmem>>, vector<16x256xbf16>,
    %c0_27 = arith.constant 0 : index
    %c113 = arith.constant 113 : index
    %42 = vector.load %arg24[%c0_27, %c113] : memref<16x512xf32, #tpu.memory_space<vmem>>, vector<16x256xf32>
    %cst_28 = arith.constant 0.000000e+00 : f32
    %43 = vector.broadcast %cst_28 : f32 to vector<16x256xf32>
    %44 = arith.select %16, %42, %43 : vector<16x256xi1>, vector<16x256xf32>
    %45 = arith.truncf %44 : vector<16x256xf32> to vector<16x256xbf16>
    %c32 = arith.constant 32 : index
    %c0_29 = arith.constant 0 : index
    %46 = vector.load %arg26[%c32, %c0_29] : memref<144x256xbf16, #tpu.memory_space<vmem>>, vector<16x256xbf16>
    tpu.vector_store %arg26[%c32, %c0_29], %45 {strides = array<i32>} : memref<144x256xbf16, #tpu.memory_space<vmem>>, vector<16x256xbf16>,
    %c0_30 = arith.constant 0 : index
    %c127 = arith.constant 127 : index
    %47 = vector.load %arg24[%c0_30, %c127] : memref<16x512xf32, #tpu.memory_space<vmem>>, vector<16x256xf32>
    %cst_31 = arith.constant 0.000000e+00 : f32
    %48 = vector.broadcast %cst_31 : f32 to vector<16x256xf32>
    %49 = arith.select %12, %47, %48 : vector<16x256xi1>, vector<16x256xf32>
    %50 = arith.truncf %49 : vector<16x256xf32> to vector<16x256xbf16>
    %c48 = arith.constant 48 : index
    %c0_32 = arith.constant 0 : index
    %51 = vector.load %arg26[%c48, %c0_32] : memref<144x256xbf16, #tpu.memory_space<vmem>>, vector<16x256xbf16>
    tpu.vector_store %arg26[%c48, %c0_32], %50 {strides = array<i32>} : memref<144x256xbf16, #tpu.memory_space<vmem>>, vector<16x256xbf16>,
    %c0_33 = arith.constant 0 : index
    %c128_34 = arith.constant 128 : index
    %52 = vector.load %arg24[%c0_33, %c128_34] : memref<16x512xf32, #tpu.memory_space<vmem>>, vector<16x256xf32>
    %53 = arith.truncf %52 : vector<16x256xf32> to vector<16x256xbf16>
    %c64 = arith.constant 64 : index
    %c0_35 = arith.constant 0 : index
    %54 = vector.load %arg26[%c64, %c0_35] : memref<144x256xbf16, #tpu.memory_space<vmem>>, vector<16x256xbf16>
    tpu.vector_store %arg26[%c64, %c0_35], %53 {strides = array<i32>} : memref<144x256xbf16, #tpu.memory_space<vmem>>, vector<16x256xbf16>,
    %c0_36 = arith.constant 0 : index
    %c129 = arith.constant 129 : index
    %55 = vector.load %arg24[%c0_36, %c129] : memref<16x512xf32, #tpu.memory_space<vmem>>, vector<16x256xf32>
    %cst_37 = arith.constant 0.000000e+00 : f32
    %56 = vector.broadcast %cst_37 : f32 to vector<16x256xf32>
    %57 = arith.select %16, %55, %56 : vector<16x256xi1>, vector<16x256xf32>
    %58 = arith.truncf %57 : vector<16x256xf32> to vector<16x256xbf16>
    %c80 = arith.constant 80 : index
    %c0_38 = arith.constant 0 : index
    %59 = vector.load %arg26[%c80, %c0_38] : memref<144x256xbf16, #tpu.memory_space<vmem>>, vector<16x256xbf16>
    tpu.vector_store %arg26[%c80, %c0_38], %58 {strides = array<i32>} : memref<144x256xbf16, #tpu.memory_space<vmem>>, vector<16x256xbf16>,
    %c0_39 = arith.constant 0 : index
    %c143 = arith.constant 143 : index
    %60 = vector.load %arg24[%c0_39, %c143] : memref<16x512xf32, #tpu.memory_space<vmem>>, vector<16x256xf32>
    %cst_40 = arith.constant 0.000000e+00 : f32
    %61 = vector.broadcast %cst_40 : f32 to vector<16x256xf32>
    %62 = arith.select %12, %60, %61 : vector<16x256xi1>, vector<16x256xf32>
    %63 = arith.truncf %62 : vector<16x256xf32> to vector<16x256xbf16>
    %c96 = arith.constant 96 : index
    %c0_41 = arith.constant 0 : index
    %64 = vector.load %arg26[%c96, %c0_41] : memref<144x256xbf16, #tpu.memory_space<vmem>>, vector<16x256xbf16>
    tpu.vector_store %arg26[%c96, %c0_41], %63 {strides = array<i32>} : memref<144x256xbf16, #tpu.memory_space<vmem>>, vector<16x256xbf16>,
    %c0_42 = arith.constant 0 : index
    %c144 = arith.constant 144 : index
    %65 = vector.load %arg24[%c0_42, %c144] : memref<16x512xf32, #tpu.memory_space<vmem>>, vector<16x256xf32>
    %66 = arith.truncf %65 : vector<16x256xf32> to vector<16x256xbf16>
    %c112_43 = arith.constant 112 : index
    %c0_44 = arith.constant 0 : index
    %67 = vector.load %arg26[%c112_43, %c0_44] : memref<144x256xbf16, #tpu.memory_space<vmem>>, vector<16x256xbf16>
    tpu.vector_store %arg26[%c112_43, %c0_44], %66 {strides = array<i32>} : memref<144x256xbf16, #tpu.memory_space<vmem>>, vector<16x256xbf16>,
    %c0_45 = arith.constant 0 : index
    %c145 = arith.constant 145 : index
    %68 = vector.load %arg24[%c0_45, %c145] : memref<16x512xf32, #tpu.memory_space<vmem>>, vector<16x256xf32>
    %cst_46 = arith.constant 0.000000e+00 : f32
    %69 = vector.broadcast %cst_46 : f32 to vector<16x256xf32>
    %70 = arith.select %16, %68, %69 : vector<16x256xi1>, vector<16x256xf32>
    %71 = arith.truncf %70 : vector<16x256xf32> to vector<16x256xbf16>
    %c128_47 = arith.constant 128 : index
    %c0_48 = arith.constant 0 : index
    %72 = vector.load %arg26[%c128_47, %c0_48] : memref<144x256xbf16, #tpu.memory_space<vmem>>, vector<16x256xbf16>
    tpu.vector_store %arg26[%c128_47, %c0_48], %71 {strides = array<i32>} : memref<144x256xbf16, #tpu.memory_space<vmem>>, vector<16x256xbf16>,
    %c0_49 = arith.constant 0 : index
    %c0_50 = arith.constant 0 : index
    %73 = vector.load %arg6[%c0_49, %c0_50] : memref<16x144xbf16, #tpu.memory_space<vmem>>, vector<16x144xbf16>
    %c0_51 = arith.constant 0 : index
    %c0_52 = arith.constant 0 : index
    %74 = vector.load %arg26[%c0_51, %c0_52] : memref<144x256xbf16, #tpu.memory_space<vmem>>, vector<144x256xbf16>
    %cst_53 = arith.constant dense<0.000000e+00> : vector<16x256xf32>
    %75 = tpu.matmul %73, %74, %cst_53 {dimension_numbers = #tpu.dot_dimension_numbers<[1], [0], [0], [1], [0, 0, 1, 1], [], []>} : vector<16x144xbf16>, vector<144x256xbf16>, vector<16x256xf32> -> vector<16x256xf32>
    %c0_54 = arith.constant 0 : index
    %c0_55 = arith.constant 0 : index
    %76 = vector.load %arg7[%c0_54, %c0_55] : memref<16x1xf32, #tpu.memory_space<vmem>>, vector<16x1xf32>
    %77 = vector.broadcast %76 : vector<16x1xf32> to vector<16x256xf32>
    %78 = arith.mulf %75, %77 : vector<16x256xf32>
    %c0_56 = arith.constant 0 : index
    %c0_57 = arith.constant 0 : index
    %79 = vector.load %arg8[%c0_56, %c0_57] : memref<16x1xf32, #tpu.memory_space<vmem>>, vector<16x1xf32>
    %80 = vector.broadcast %79 : vector<16x1xf32> to vector<16x256xf32>
    %81 = arith.addf %78, %80 : vector<16x256xf32>
    %cst_58 = arith.constant 1.000000e-01 : f32
    %82 = vector.broadcast %cst_58 : f32 to vector<16x256xf32>
    %83 = arith.mulf %82, %81 : vector<16x256xf32>
    %84 = arith.maximumf %81, %83 : vector<16x256xf32>
    %c0_59 = arith.constant 0 : index
    %c0_60 = arith.constant 0 : index
    %85 = vector.load %arg9[%c0_59, %c0_60] : memref<16x16xbf16, #tpu.memory_space<vmem>>, vector<16x16xbf16>
    %86 = arith.truncf %84 : vector<16x256xf32> to vector<16x256xbf16>
    %cst_61 = arith.constant dense<0.000000e+00> : vector<16x256xf32>
    %87 = tpu.matmul %85, %86, %cst_61 {dimension_numbers = #tpu.dot_dimension_numbers<[1], [0], [0], [1], [0, 0, 1, 1], [], []>} : vector<16x16xbf16>, vector<16x256xbf16>, vector<16x256xf32> -> vector<16x256xf32>
    %c0_62 = arith.constant 0 : index
    %c0_63 = arith.constant 0 : index
    %88 = vector.load %arg10[%c0_62, %c0_63] : memref<16x1xf32, #tpu.memory_space<vmem>>, vector<16x1xf32>
    %89 = vector.broadcast %88 : vector<16x1xf32> to vector<16x256xf32>
    %90 = arith.mulf %87, %89 : vector<16x256xf32>
    %c0_64 = arith.constant 0 : index
    %c0_65 = arith.constant 0 : index
    %91 = vector.load %arg11[%c0_64, %c0_65] : memref<16x1xf32, #tpu.memory_space<vmem>>, vector<16x1xf32>
    %92 = vector.broadcast %91 : vector<16x1xf32> to vector<16x256xf32>
    %93 = arith.addf %90, %92 : vector<16x256xf32>
    %cst_66 = arith.constant 1.000000e-01 : f32
    %94 = vector.broadcast %cst_66 : f32 to vector<16x256xf32>
    %95 = arith.mulf %94, %93 : vector<16x256xf32>
    %96 = arith.maximumf %93, %95 : vector<16x256xf32>
    %c0_67 = arith.constant 0 : index
    %c128_68 = arith.constant 128 : index
    %97 = vector.load %arg25[%c0_67, %c128_68] : memref<16x512xf32, #tpu.memory_space<vmem>>, vector<16x256xf32>
    tpu.vector_store %arg25[%c0_67, %c128_68], %96 {strides = array<i32>} : memref<16x512xf32, #tpu.memory_space<vmem>>, vector<16x256xf32>,
    %c0_69 = arith.constant 0 : index
    %c96_70 = arith.constant 96 : index
    %98 = vector.load %arg25[%c0_69, %c96_70] : memref<16x512xf32, #tpu.memory_space<vmem>>, vector<16x256xf32>
    %c0_71 = arith.constant 0 : index
    %c112_72 = arith.constant 112 : index
    %99 = vector.load %arg25[%c0_71, %c112_72] : memref<16x512xf32, #tpu.memory_space<vmem>>, vector<16x256xf32>
    %100 = arith.maximumf %98, %99 : vector<16x256xf32>
    %c0_73 = arith.constant 0 : index
    %c128_74 = arith.constant 128 : index
    %101 = vector.load %arg25[%c0_73, %c128_74] : memref<16x512xf32, #tpu.memory_space<vmem>>, vector<16x256xf32>
    %102 = arith.maximumf %100, %101 : vector<16x256xf32>
    %c0_75 = arith.constant 0 : index
    %c144_76 = arith.constant 144 : index
    %103 = vector.load %arg25[%c0_75, %c144_76] : memref<16x512xf32, #tpu.memory_space<vmem>>, vector<16x256xf32>
    %104 = arith.maximumf %102, %103 : vector<16x256xf32>
    %c0_77 = arith.constant 0 : index
    %c160 = arith.constant 160 : index
    %105 = vector.load %arg25[%c0_77, %c160] : memref<16x512xf32, #tpu.memory_space<vmem>>, vector<16x256xf32>
    %106 = arith.maximumf %104, %105 : vector<16x256xf32>
    %c0_78 = arith.constant 0 : index
    %c128_79 = arith.constant 128 : index
    %107 = vector.load %arg25[%c0_78, %c128_79] : memref<16x512xf32, #tpu.memory_space<vmem>>, vector<16x256xf32>
    tpu.vector_store %arg25[%c0_78, %c128_79], %106 {strides = array<i32>} : memref<16x512xf32, #tpu.memory_space<vmem>>, vector<16x256xf32>,
    %c0_80 = arith.constant 0 : index
    %c127_81 = arith.constant 127 : index
    %108 = vector.load %arg25[%c0_80, %c127_81] : memref<16x512xf32, #tpu.memory_space<vmem>>, vector<16x256xf32>
    %cst_82 = arith.constant -3.40282347E+38 : f32
    %109 = vector.broadcast %cst_82 : f32 to vector<16x256xf32>
    %110 = arith.select %12, %108, %109 : vector<16x256xi1>, vector<16x256xf32>
    %111 = arith.maximumf %106, %110 : vector<16x256xf32>
    %c0_83 = arith.constant 0 : index
    %c129_84 = arith.constant 129 : index
    %112 = vector.load %arg25[%c0_83, %c129_84] : memref<16x512xf32, #tpu.memory_space<vmem>>, vector<16x256xf32>
    %cst_85 = arith.constant -3.40282347E+38 : f32
    %113 = vector.broadcast %cst_85 : f32 to vector<16x256xf32>
    %114 = arith.select %16, %112, %113 : vector<16x256xi1>, vector<16x256xf32>
    %115 = arith.maximumf %111, %114 : vector<16x256xf32>
    %c0_86 = arith.constant 0 : index
    %c126 = arith.constant 126 : index
    %116 = vector.load %arg25[%c0_86, %c126] : memref<16x512xf32, #tpu.memory_space<vmem>>, vector<16x256xf32>
    %cst_87 = arith.constant -3.40282347E+38 : f32
    %117 = vector.broadcast %cst_87 : f32 to vector<16x256xf32>
    %118 = arith.select %14, %116, %117 : vector<16x256xi1>, vector<16x256xf32>
    %119 = arith.maximumf %115, %118 : vector<16x256xf32>
    %c0_88 = arith.constant 0 : index
    %c130 = arith.constant 130 : index
    %120 = vector.load %arg25[%c0_88, %c130] : memref<16x512xf32, #tpu.memory_space<vmem>>, vector<16x256xf32>
    %cst_89 = arith.constant -3.40282347E+38 : f32
    %121 = vector.broadcast %cst_89 : f32 to vector<16x256xf32>
    %122 = arith.select %18, %120, %121 : vector<16x256xi1>, vector<16x256xf32>
    %123 = arith.maximumf %119, %122 : vector<16x256xf32>
    %c0_90 = arith.constant 0 : index
    %c128_91 = arith.constant 128 : index
    %124 = vector.load %arg25[%c0_90, %c128_91] : memref<16x512xf32, #tpu.memory_space<vmem>>, vector<16x256xf32>
    tpu.vector_store %arg25[%c0_90, %c128_91], %123 {strides = array<i32>} : memref<16x512xf32, #tpu.memory_space<vmem>>, vector<16x256xf32>,
    %c0_92 = arith.constant 0 : index
    %c96_93 = arith.constant 96 : index
    %125 = vector.load %arg25[%c0_92, %c96_93] : memref<16x512xf32, #tpu.memory_space<vmem>>, vector<16x256xf32>
    %c0_94 = arith.constant 0 : index
    %c112_95 = arith.constant 112 : index
    %126 = vector.load %arg25[%c0_94, %c112_95] : memref<16x512xf32, #tpu.memory_space<vmem>>, vector<16x256xf32>
    %127 = arith.maximumf %125, %126 : vector<16x256xf32>
    %c0_96 = arith.constant 0 : index
    %c128_97 = arith.constant 128 : index
    %128 = vector.load %arg25[%c0_96, %c128_97] : memref<16x512xf32, #tpu.memory_space<vmem>>, vector<16x256xf32>
    %129 = arith.maximumf %127, %128 : vector<16x256xf32>
    %c0_98 = arith.constant 0 : index
    %c144_99 = arith.constant 144 : index
    %130 = vector.load %arg25[%c0_98, %c144_99] : memref<16x512xf32, #tpu.memory_space<vmem>>, vector<16x256xf32>
    %131 = arith.maximumf %129, %130 : vector<16x256xf32>
    %c0_100 = arith.constant 0 : index
    %c160_101 = arith.constant 160 : index
    %132 = vector.load %arg25[%c0_100, %c160_101] : memref<16x512xf32, #tpu.memory_space<vmem>>, vector<16x256xf32>
    %133 = arith.maximumf %131, %132 : vector<16x256xf32>
    %c0_102 = arith.constant 0 : index
    %c128_103 = arith.constant 128 : index
    %134 = vector.load %arg25[%c0_102, %c128_103] : memref<16x512xf32, #tpu.memory_space<vmem>>, vector<16x256xf32>
    tpu.vector_store %arg25[%c0_102, %c128_103], %133 {strides = array<i32>} : memref<16x512xf32, #tpu.memory_space<vmem>>, vector<16x256xf32>,
    %c0_104 = arith.constant 0 : index
    %c127_105 = arith.constant 127 : index
    %135 = vector.load %arg25[%c0_104, %c127_105] : memref<16x512xf32, #tpu.memory_space<vmem>>, vector<16x256xf32>
    %cst_106 = arith.constant -3.40282347E+38 : f32
    %136 = vector.broadcast %cst_106 : f32 to vector<16x256xf32>
    %137 = arith.select %12, %135, %136 : vector<16x256xi1>, vector<16x256xf32>
    %138 = arith.maximumf %133, %137 : vector<16x256xf32>
    %c0_107 = arith.constant 0 : index
    %c129_108 = arith.constant 129 : index
    %139 = vector.load %arg25[%c0_107, %c129_108] : memref<16x512xf32, #tpu.memory_space<vmem>>, vector<16x256xf32>
    %cst_109 = arith.constant -3.40282347E+38 : f32
    %140 = vector.broadcast %cst_109 : f32 to vector<16x256xf32>
    %141 = arith.select %16, %139, %140 : vector<16x256xi1>, vector<16x256xf32>
    %142 = arith.maximumf %138, %141 : vector<16x256xf32>
    %c0_110 = arith.constant 0 : index
    %c126_111 = arith.constant 126 : index
    %143 = vector.load %arg25[%c0_110, %c126_111] : memref<16x512xf32, #tpu.memory_space<vmem>>, vector<16x256xf32>
    %cst_112 = arith.constant -3.40282347E+38 : f32
    %144 = vector.broadcast %cst_112 : f32 to vector<16x256xf32>
    %145 = arith.select %14, %143, %144 : vector<16x256xi1>, vector<16x256xf32>
    %146 = arith.maximumf %142, %145 : vector<16x256xf32>
    %c0_113 = arith.constant 0 : index
    %c130_114 = arith.constant 130 : index
    %147 = vector.load %arg25[%c0_113, %c130_114] : memref<16x512xf32, #tpu.memory_space<vmem>>, vector<16x256xf32>
    %cst_115 = arith.constant -3.40282347E+38 : f32
    %148 = vector.broadcast %cst_115 : f32 to vector<16x256xf32>
    %149 = arith.select %18, %147, %148 : vector<16x256xi1>, vector<16x256xf32>
    %150 = arith.maximumf %146, %149 : vector<16x256xf32>
    %c0_116 = arith.constant 0 : index
    %c128_117 = arith.constant 128 : index
    %151 = vector.load %arg25[%c0_116, %c128_117] : memref<16x512xf32, #tpu.memory_space<vmem>>, vector<16x256xf32>
    tpu.vector_store %arg25[%c0_116, %c128_117], %150 {strides = array<i32>} : memref<16x512xf32, #tpu.memory_space<vmem>>, vector<16x256xf32>,
    %c0_118 = arith.constant 0 : index
    %c96_119 = arith.constant 96 : index
    %152 = vector.load %arg25[%c0_118, %c96_119] : memref<16x512xf32, #tpu.memory_space<vmem>>, vector<16x256xf32>
    %c0_120 = arith.constant 0 : index
    %c112_121 = arith.constant 112 : index
    %153 = vector.load %arg25[%c0_120, %c112_121] : memref<16x512xf32, #tpu.memory_space<vmem>>, vector<16x256xf32>
    %154 = arith.maximumf %152, %153 : vector<16x256xf32>
    %c0_122 = arith.constant 0 : index
    %c128_123 = arith.constant 128 : index
    %155 = vector.load %arg25[%c0_122, %c128_123] : memref<16x512xf32, #tpu.memory_space<vmem>>, vector<16x256xf32>
    %156 = arith.maximumf %154, %155 : vector<16x256xf32>
    %c0_124 = arith.constant 0 : index
    %c144_125 = arith.constant 144 : index
    %157 = vector.load %arg25[%c0_124, %c144_125] : memref<16x512xf32, #tpu.memory_space<vmem>>, vector<16x256xf32>
    %158 = arith.maximumf %156, %157 : vector<16x256xf32>
    %c0_126 = arith.constant 0 : index
    %c160_127 = arith.constant 160 : index
    %159 = vector.load %arg25[%c0_126, %c160_127] : memref<16x512xf32, #tpu.memory_space<vmem>>, vector<16x256xf32>
    %160 = arith.maximumf %158, %159 : vector<16x256xf32>
    %c0_128 = arith.constant 0 : index
    %c128_129 = arith.constant 128 : index
    %161 = vector.load %arg25[%c0_128, %c128_129] : memref<16x512xf32, #tpu.memory_space<vmem>>, vector<16x256xf32>
    tpu.vector_store %arg25[%c0_128, %c128_129], %160 {strides = array<i32>} : memref<16x512xf32, #tpu.memory_space<vmem>>, vector<16x256xf32>,
    %c0_130 = arith.constant 0 : index
    %c127_131 = arith.constant 127 : index
    %162 = vector.load %arg25[%c0_130, %c127_131] : memref<16x512xf32, #tpu.memory_space<vmem>>, vector<16x256xf32>
    %cst_132 = arith.constant -3.40282347E+38 : f32
    %163 = vector.broadcast %cst_132 : f32 to vector<16x256xf32>
    %164 = arith.select %12, %162, %163 : vector<16x256xi1>, vector<16x256xf32>
    %165 = arith.maximumf %160, %164 : vector<16x256xf32>
    %c0_133 = arith.constant 0 : index
    %c129_134 = arith.constant 129 : index
    %166 = vector.load %arg25[%c0_133, %c129_134] : memref<16x512xf32, #tpu.memory_space<vmem>>, vector<16x256xf32>
    %cst_135 = arith.constant -3.40282347E+38 : f32
    %167 = vector.broadcast %cst_135 : f32 to vector<16x256xf32>
    %168 = arith.select %16, %166, %167 : vector<16x256xi1>, vector<16x256xf32>
    %169 = arith.maximumf %165, %168 : vector<16x256xf32>
    %c0_136 = arith.constant 0 : index
    %c126_137 = arith.constant 126 : index
    %170 = vector.load %arg25[%c0_136, %c126_137] : memref<16x512xf32, #tpu.memory_space<vmem>>, vector<16x256xf32>
    %cst_138 = arith.constant -3.40282347E+38 : f32
    %171 = vector.broadcast %cst_138 : f32 to vector<16x256xf32>
    %172 = arith.select %14, %170, %171 : vector<16x256xi1>, vector<16x256xf32>
    %173 = arith.maximumf %169, %172 : vector<16x256xf32>
    %c0_139 = arith.constant 0 : index
    %c130_140 = arith.constant 130 : index
    %174 = vector.load %arg25[%c0_139, %c130_140] : memref<16x512xf32, #tpu.memory_space<vmem>>, vector<16x256xf32>
    %cst_141 = arith.constant -3.40282347E+38 : f32
    %175 = vector.broadcast %cst_141 : f32 to vector<16x256xf32>
    %176 = arith.select %18, %174, %175 : vector<16x256xi1>, vector<16x256xf32>
    %177 = arith.maximumf %173, %176 : vector<16x256xf32>
    %178 = tpu.concatenate %96, %123, %150, %177 in 0 : vector<16x256xf32>, vector<16x256xf32>, vector<16x256xf32>, vector<16x256xf32> -> vector<64x256xf32>
    %c0_142 = arith.constant 0 : index
    %c0_143 = arith.constant 0 : index
    %179 = vector.load %arg12[%c0_142, %c0_143] : memref<16x64xbf16, #tpu.memory_space<vmem>>, vector<16x64xbf16>
    %180 = arith.truncf %178 : vector<64x256xf32> to vector<64x256xbf16>
    %cst_144 = arith.constant dense<0.000000e+00> : vector<16x256xf32>
    %181 = tpu.matmul %179, %180, %cst_144 {dimension_numbers = #tpu.dot_dimension_numbers<[1], [0], [0], [1], [0, 0, 1, 1], [], []>} : vector<16x64xbf16>, vector<64x256xbf16>, vector<16x256xf32> -> vector<16x256xf32>
    %c0_145 = arith.constant 0 : index
    %c0_146 = arith.constant 0 : index
    %182 = vector.load %arg13[%c0_145, %c0_146] : memref<16x1xf32, #tpu.memory_space<vmem>>, vector<16x1xf32>
    %183 = vector.broadcast %182 : vector<16x1xf32> to vector<16x256xf32>
    %184 = arith.mulf %181, %183 : vector<16x256xf32>
    %c0_147 = arith.constant 0 : index
    %c0_148 = arith.constant 0 : index
    %185 = vector.load %arg14[%c0_147, %c0_148] : memref<16x1xf32, #tpu.memory_space<vmem>>, vector<16x1xf32>
    %186 = vector.broadcast %185 : vector<16x1xf32> to vector<16x256xf32>
    %187 = arith.addf %184, %186 : vector<16x256xf32>
    %cst_149 = arith.constant 1.000000e-01 : f32
    %188 = vector.broadcast %cst_149 : f32 to vector<16x256xf32>
    %189 = arith.mulf %188, %187 : vector<16x256xf32>
    %190 = arith.maximumf %187, %189 : vector<16x256xf32>
    %c0_150 = arith.constant 0 : index
    %c128_151 = arith.constant 128 : index
    %191 = vector.load %arg24[%c0_150, %c128_151] : memref<16x512xf32, #tpu.memory_space<vmem>>, vector<16x256xf32>
    tpu.vector_store %arg24[%c0_150, %c128_151], %190 {strides = array<i32>} : memref<16x512xf32, #tpu.memory_space<vmem>>, vector<16x256xf32>,
    %c0_152 = arith.constant 0 : index
    %c111_153 = arith.constant 111 : index
    %192 = vector.load %arg24[%c0_152, %c111_153] : memref<16x512xf32, #tpu.memory_space<vmem>>, vector<16x256xf32>
    %cst_154 = arith.constant 0.000000e+00 : f32
    %193 = vector.broadcast %cst_154 : f32 to vector<16x256xf32>
    %194 = arith.select %12, %192, %193 : vector<16x256xi1>, vector<16x256xf32>
    %195 = arith.truncf %194 : vector<16x256xf32> to vector<16x256xbf16>
    %c0_155 = arith.constant 0 : index
    %c0_156 = arith.constant 0 : index
    %196 = vector.load %arg26[%c0_155, %c0_156] : memref<144x256xbf16, #tpu.memory_space<vmem>>, vector<16x256xbf16>
    tpu.vector_store %arg26[%c0_155, %c0_156], %195 {strides = array<i32>} : memref<144x256xbf16, #tpu.memory_space<vmem>>, vector<16x256xbf16>,
    %c0_157 = arith.constant 0 : index
    %c112_158 = arith.constant 112 : index
    %197 = vector.load %arg24[%c0_157, %c112_158] : memref<16x512xf32, #tpu.memory_space<vmem>>, vector<16x256xf32>
    %198 = arith.truncf %197 : vector<16x256xf32> to vector<16x256xbf16>
    %c16_159 = arith.constant 16 : index
    %c0_160 = arith.constant 0 : index
    %199 = vector.load %arg26[%c16_159, %c0_160] : memref<144x256xbf16, #tpu.memory_space<vmem>>, vector<16x256xbf16>
    tpu.vector_store %arg26[%c16_159, %c0_160], %198 {strides = array<i32>} : memref<144x256xbf16, #tpu.memory_space<vmem>>, vector<16x256xbf16>,
    %c0_161 = arith.constant 0 : index
    %c113_162 = arith.constant 113 : index
    %200 = vector.load %arg24[%c0_161, %c113_162] : memref<16x512xf32, #tpu.memory_space<vmem>>, vector<16x256xf32>
    %cst_163 = arith.constant 0.000000e+00 : f32
    %201 = vector.broadcast %cst_163 : f32 to vector<16x256xf32>
    %202 = arith.select %16, %200, %201 : vector<16x256xi1>, vector<16x256xf32>
    %203 = arith.truncf %202 : vector<16x256xf32> to vector<16x256xbf16>
    %c32_164 = arith.constant 32 : index
    %c0_165 = arith.constant 0 : index
    %204 = vector.load %arg26[%c32_164, %c0_165] : memref<144x256xbf16, #tpu.memory_space<vmem>>, vector<16x256xbf16>
    tpu.vector_store %arg26[%c32_164, %c0_165], %203 {strides = array<i32>} : memref<144x256xbf16, #tpu.memory_space<vmem>>, vector<16x256xbf16>,
    %c0_166 = arith.constant 0 : index
    %c127_167 = arith.constant 127 : index
    %205 = vector.load %arg24[%c0_166, %c127_167] : memref<16x512xf32, #tpu.memory_space<vmem>>, vector<16x256xf32>
    %cst_168 = arith.constant 0.000000e+00 : f32
    %206 = vector.broadcast %cst_168 : f32 to vector<16x256xf32>
    %207 = arith.select %12, %205, %206 : vector<16x256xi1>, vector<16x256xf32>
    %208 = arith.truncf %207 : vector<16x256xf32> to vector<16x256xbf16>
    %c48_169 = arith.constant 48 : index
    %c0_170 = arith.constant 0 : index
    %209 = vector.load %arg26[%c48_169, %c0_170] : memref<144x256xbf16, #tpu.memory_space<vmem>>, vector<16x256xbf16>
    tpu.vector_store %arg26[%c48_169, %c0_170], %208 {strides = array<i32>} : memref<144x256xbf16, #tpu.memory_space<vmem>>, vector<16x256xbf16>,
    %c0_171 = arith.constant 0 : index
    %c128_172 = arith.constant 128 : index
    %210 = vector.load %arg24[%c0_171, %c128_172] : memref<16x512xf32, #tpu.memory_space<vmem>>, vector<16x256xf32>
    %211 = arith.truncf %210 : vector<16x256xf32> to vector<16x256xbf16>
    %c64_173 = arith.constant 64 : index
    %c0_174 = arith.constant 0 : index
    %212 = vector.load %arg26[%c64_173, %c0_174] : memref<144x256xbf16, #tpu.memory_space<vmem>>, vector<16x256xbf16>
    tpu.vector_store %arg26[%c64_173, %c0_174], %211 {strides = array<i32>} : memref<144x256xbf16, #tpu.memory_space<vmem>>, vector<16x256xbf16>,
    %c0_175 = arith.constant 0 : index
    %c129_176 = arith.constant 129 : index
    %213 = vector.load %arg24[%c0_175, %c129_176] : memref<16x512xf32, #tpu.memory_space<vmem>>, vector<16x256xf32>
    %cst_177 = arith.constant 0.000000e+00 : f32
    %214 = vector.broadcast %cst_177 : f32 to vector<16x256xf32>
    %215 = arith.select %16, %213, %214 : vector<16x256xi1>, vector<16x256xf32>
    %216 = arith.truncf %215 : vector<16x256xf32> to vector<16x256xbf16>
    %c80_178 = arith.constant 80 : index
    %c0_179 = arith.constant 0 : index
    %217 = vector.load %arg26[%c80_178, %c0_179] : memref<144x256xbf16, #tpu.memory_space<vmem>>, vector<16x256xbf16>
    tpu.vector_store %arg26[%c80_178, %c0_179], %216 {strides = array<i32>} : memref<144x256xbf16, #tpu.memory_space<vmem>>, vector<16x256xbf16>,
    %c0_180 = arith.constant 0 : index
    %c143_181 = arith.constant 143 : index
    %218 = vector.load %arg24[%c0_180, %c143_181] : memref<16x512xf32, #tpu.memory_space<vmem>>, vector<16x256xf32>
    %cst_182 = arith.constant 0.000000e+00 : f32
    %219 = vector.broadcast %cst_182 : f32 to vector<16x256xf32>
    %220 = arith.select %12, %218, %219 : vector<16x256xi1>, vector<16x256xf32>
    %221 = arith.truncf %220 : vector<16x256xf32> to vector<16x256xbf16>
    %c96_183 = arith.constant 96 : index
    %c0_184 = arith.constant 0 : index
    %222 = vector.load %arg26[%c96_183, %c0_184] : memref<144x256xbf16, #tpu.memory_space<vmem>>, vector<16x256xbf16>
    tpu.vector_store %arg26[%c96_183, %c0_184], %221 {strides = array<i32>} : memref<144x256xbf16, #tpu.memory_space<vmem>>, vector<16x256xbf16>,
    %c0_185 = arith.constant 0 : index
    %c144_186 = arith.constant 144 : index
    %223 = vector.load %arg24[%c0_185, %c144_186] : memref<16x512xf32, #tpu.memory_space<vmem>>, vector<16x256xf32>
    %224 = arith.truncf %223 : vector<16x256xf32> to vector<16x256xbf16>
    %c112_187 = arith.constant 112 : index
    %c0_188 = arith.constant 0 : index
    %225 = vector.load %arg26[%c112_187, %c0_188] : memref<144x256xbf16, #tpu.memory_space<vmem>>, vector<16x256xbf16>
    tpu.vector_store %arg26[%c112_187, %c0_188], %224 {strides = array<i32>} : memref<144x256xbf16, #tpu.memory_space<vmem>>, vector<16x256xbf16>,
    %c0_189 = arith.constant 0 : index
    %c145_190 = arith.constant 145 : index
    %226 = vector.load %arg24[%c0_189, %c145_190] : memref<16x512xf32, #tpu.memory_space<vmem>>, vector<16x256xf32>
    %cst_191 = arith.constant 0.000000e+00 : f32
    %227 = vector.broadcast %cst_191 : f32 to vector<16x256xf32>
    %228 = arith.select %16, %226, %227 : vector<16x256xi1>, vector<16x256xf32>
    %229 = arith.truncf %228 : vector<16x256xf32> to vector<16x256xbf16>
    %c128_192 = arith.constant 128 : index
    %c0_193 = arith.constant 0 : index
    %230 = vector.load %arg26[%c128_192, %c0_193] : memref<144x256xbf16, #tpu.memory_space<vmem>>, vector<16x256xbf16>
    tpu.vector_store %arg26[%c128_192, %c0_193], %229 {strides = array<i32>} : memref<144x256xbf16, #tpu.memory_space<vmem>>, vector<16x256xbf16>,
    %c0_194 = arith.constant 0 : index
    %c0_195 = arith.constant 0 : index
    %231 = vector.load %arg15[%c0_194, %c0_195] : memref<16x144xbf16, #tpu.memory_space<vmem>>, vector<16x144xbf16>
    %c0_196 = arith.constant 0 : index
    %c0_197 = arith.constant 0 : index
    %232 = vector.load %arg26[%c0_196, %c0_197] : memref<144x256xbf16, #tpu.memory_space<vmem>>, vector<144x256xbf16>
    %cst_198 = arith.constant dense<0.000000e+00> : vector<16x256xf32>
    %233 = tpu.matmul %231, %232, %cst_198 {dimension_numbers = #tpu.dot_dimension_numbers<[1], [0], [0], [1], [0, 0, 1, 1], [], []>} : vector<16x144xbf16>, vector<144x256xbf16>, vector<16x256xf32> -> vector<16x256xf32>
    %c0_199 = arith.constant 0 : index
    %c0_200 = arith.constant 0 : index
    %234 = vector.load %arg16[%c0_199, %c0_200] : memref<16x1xf32, #tpu.memory_space<vmem>>, vector<16x1xf32>
    %235 = vector.broadcast %234 : vector<16x1xf32> to vector<16x256xf32>
    %236 = arith.mulf %233, %235 : vector<16x256xf32>
    %c0_201 = arith.constant 0 : index
    %c0_202 = arith.constant 0 : index
    %237 = vector.load %arg17[%c0_201, %c0_202] : memref<16x1xf32, #tpu.memory_space<vmem>>, vector<16x1xf32>
    %238 = vector.broadcast %237 : vector<16x1xf32> to vector<16x256xf32>
    %239 = arith.addf %236, %238 : vector<16x256xf32>
    %cst_203 = arith.constant 1.000000e-01 : f32
    %240 = vector.broadcast %cst_203 : f32 to vector<16x256xf32>
    %241 = arith.mulf %240, %239 : vector<16x256xf32>
    %242 = arith.maximumf %239, %241 : vector<16x256xf32>
    %c0_204 = arith.constant 0 : index
    %c0_205 = arith.constant 0 : index
    %243 = vector.load %arg5[%c0_204, %c0_205] : memref<16x16xbf16, #tpu.memory_space<vmem>>, vector<16x16xbf16>
    %cst_206 = arith.constant dense<0.000000e+00> : vector<16x256xf32>
    %244 = tpu.matmul %243, %21, %cst_206 {dimension_numbers = #tpu.dot_dimension_numbers<[1], [0], [0], [1], [0, 0, 1, 1], [], []>} : vector<16x16xbf16>, vector<16x256xbf16>, vector<16x256xf32> -> vector<16x256xf32>
    %245 = tpu.concatenate %242, %244 in 0 : vector<16x256xf32>, vector<16x256xf32> -> vector<32x256xf32>
    %c0_207 = arith.constant 0 : index
    %c0_208 = arith.constant 0 : index
    %246 = vector.load %arg18[%c0_207, %c0_208] : memref<32x1xf32, #tpu.memory_space<vmem>>, vector<32x1xf32>
    %247 = vector.broadcast %246 : vector<32x1xf32> to vector<32x256xf32>
    %248 = arith.mulf %245, %247 : vector<32x256xf32>
    %c0_209 = arith.constant 0 : index
    %c0_210 = arith.constant 0 : index
    %249 = vector.load %arg19[%c0_209, %c0_210] : memref<32x1xf32, #tpu.memory_space<vmem>>, vector<32x1xf32>
    %250 = vector.broadcast %249 : vector<32x1xf32> to vector<32x256xf32>
    %251 = arith.addf %248, %250 : vector<32x256xf32>
    %cst_211 = arith.constant 0.000000e+00 : f32
    %252 = vector.broadcast %cst_211 : f32 to vector<32x256xf32>
    %253 = arith.maximumf %251, %252 : vector<32x256xf32>
    %254 = math.absf %251 : vector<32x256xf32>
    %cst_212 = arith.constant 0.000000e+00 : f32
    %255 = vector.broadcast %cst_212 : f32 to vector<32x256xf32>
    %256 = arith.subf %255, %254 : vector<32x256xf32>
    %257 = math.exp %256 : vector<32x256xf32>
    %cst_213 = arith.constant 1.000000e+00 : f32
    %258 = vector.broadcast %cst_213 : f32 to vector<32x256xf32>
    %259 = arith.addf %258, %257 : vector<32x256xf32>
    %260 = math.log %259 : vector<32x256xf32>
    %261 = arith.addf %253, %260 : vector<32x256xf32>
    %262 = math.tanh %261 : vector<32x256xf32>
    %263 = arith.mulf %251, %262 : vector<32x256xf32>
    %c0_214 = arith.constant 0 : index
    %c0_215 = arith.constant 0 : index
    %264 = vector.load %arg20[%c0_214, %c0_215] : memref<16x32xbf16, #tpu.memory_space<vmem>>, vector<16x32xbf16>
    %265 = arith.truncf %263 : vector<32x256xf32> to vector<32x256xbf16>
    %cst_216 = arith.constant dense<0.000000e+00> : vector<16x256xf32>
    %266 = tpu.matmul %264, %265, %cst_216 {dimension_numbers = #tpu.dot_dimension_numbers<[1], [0], [0], [1], [0, 0, 1, 1], [], []>} : vector<16x32xbf16>, vector<32x256xbf16>, vector<16x256xf32> -> vector<16x256xf32>
    %c0_217 = arith.constant 0 : index
    %c0_218 = arith.constant 0 : index
    %267 = vector.load %arg21[%c0_217, %c0_218] : memref<16x1xf32, #tpu.memory_space<vmem>>, vector<16x1xf32>
    %268 = vector.broadcast %267 : vector<16x1xf32> to vector<16x256xf32>
    %269 = arith.mulf %266, %268 : vector<16x256xf32>
    %c0_219 = arith.constant 0 : index
    %c0_220 = arith.constant 0 : index
    %270 = vector.load %arg22[%c0_219, %c0_220] : memref<16x1xf32, #tpu.memory_space<vmem>>, vector<16x1xf32>
    %271 = vector.broadcast %270 : vector<16x1xf32> to vector<16x256xf32>
    %272 = arith.addf %269, %271 : vector<16x256xf32>
    %cst_221 = arith.constant 1.000000e-01 : f32
    %273 = vector.broadcast %cst_221 : f32 to vector<16x256xf32>
    %274 = arith.mulf %273, %272 : vector<16x256xf32>
    %275 = arith.maximumf %272, %274 : vector<16x256xf32>
    %c0_222 = arith.constant 0 : index
    %c0_223 = arith.constant 0 : index
    %c0_224 = arith.constant 0 : index
    %276 = vector.load %arg23[%c0_222, %c0_223, %c0_224] : memref<1x16x256xf32, #tpu.memory_space<vmem>>, vector<1x16x256xf32>
    %277 = vector.shape_cast %276 : vector<1x16x256xf32> to vector<16x256xf32>
    %278 = vector.shape_cast %275 : vector<16x256xf32> to vector<1x16x256xf32>
    tpu.vector_store %arg23[%c0_222, %c0_223, %c0_224], %278 {strides = array<i32>} : memref<1x16x256xf32, #tpu.memory_space<vmem>>, vector<1x16x256xf32>,
    return
  }
  func.func @transform_0(%arg0: i32) -> (i32, i32, i32) {
    %c0_i32 = arith.constant 0 : i32
    %c0_i32_0 = arith.constant 0 : i32
    %c0_i32_1 = arith.constant 0 : i32
    return %arg0, %c0_i32, %c0_i32_0 : i32, i32, i32
  }
  func.func @transform_1(%arg0: i32) -> (i32, i32) {
    %c0_i32 = arith.constant 0 : i32
    %c0_i32_0 = arith.constant 0 : i32
    %c0_i32_1 = arith.constant 0 : i32
    return %c0_i32, %c0_i32_0 : i32, i32
  }
  func.func @transform_2(%arg0: i32) -> (i32, i32) {
    %c0_i32 = arith.constant 0 : i32
    %c0_i32_0 = arith.constant 0 : i32
    %c0_i32_1 = arith.constant 0 : i32
    return %c0_i32, %c0_i32_0 : i32, i32
  }
  func.func @transform_3(%arg0: i32) -> (i32, i32) {
    %c0_i32 = arith.constant 0 : i32
    %c0_i32_0 = arith.constant 0 : i32
    %c0_i32_1 = arith.constant 0 : i32
    return %c0_i32, %c0_i32_0 : i32, i32
  }
  func.func @transform_4(%arg0: i32) -> (i32, i32) {
    %c0_i32 = arith.constant 0 : i32
    %c0_i32_0 = arith.constant 0 : i32
    %c0_i32_1 = arith.constant 0 : i32
    return %c0_i32, %c0_i32_0 : i32, i32
  }
  func.func @transform_5(%arg0: i32) -> (i32, i32) {
    %c0_i32 = arith.constant 0 : i32
    %c0_i32_0 = arith.constant 0 : i32
    %c0_i32_1 = arith.constant 0 : i32
    return %c0_i32, %c0_i32_0 : i32, i32
  }
  func.func @transform_6(%arg0: i32) -> (i32, i32) {
    %c0_i32 = arith.constant 0 : i32
    %c0_i32_0 = arith.constant 0 : i32
    %c0_i32_1 = arith.constant 0 : i32
    return %c0_i32, %c0_i32_0 : i32, i32
  }
  func.func @transform_7(%arg0: i32) -> (i32, i32) {
    %c0_i32 = arith.constant 0 : i32
    %c0_i32_0 = arith.constant 0 : i32
    %c0_i32_1 = arith.constant 0 : i32
    return %c0_i32, %c0_i32_0 : i32, i32
  }
  func.func @transform_8(%arg0: i32) -> (i32, i32) {
    %c0_i32 = arith.constant 0 : i32
    %c0_i32_0 = arith.constant 0 : i32
    %c0_i32_1 = arith.constant 0 : i32
    return %c0_i32, %c0_i32_0 : i32, i32
  }
  func.func @transform_9(%arg0: i32) -> (i32, i32) {
    %c0_i32 = arith.constant 0 : i32
    %c0_i32_0 = arith.constant 0 : i32
    %c0_i32_1 = arith.constant 0 : i32
    return %c0_i32, %c0_i32_0 : i32, i32
  }
  func.func @transform_10(%arg0: i32) -> (i32, i32) {
    %c0_i32 = arith.constant 0 : i32
    %c0_i32_0 = arith.constant 0 : i32
    %c0_i32_1 = arith.constant 0 : i32
    return %c0_i32, %c0_i32_0 : i32, i32
  }
  func.func @transform_11(%arg0: i32) -> (i32, i32) {
    %c0_i32 = arith.constant 0 : i32
    %c0_i32_0 = arith.constant 0 : i32
    %c0_i32_1 = arith.constant 0 : i32
    return %c0_i32, %c0_i32_0 : i32, i32
  }
  func.func @transform_12(%arg0: i32) -> (i32, i32) {
    %c0_i32 = arith.constant 0 : i32
    %c0_i32_0 = arith.constant 0 : i32
    %c0_i32_1 = arith.constant 0 : i32
    return %c0_i32, %c0_i32_0 : i32, i32
  }
  func.func @transform_13(%arg0: i32) -> (i32, i32) {
    %c0_i32 = arith.constant 0 : i32
    %c0_i32_0 = arith.constant 0 : i32
    %c0_i32_1 = arith.constant 0 : i32
    return %c0_i32, %c0_i32_0 : i32, i32
  }
  func.func @transform_14(%arg0: i32) -> (i32, i32) {
    %c0_i32 = arith.constant 0 : i32
    %c0_i32_0 = arith.constant 0 : i32
    %c0_i32_1 = arith.constant 0 : i32
    return %c0_i32, %c0_i32_0 : i32, i32
  }
  func.func @transform_15(%arg0: i32) -> (i32, i32) {
    %c0_i32 = arith.constant 0 : i32
    %c0_i32_0 = arith.constant 0 : i32
    %c0_i32_1 = arith.constant 0 : i32
    return %c0_i32, %c0_i32_0 : i32, i32
  }
  func.func @transform_16(%arg0: i32) -> (i32, i32) {
    %c0_i32 = arith.constant 0 : i32
    %c0_i32_0 = arith.constant 0 : i32
    %c0_i32_1 = arith.constant 0 : i32
    return %c0_i32, %c0_i32_0 : i32, i32
  }
  func.func @transform_17(%arg0: i32) -> (i32, i32) {
    %c0_i32 = arith.constant 0 : i32
    %c0_i32_0 = arith.constant 0 : i32
    %c0_i32_1 = arith.constant 0 : i32
    return %c0_i32, %c0_i32_0 : i32, i32
  }
  func.func @transform_18(%arg0: i32) -> (i32, i32) {
    %c0_i32 = arith.constant 0 : i32
    %c0_i32_0 = arith.constant 0 : i32
    %c0_i32_1 = arith.constant 0 : i32
    return %c0_i32, %c0_i32_0 : i32, i32
  }
  func.func @transform_19(%arg0: i32) -> (i32, i32) {
    %c0_i32 = arith.constant 0 : i32
    %c0_i32_0 = arith.constant 0 : i32
    %c0_i32_1 = arith.constant 0 : i32
    return %c0_i32, %c0_i32_0 : i32, i32
  }
  func.func @transform_20(%arg0: i32) -> (i32, i32) {
    %c0_i32 = arith.constant 0 : i32
    %c0_i32_0 = arith.constant 0 : i32
    %c0_i32_1 = arith.constant 0 : i32
    return %c0_i32, %c0_i32_0 : i32, i32
  }
  func.func @transform_21(%arg0: i32) -> (i32, i32) {
    %c0_i32 = arith.constant 0 : i32
    %c0_i32_0 = arith.constant 0 : i32
    %c0_i32_1 = arith.constant 0 : i32
    return %c0_i32, %c0_i32_0 : i32, i32
  }
  func.func @transform_22(%arg0: i32) -> (i32, i32, i32) {
    %c0_i32 = arith.constant 0 : i32
    %c0_i32_0 = arith.constant 0 : i32
    %c0_i32_1 = arith.constant 0 : i32
    return %arg0, %c0_i32, %c0_i32_0 : i32, i32, i32
  }
}

</mosaic_0001>

<bundles_post_ra>
// kernel: tpu_custom_call.1
= control target key start
LH: loop header
LB: loop body
LE: loop exit
PB: predicated region body
PF: predicated region fallthrough
CT: control target
= control target key end

     0   :  { %s5648_s0 = inlined_call_operand.vmem [shape: f32[2,16,256], index: 0, kind: input, shape index: {}]   ;;  %s5649_s1 = inlined_call_operand.vmem [shape: bf16[16,16], index: 1, kind: input, shape index: {}]   ;;  %s5650_s2 = inlined_call_operand.vmem [shape: f32[16,1], index: 2, kind: input, shape index: {}]   ;;  %s5651_s3 = inlined_call_operand.vmem [shape: f32[16,1], index: 3, kind: input, shape index: {}]   ;;  %s5652_s4 = inlined_call_operand.vmem [shape: bf16[16,16], index: 4, kind: input, shape index: {}]   ;;  %s5653_s5 = inlined_call_operand.vmem [shape: bf16[16,144], index: 5, kind: input, shape index: {}]   ;;  %s5654_s6 = inlined_call_operand.vmem [shape: f32[16,1], index: 6, kind: input, shape index: {}]   ;;  %s5655_s7 = inlined_call_operand.vmem [shape: f32[16,1], index: 7, kind: input, shape index: {}]   ;;  %s5656_s8 = inlined_call_operand.vmem [shape: bf16[16,16], index: 8, kind: input, shape index: {}]   ;;  %s5657_s9 = inlined_call_operand.vmem [shape: f32[16,1], index: 9, kind: input, shape index: {}]   ;;  %s5658_s10 = inlined_call_operand.vmem [shape: f32[16,1], index: 10, kind: input, shape index: {}]   ;;  %s5659_s11 = inlined_call_operand.vmem [shape: bf16[16,64], index: 11, kind: input, shape index: {}]   ;;  %s5660_s12 = inlined_call_operand.vmem [shape: f32[16,1], index: 12, kind: input, shape index: {}]   ;;  %s5661_s13 = inlined_call_operand.vmem [shape: f32[16,1], index: 13, kind: input, shape index: {}]   ;;  %s5662_s14 = inlined_call_operand.vmem [shape: bf16[16,144], index: 14, kind: input, shape index: {}]   ;;  %s5663_s15 = inlined_call_operand.vmem [shape: f32[16,1], index: 15, kind: input, shape index: {}]   ;;  %s5664_s16 = inlined_call_operand.vmem [shape: f32[16,1], index: 16, kind: input, shape index: {}]   ;;  %s5665_s17 = inlined_call_operand.vmem [shape: f32[32,1], index: 17, kind: input, shape index: {}]   ;;  %s5666_s18 = inlined_call_operand.vmem [shape: f32[32,1], index: 18, kind: input, shape index: {}]   ;;  %s5667_s19 = inlined_call_operand.vmem [shape: bf16[16,32], index: 19, kind: input, shape index: {}]   ;;  %s5668_s20 = inlined_call_operand.vmem [shape: f32[16,1], index: 20, kind: input, shape index: {}]   ;;  %s5669_s21 = inlined_call_operand.vmem [shape: f32[16,1], index: 21, kind: input, shape index: {}]   ;;  %s5670_s22 = inlined_call_operand.hbm [shape: f32[2,16,256], index: 22, kind: output, shape index: {}]  }
   0x1   :  { %5715 = sst [smem:[#allocation14_spill]] %s5648_s0 }
   0x2   :  { %5716 = sst [smem:[#allocation15_spill]] %s5649_s1 }
   0x3   :  { %5717 = sst [smem:[#allocation16_spill]] %s5650_s2 }
   0x4   :  { %5718 = sst [smem:[#allocation17_spill]] %s5651_s3 }
   0x5   :  { %5719 = sst [smem:[#allocation18_spill]] %s5652_s4 }
   0x6   :  { %5720 = sst [smem:[#allocation19_spill]] %s5653_s5 }
   0x7   :  { %5721 = sst [smem:[#allocation20_spill]] %s5654_s6 }
   0x8   :  { %5722 = sst [smem:[#allocation21_spill]] %s5655_s7 }
   0x9   :  { %5723 = sst [smem:[#allocation22_spill]] %s5656_s8 }
   0xa   :  { %5724 = sst [smem:[#allocation23_spill]] %s5657_s9 }
   0xb   :  { %5725 = sst [smem:[#allocation24_spill]] %s5658_s10 }
   0xc   :  { %27 = vsyncpa [#allocation6], 0 }
   0xd   :  { %29 = vsyncpa [#allocation6 + $0x1], 0  ;;  %s4624_s3 = smov 0   ;;  %s4626_s28 = smov 0  }
   0xe   :  { %s4628_s29 = smov 0   ;;  %s4630_s30 = smov 0  }
   0xf LB: > { %5726 = sst [smem:[#allocation8_spill]] %s4475_s3  ;;  %s4645_s4 = sadd.s32 4294967295, %s4487_s30   ;;  %s4487_s30 = sphi %s4630_s30, %s5869_s30   ;;  %s4483_s29 = sphi %s4628_s29, %s5874_s29   ;;  %s4479_s28 = sphi %s4626_s28, %s5873_s28   ;;  %s4475_s3 = sphi %s4624_s3, %s5872_s3  }
  0x10   : > { %5727 = sst [smem:[#allocation9_spill]] %s4483_s29  ;;  %s3469_s0 = sadd.s32 4294967294, %s4487_s30  }
  0x11   : > { %5728 = sst [smem:[#allocation10_spill]] %s4487_s30  ;;  %s4649_s23 = sadd.s32 1, %s4487_s30  }
  0x12   : > { %5729 = sst [smem:[#allocation11_spill]] %s4649_s23  ;;  %s509_s1 = sadd.s32 1, %s4483_s29 }
  0x13   : > { %s506_s5 = ssub.s32 %s4487_s30, %s4649_s23  ;;  %p519_p0 = scmp.ne.s32.totalorder %s4483_s29, %s4479_s28 }
  0x14   : > { %p507_p1 = scmp.eq.s32.totalorder %s506_s5, 0  ;;  %p520_p2 = scmp.eq.s32.totalorder %s4645_s4, 1 }
  0x15   : > { %p525_p3 = scmp.ne.s32.totalorder %s4479_s28, %s4475_s3  ;;  %p526_p4 = scmp.eq.s32.totalorder %s3469_s0, 1 }
  0x16   : > { %s4660_s24 = scalar_select %p507_p1, %s4483_s29, %s509_s1  }
  0x17   : > { %p4662_p5 = por %p520_p2, %p519_p0  ;;  %p4666_p6 = por %p526_p4, %p525_p3 }
  0x18   : > { %5730 = sst [smem:[#allocation12_spill]] %s4660_s24  ;;  %p3472_p7 = scmp.ge.s32.totalorder %s4487_s30, 1 }
  0x19   : > { %s5732_s25 = scalar_select %p4666_p6, 1, 0 }
  0x1a   : > { %p615_p8 = scmp.lt.s32.totalorder %s4487_s30, 3 }
  0x1b   : > { %5733 = sst [smem:[#allocation13_spill]] %s5732_s25 }
  0x1c   : > { %p616_p9 = pnand %p3472_p7, %p615_p8 }
  0x1d   : > { %p677_p10 = scmp.lt.s32.totalorder (!%p616_p9), %s4645_s4, 1  ;;  %v4489_v0 = vmov (!%p616_p9), 0   ;;  %s5734_s27 = sld [smem:[#allocation16_spill]] (!%p616_p9)  ;;  %vm5703_vm0 = vcmask (!%p616_p9), 130048   ;;  %v4490_v12 = vmov (!%p616_p9), 0.0   ;;  %v4492_v13 = vmov (!%p616_p9), 0.0|0.0  }
  0x1e   : > { %619 = sbr.rel (%p616_p9) target bundleno = 3733 (0xe95), region = 108  ;;  %753 = vmatprep.mubr.bf16.mxu1 (!%p616_p9), %v4489_v0  ;;  %3629 = vset.pattern.permute.xlu0 (!%p616_p9), %v4489_v0  ;;  %s5735_s5 = sld [smem:[#allocation17_spill]] (!%p616_p9)  ;;  %v691_v55 = vlaneseq (!%p616_p9)  ;;  %vm5702_vm1 = vcmask (!%p616_p9), 138240   ;;  %vm5701_vm6 = vcmask (!%p616_p9), 121856   ;;  %vm5704_vm10 = vcmask (!%p616_p9), 7168  }
  0x1f   : > { %3630 = vset.pattern.permute.xlu1 (!%p616_p9), %v4489_v0  ;;  %1271 = vmatprep.mubr.bf16.mxu0 (!%p616_p9), %v4489_v0  ;;  %s5736_s0 = sld [smem:[#allocation14_spill]] (!%p616_p9)  ;;  %s5737_s23 = sld [smem:[#allocation15_spill]] (!%p616_p9)  ;;  %vm988_vm12 = vcmask (!%p616_p9), 1039360   ;;  %vm5700_vm13 = vcmask (!%p616_p9), 924672   ;;  %vm5711_vm14 = vcmask (!%p616_p9), 916480   ;;  %vm5699_vm15 = vcmask (!%p616_p9), 908288  }
  0x20   : > { %s5685_s30 = smov (!%p616_p9), 17   ;;  %s5681_s25 = smov (!%p616_p9), 15   ;;  %v692_v56 = vand.u32 (!%p616_p9), 127, %v691_v55 }
  0x21   : > { %s5689_s2 = smov (!%p616_p9), 127   ;;  %s5740_s7 = sld [smem:[#allocation21_spill]] (!%p616_p9) }
  0x22   : > { %s5741_s9 = sld [smem:[#allocation23_spill]] (!%p616_p9)  ;;  %s5742_s10 = sld [smem:[#allocation24_spill]] (!%p616_p9)  ;;  %v693_v59 = vadd.s32 (!%p616_p9), 128, %v692_v56  ;;  %v4774_v63 = vand.u32 (!%p616_p9), 15, %v692_v56 }
  0x23   : > { %v764_v1 = vld [vmem:[%s5734_s27] sm:$0xff] (!%p616_p9)  ;;  %v765_v3 = vld [vmem:[%s5734_s27 + $0x8] sm:$0xff] (!%p616_p9)  ;;  %s5751_s8 = sld [smem:[#allocation22_spill]] (!%p616_p9)  ;;  %s4504_s3 = smov (!%p616_p9), 32  }
  0x24   : > { %v780_v2 = vld [vmem:[%s5735_s5] sm:$0xff] (!%p616_p9)  ;;  %768 = vperm.xlu0 (!%p616_p9), %3629, %v764_v1   ;;  %v781_v4 = vld [vmem:[%s5735_s5 + $0x8] sm:$0xff] (!%p616_p9)  ;;  %v4772_v62 = vand.u32 (!%p616_p9), 15, %v693_v59  ;;  %vm5706_vm3 = vcmp.ge.s32.totalorder (!%p616_p9), %v4774_v63, 1  ;;  %vm700_vm8 = vcmp.le.s32.totalorder (!%p616_p9), %v4774_v63, 14  ;;  %s5753_s29 = smov (!%p616_p9), 1  }
  0x25   : > { %s678_s24 = scalar_select %p677_p10, %s4645_s4, 1  ;;  %784 = vperm.xlu1 %3630, %v780_v2   ;;  %v4366_v11 = vld [vmem:[%s5737_s23] sm:$0xff]   ;;  %vm4792_vm5 = vmpackc.low %vm5706_vm3, %vm5706_vm3 }
  0x26   : > { %s5738_s23 = sld [smem:[#allocation19_spill]]  ;;  %vm5705_vm2 = vcmp.ge.s32.totalorder %v4772_v62, 1  ;;  %vm701_vm7 = vcmp.le.s32.totalorder %v4772_v62, 14  ;;  %vm4823_vm11 = vmpackc.low %vm700_vm8, %vm700_vm8  ;;  %s4505_s27 = smov 2  }
  0x27   : > { %s3497_s26 = sshll.u32 %s678_s24, 5  ;;  %s5687_s24 = smov 16   ;;  %v1203_v48 = vld [vmem:[%s5740_s7] sm:$0xff]  ;;  %v1204_v49 = vld [vmem:[%s5740_s7 + $0x8] sm:$0xff]  ;;  %vm4785_vm4 = vmpackc.low %vm5705_vm2, %vm5705_vm2 }
  0x28   : > { %s681_s1 = scalar_lea.vmem %s5736_s0, %s3497_s26  ;;  %773 = vperm.xlu0 %3629, %v765_v3   ;;  %s5691_s26 = smov 1   ;;  %v1282_v50 = vld [vmem:[%s5741_s9] sm:$0xff]  ;;  %v1283_v51 = vld [vmem:[%s5741_s9 + $0x8] sm:$0xff]  ;;  %vm4811_vm9 = vmpackc.low %vm701_vm7, %vm701_vm7 }
  0x29   : > { %v705_v5 = vld [vmem:[%s681_s1 + $0x8] sm:$0xff]  ;;  %v707_v6 = vld [vmem:[%s681_s1 + $0x18] sm:$0xff]  ;;  %v704_v7 = vld [vmem:[%s681_s1] sm:$0xff]  ;;  %789 = vperm.xlu1 %3630, %v781_v4   ;;  %s5683_s0 = smov 113   ;;  %s5754_s5 = smov 127  }
  0x2a   : > { %v4693_v8 = vpack.c.bf16 %v707_v6, %v705_v5  ;;  %v706_v9 = vld [vmem:[%s681_s1 + $0x10] sm:$0xff]  ;;  %s5693_s1 = smov 112   ;;  %v1298_v52 = vld [vmem:[%s5742_s10] sm:$0xff]  ;;  %v1299_v53 = vld [vmem:[%s5742_s10 + $0x8] sm:$0xff]  ;;  %s5828_s10 = sld [smem:[#allocation18_spill]] }
  0x2b   : > { %v4695_v10 = vpack.c.bf16 %v706_v9, %v704_v7  ;;  %s5836_s9 = smov 17  }
  0x2c   : > { %721 = vmatprep.subr.bf16.mxu1 %v4693_v8  ;;  %3632 = vrot.lane.b32.xlu0 %v4490_v12, %s5685_s30  ;;  %v4367_v45 = vld [vmem:[%s5738_s23 + $0x4] ss:$8 sps:$4 sm:$0xff]  }
  0x2d   : > { %722 = vmatpush1.bf16.msra.mxu1 %v4695_v10  ;;  %861 = vrot.lane.b32.xlu1 %v4492_v13, %s5687_s24 }
  0x30   : > { %3477 = vmatmul.mubr.msk.bf16.vlgmr.msra.gmra.mrb[0].mxu1 %vm5703_vm0, %v4366_v11  ;;  %3637 = vrot.lane.b32.xlu0 %v4490_v12, %s5681_s25 }
  0x31   : > { %3480 = vmatprep.mubr.msk.bf16.mxu1 %vm5703_vm0, %v4367_v45 }
  0xa3   : > { %v769_v14 = vpop.permute.xlu0 %768 }
  0xa4   : > { %v785_v15 = vpop.permute.xlu1 %784 }
  0xa7   : > { %v774_v17 = vpop.permute.xlu0 %773 }
  0xa8   : > { %v790_v22 = vpop.permute.xlu1 %789 }
  0xab   : > { %v3633_v54 = vpop.permute.xlu0 %3632 }
  0xac   : > { %v862_v57 = vpop.permute.xlu1 %861  ;;  %v3635_v3 = vunpack.i.h.bf16 %v3633_v54  ;;  %v3634_v6 = vunpack.i.l.bf16 %v3633_v54 }
  0xaf   : > { %v3638_v58 = vpop.permute.xlu0 %3637 }
 0x103   : > { %v755_v16 = vpop.f32.mrb[0].mxu1 }
 0x104   : > { %v776_v18 = vmul.f32 %v769_v14, %v755_v16  ;;  %v757_v19 = vpop.f32.mrb[1].mxu1 }
 0x105   : > { %v777_v20 = vmul.f32 %v769_v14, %v757_v19  ;;  %v759_v21 = vpop.f32.mrb[2].mxu1 }
 0x106   : > { %v792_v23 = vadd.f32 %v785_v15, %v776_v18  ;;  %v778_v24 = vmul.f32 %v774_v17, %v759_v21  ;;  %v761_v25 = vpop.f32.mrb[3].mxu1 }
 0x107   : > { %v793_v26 = vadd.f32 %v785_v15, %v777_v20  ;;  %v779_v27 = vmul.f32 %v774_v17, %v761_v25 }
 0x108   : > { %v796_v28 = vmul.f32 0.1, %v792_v23  ;;  %v794_v29 = vadd.f32 %v790_v22, %v778_v24 }
 0x109   : > { %v797_v30 = vmul.f32 0.1, %v793_v26  ;;  %v795_v31 = vadd.f32 %v790_v22, %v779_v27  ;;  %v3640_v27 = vunpack.i.h.bf16 %v3638_v58 }
 0x10a   : > { %v800_v32 = vmax.f32 %v792_v23, %v796_v28  ;;  %v798_v33 = vmul.f32 0.1, %v794_v29 }
 0x10b   : > { %v801_v34 = vmax.f32 %v793_v26, %v797_v30  ;;  %v799_v35 = vmul.f32 0.1, %v795_v31 }
 0x10c   : > { %v802_v36 = vmax.f32 %v794_v29, %v798_v33 }
 0x10d   : > { %v803_v37 = vmax.f32 %v795_v31, %v799_v35  ;;  %v3651_v38 = vpack.i.bf16 %v801_v34, %v800_v32  ;;  %v3676_v43 = vpack.i.bf16 %v4490_v12, %v801_v34 }
 0x10e   : > { %v4709_v39 = vpack.c.bf16 %v802_v36, %v800_v32  ;;  %v3686_v40 = vpack.i.bf16 %v802_v36, %v800_v32 }
 0x10f   : > { %3652 = vrot.lane.b32.xlu1 %v3651_v38, %s5691_s26  ;;  %3642 = vrot.lane.b32.xlu0 %v3651_v38, %s5685_s30  ;;  %v3656_v41 = vpack.i.bf16 %v803_v37, %v802_v36  ;;  %v4713_v42 = vpack.c.bf16 %v803_v37, %v801_v34  ;;  %v3681_v44 = vpack.i.bf16 %v4490_v12, %v803_v37 }
 0x113   : > { %3647 = vrot.lane.b32.xlu0 %v3651_v38, %s5681_s25  ;;  %3657 = vrot.lane.b32.xlu1 %v3656_v41, %s5685_s30  ;;  %s5752_s30 = smov 112  }
 0x117   : > { %3662 = vrot.lane.b32.xlu1 %v3656_v41, %s5681_s25  ;;  %865 = vrot.lane.b32.xlu0 %v4713_v42, %s5687_s24  ;;  %s5697_s25 = smov 111  }
 0x11b   : > { %863 = vrot.lane.b32.xlu1 %v4709_v39, %s5687_s24  ;;  %3667 = vrot.lane.b32.xlu0 %v3656_v41, %s5691_s26  ;;  %s5739_s24 = sld [smem:[#allocation20_spill]] }
 0x11f   : > { %3672 = vrot.lane.b32.xlu1 %v4490_v12, %s5691_s26  ;;  %3677 = vrot.lane.b32.xlu0 %v3676_v43, %s5689_s2  ;;  %s4502_s26 = smov 96  }
 0x121   : > { %v1187_v46 = vld [vmem:[%s5739_s24] sm:$0xff]  ;;  %v1188_v47 = vld [vmem:[%s5739_s24 + $0x8] sm:$0xff] }
 0x123   : > { %3682 = vrot.lane.b32.xlu1 %v3681_v44, %s5689_s2  ;;  %3687 = vrot.lane.b32.xlu0 %v3686_v40, %s5689_s2  ;;  %s4503_s2 = smov 80  }
 0x127   : > { %3692 = vrot.lane.b32.xlu1 %v3676_v43, %s5683_s0  ;;  %3697 = vrot.lane.b32.xlu0 %v3681_v44, %s5683_s0 }
 0x12b   : > { %3702 = vrot.lane.b32.xlu1 %v3686_v40, %s5683_s0  ;;  %1058 = vrot.lane.b32.xlu0 %v4709_v39, %s5693_s1  ;;  %s4501_s0 = smov 64  }
 0x12f   : > { %1062 = vrot.lane.b32.xlu1 %v4492_v13, %s5693_s1  ;;  %1060 = vrot.lane.b32.xlu0 %v4713_v42, %s5693_s1  ;;  %s5830_s1 = smov 16  }
 0x133   : > { %3707 = vrot.lane.b32.xlu1 %v3676_v43, %s5697_s25  ;;  %3712 = vrot.lane.b32.xlu0 %v3681_v44, %s5697_s25 }
 0x137   : > { %3717 = vrot.lane.b32.xlu1 %v3686_v40, %s5697_s25  ;;  %1191 = vperm.xlu0 %3629, %v1187_v46   ;;  %v3639_v40 = vunpack.i.l.bf16 %v3638_v58  ;;  %s4506_s25 = smov 126  }
 0x13b   : > { %1196 = vperm.xlu1 %3630, %v1188_v47   ;;  %1207 = vperm.xlu0 %3629, %v1203_v48  }
 0x13f   : > { %1212 = vperm.xlu1 %3630, %v1204_v49   ;;  %1286 = vperm.xlu0 %3629, %v1282_v50  }
 0x143   : > { %1291 = vperm.xlu1 %3630, %v1283_v51   ;;  %1302 = vperm.xlu0 %3629, %v1298_v52  }
 0x147   : > { %1307 = vperm.xlu1 %3630, %v1299_v53  }
 0x181   : > { %v4770_v60 = vpop.permute.xlu1 %3652  ;;  %v3643_v61 = vpop.permute.xlu0 %3642 }
 0x182   : > { %v3645_v1 = vunpack.i.h.bf16 %v3643_v61  ;;  %v3644_v2 = vunpack.i.l.bf16 %v3643_v61  ;;  %v3655_v29 = vunpack.i.h.bf16 %v4770_v60  ;;  %v3654_v30 = vunpack.i.l.bf16 %v4770_v60 }
 0x184   : > { %v833_v11 = vsel %vm5702_vm1, %v3634_v6, %v3644_v2  ;;  %v834_v14 = vsel %vm5702_vm1, %v3644_v2, %v3645_v1  ;;  %v941_v49 = vsel %vm5704_vm10, %v3654_v30, %v3655_v29 }
 0x185   : > { %v3648_v4 = vpop.permute.xlu0 %3647  ;;  %v3658_v5 = vpop.permute.xlu1 %3657 }
 0x186   : > { %v3660_v7 = vunpack.i.h.bf16 %v3658_v5  ;;  %v3659_v9 = vunpack.i.l.bf16 %v3658_v5  ;;  %v3650_v18 = vunpack.i.h.bf16 %v3648_v4  ;;  %v3649_v19 = vunpack.i.l.bf16 %v3648_v4 }
 0x188   : > { %v835_v15 = vsel %vm5702_vm1, %v3635_v3, %v3659_v9  ;;  %v836_v16 = vsel %vm5702_vm1, %v3659_v9, %v3660_v7  ;;  %v900_v31 = vsel %vm5701_vm6, %v3649_v19, %v3650_v18  ;;  %v899_v45 = vsel %vm5701_vm6, %v3639_v40, %v3649_v19 }
 0x189   : > { %v3503_v20 = vpack.c.bf16 %v835_v15, %v833_v11  ;;  %v3663_v21 = vpop.permute.xlu1 %3662  ;;  %v866_v22 = vpop.permute.xlu0 %865  ;;  %v3500_v23 = vpack.c.bf16 %v836_v16, %v834_v14  ;;  %vm5713_vm1 = vcmask 261120  }
 0x18a   : > { %v3665_v25 = vunpack.i.h.bf16 %v3663_v21  ;;  %v3664_v26 = vunpack.i.l.bf16 %v3663_v21 }
 0x18b   : > { %3501 = vmatprep.subr.msk.bf16.mxu1 %vm4785_vm4, %v3500_v23 }
 0x18c   : > { %v902_v28 = vsel %vm5701_vm6, %v3664_v26, %v3665_v25  ;;  %3504 = vmatpush1.bf16.msk.msra.mxu1 %vm4792_vm5, %v3503_v20  ;;  %v901_v41 = vsel %vm5701_vm6, %v3640_v27, %v3664_v26  ;;  %vm5707_vm6 = vcmask 523264  }
 0x18d   : > { %v864_v32 = vpop.permute.xlu1 %863  ;;  %v3668_v33 = vpop.permute.xlu0 %3667  ;;  %v3506_v43 = vpack.c.bf16 %v902_v28, %v900_v31  ;;  %v3509_v50 = vpack.c.bf16 %v901_v41, %v899_v45 }
 0x18e   : > { %v3670_v34 = vunpack.i.h.bf16 %v3668_v33  ;;  %v3669_v35 = vunpack.i.l.bf16 %v3668_v33  ;;  %v869_v36 = vsel %vm5703_vm0, %v864_v32, %v866_v22  ;;  %v868_v37 = vsel %vm5703_vm0, %v862_v57, %v864_v32 }
 0x18f   : > { %1146 = vmatprep.subr.bf16.mxu1 %v869_v36 }
 0x190   : > { %v943_v44 = vsel %vm5704_vm10, %v3669_v35, %v3670_v34  ;;  %1147 = vmatpush1.bf16.msra.mxu1 %v868_v37 }
 0x191   : > { %v3673_v46 = vpop.permute.xlu1 %3672  ;;  %3507 = vmatprep.subr.msk.bf16.mxu1 %vm4811_vm9, %v3506_v43  ;;  %v3678_v47 = vpop.permute.xlu0 %3677  ;;  %v3512_v53 = vpack.c.bf16 %v943_v44, %v941_v49 }
 0x192   : > { %v3675_v51 = vunpack.i.h.bf16 %v3673_v46  ;;  %v3674_v52 = vunpack.i.l.bf16 %v3673_v46  ;;  %v3680_v57 = vunpack.i.h.bf16 %v3678_v47  ;;  %v3679_v58 = vunpack.i.l.bf16 %v3678_v47 }
 0x194   : > { %v940_v54 = vsel %vm5704_vm10, %v3674_v52, %v3654_v30  ;;  %v942_v55 = vsel %vm5704_vm10, %v3675_v51, %v3669_v35  ;;  %3510 = vmatpush1.bf16.msk.msra.mxu1 %vm4823_vm11, %v3509_v50  ;;  %v990_v5 = vsel %vm988_vm12, %v3679_v58, %v3680_v57 }
 0x195   : > { %v3515_v56 = vpack.c.bf16 %v942_v55, %v940_v54  ;;  %v3683_v59 = vpop.permute.xlu1 %3682  ;;  %v3688_v60 = vpop.permute.xlu0 %3687  ;;  %3513 = vmatprep.subr.msk.bf16.mxu1 %vm4785_vm4, %v3512_v53  ;;  %v4369_v53 = vld [vmem:[%s5738_s23] ss:$8 sps:$4 sm:$0xff]  }
 0x196   : > { %v3685_v61 = vunpack.i.h.bf16 %v3683_v59  ;;  %v3684_v1 = vunpack.i.l.bf16 %v3683_v59  ;;  %v3690_v2 = vunpack.i.h.bf16 %v3688_v60  ;;  %v3689_v3 = vunpack.i.l.bf16 %v3688_v60 }
 0x198   : > { %v992_v4 = vsel %vm988_vm12, %v3684_v1, %v3685_v61  ;;  %3516 = vmatpush1.bf16.msk.msra.mxu1 %vm4792_vm5, %v3515_v56  ;;  %v991_v16 = vsel %vm988_vm12, %v3690_v2, %v3684_v1  ;;  %v989_v18 = vsel %vm988_vm12, %v3689_v3, %v3679_v58 }
 0x199   : > { %v3693_v6 = vpop.permute.xlu1 %3692  ;;  %v3698_v7 = vpop.permute.xlu0 %3697  ;;  %1152 = vmatprep.subr.bf16.mxu1 %v4713_v42  ;;  %v3518_v19 = vpack.c.bf16 %v992_v4, %v990_v5  ;;  %v3521_v42 = vpack.c.bf16 %v991_v16, %v989_v18 }
 0x19a   : > { %v3695_v9 = vunpack.i.h.bf16 %v3693_v6  ;;  %v3694_v11 = vunpack.i.l.bf16 %v3693_v6  ;;  %v3700_v14 = vunpack.i.h.bf16 %v3698_v7  ;;  %v3699_v15 = vunpack.i.l.bf16 %v3698_v7 }
 0x19c   : > { %v1031_v20 = vsel %vm5700_vm13, %v3694_v11, %v3695_v9  ;;  %v1033_v21 = vsel %vm5700_vm13, %v3699_v15, %v3700_v14  ;;  %1153 = vmatpush1.bf16.msra.mxu1 %v4709_v39 }
 0x19d   : > { %v3703_v22 = vpop.permute.xlu1 %3702  ;;  %v1059_v23 = vpop.permute.xlu0 %1058  ;;  %3519 = vmatprep.subr.msk.bf16.mxu1 %vm4811_vm9, %v3518_v19  ;;  %v3524_v27 = vpack.c.bf16 %v1033_v21, %v1031_v20 }
 0x19e   : > { %v3705_v25 = vunpack.i.h.bf16 %v3703_v22  ;;  %v3704_v26 = vunpack.i.l.bf16 %v3703_v22  ;;  %v4370_v22 = vld [vmem:[%s5751_s8] sm:$0xff]   ;;  %s4507_s8 = smov [#allocation5]  }
 0x1a0   : > { %v1030_v28 = vsel %vm5700_vm13, %v3704_v26, %v3694_v11  ;;  %v1032_v29 = vsel %vm5700_vm13, %v3705_v25, %v3699_v15  ;;  %3522 = vmatpush1.bf16.msk.msra.mxu1 %vm4823_vm11, %v3521_v42  ;;  %vm5708_vm13 = vcmask 654336  }
 0x1a1   : > { %v3527_v30 = vpack.c.bf16 %v1032_v29, %v1030_v28  ;;  %v1063_v31 = vpop.permute.xlu1 %1062  ;;  %v1061_v32 = vpop.permute.xlu0 %1060  ;;  %3525 = vmatprep.subr.msk.bf16.mxu1 %vm4785_vm4, %v3524_v27 }
 0x1a2   : > { %v1066_v39 = vsel %vm5711_vm14, %v1061_v32, %v1063_v31  ;;  %v1065_v41 = vsel %vm5711_vm14, %v1059_v23, %v1061_v32 }
 0x1a4   : > { %3528 = vmatpush1.bf16.msk.msra.mxu1 %vm4792_vm5, %v3527_v30 }
 0x1a5   : > { %v3708_v33 = vpop.permute.xlu1 %3707  ;;  %v3713_v34 = vpop.permute.xlu0 %3712  ;;  %1158 = vmatprep.subr.bf16.mxu1 %v1066_v39 }
 0x1a6   : > { %v3710_v35 = vunpack.i.h.bf16 %v3708_v33  ;;  %v3709_v36 = vunpack.i.l.bf16 %v3708_v33  ;;  %v3715_v37 = vunpack.i.h.bf16 %v3713_v34  ;;  %v3714_v40 = vunpack.i.l.bf16 %v3713_v34 }
 0x1a8   : > { %v1097_v43 = vsel %vm5699_vm15, %v3709_v36, %v3710_v35  ;;  %v1099_v44 = vsel %vm5699_vm15, %v3714_v40, %v3715_v37  ;;  %1159 = vmatpush1.bf16.msra.mxu1 %v1065_v41 }
 0x1a9   : > { %v3718_v45 = vpop.permute.xlu1 %3717  ;;  %v3530_v46 = vpack.c.bf16 %v1099_v44, %v1097_v43 }
 0x1aa   : > { %v3720_v47 = vunpack.i.h.bf16 %v3718_v45  ;;  %v3719_v49 = vunpack.i.l.bf16 %v3718_v45 }
 0x1ab   : > { %3531 = vmatprep.subr.msk.bf16.mxu1 %vm4811_vm9, %v3530_v46 }
 0x1ac   : > { %v1096_v50 = vsel %vm5699_vm15, %v3719_v49, %v3709_v36  ;;  %v1098_v51 = vsel %vm5699_vm15, %v3720_v47, %v3714_v40  ;;  %v4500_v49 = vmov -3.4028235e+38   ;;  %vm5714_vm15 = vcmask 785408  }
 0x1ad   : > { %v3533_v52 = vpack.c.bf16 %v1098_v51, %v1096_v50 }
 0x1af   : > { %3534 = vmatpush1.bf16.msk.msra.mxu1 %vm4823_vm11, %v3533_v52 }
 0x1b0   : > { %3097 = vmatprep.subr.bf16.mxu1 %v4693_v8 }
 0x1b2   : > { %1177 = vmatmul.mubr.bf16.vlgmr.msra.gmra.mrb[4].mxu1 %v4369_v53 }
 0x1b3   : > { %3098 = vmatpush1.bf16.msra.mxu1 %v4695_v10  ;;  %3129 = vmatprep.mubr.bf16.mxu1 %v4489_v0 }
 0x1b6   : > { %v1192_v54 = vpop.permute.xlu0 %1191 }
 0x1ba   : > { %v1197_v55 = vpop.permute.xlu1 %1196  ;;  %v1208_v59 = vpop.permute.xlu0 %1207 }
 0x1be   : > { %v1213_v4 = vpop.permute.xlu1 %1212  ;;  %v1287_v23 = vpop.permute.xlu0 %1286 }
 0x1c2   : > { %v1292_v42 = vpop.permute.xlu1 %1291  ;;  %v1303_v28 = vpop.permute.xlu0 %1302 }
 0x1c6   : > { %v1308_v33 = vpop.permute.xlu1 %1307 }
 0x285   : > { %v1178_v56 = vpop.f32.mrb[4].mxu1 }
 0x286   : > { %v1199_v57 = vmul.f32 %v1192_v54, %v1178_v56  ;;  %v1180_v58 = vpop.f32.mrb[5].mxu1 }
 0x287   : > { %v1200_v60 = vmul.f32 %v1192_v54, %v1180_v58  ;;  %v1182_v61 = vpop.f32.mrb[6].mxu1 }
 0x288   : > { %v1215_v1 = vadd.f32 %v1208_v59, %v1199_v57  ;;  %v1201_v2 = vmul.f32 %v1197_v55, %v1182_v61  ;;  %v1184_v3 = vpop.f32.mrb[7].mxu1 }
 0x289   : > { %v1216_v5 = vadd.f32 %v1208_v59, %v1200_v60  ;;  %v1202_v6 = vmul.f32 %v1197_v55, %v1184_v3 }
 0x28a   : > { %v1219_v8 = vmul.f32 0.1, %v1215_v1  ;;  %v1217_v7 = vadd.f32 %v1213_v4, %v1201_v2 }
 0x28b   : > { %v1218_v9 = vadd.f32 %v1213_v4, %v1202_v6  ;;  %v1220_v10 = vmul.f32 0.1, %v1216_v5 }
 0x28c   : > { %v1221_v11 = vmul.f32 0.1, %v1217_v7  ;;  %v1223_v15 = vmax.f32 %v1215_v1, %v1219_v8 }
 0x28d   : > { %v1222_v14 = vmul.f32 0.1, %v1218_v9  ;;  %v1224_v18 = vmax.f32 %v1216_v5, %v1220_v10 }
 0x28e   : > { %v1225_v16 = vmax.f32 %v1217_v7, %v1221_v11 }
 0x28f   : > { %v1226_v19 = vmax.f32 %v1218_v9, %v1222_v14 }
 0x290   : > { %v1229_v20 = vpack.c.bf16 %v1225_v16, %v1223_v15 }
 0x291   : > { %v1230_v21 = vpack.c.bf16 %v1226_v19, %v1224_v18 }
 0x293   : > { %1239 = vmatprep.subr.bf16.mxu0 %v1230_v21 }
 0x294   : > { %1240 = vmatpush1.bf16.msra.mxu0 %v1229_v20 }
 0x297   : > { %3482 = vmatmul.mubr.msk.bf16.vlgmr.msra.gmra.mrb[0].mxu0 %vm5703_vm0, %v4370_v22  ;;  %vm1627_vm0 = vcmask 15360  }
 0x298   : > { %2621 = vmatprep.mubr.bf16.mxu0 %v4489_v0 }
 0x36a   : > { %v1273_v25 = vpop.f32.mrb[0].mxu0 }
 0x36b   : > { %v1294_v26 = vmul.f32 %v1287_v23, %v1273_v25  ;;  %v1275_v27 = vpop.f32.mrb[1].mxu0 }
 0x36c   : > { %v1295_v29 = vmul.f32 %v1287_v23, %v1275_v27  ;;  %v1277_v30 = vpop.f32.mrb[2].mxu0 }
 0x36d   : > { %v1310_v31 = vadd.f32 %v1303_v28, %v1294_v26  ;;  %v1296_v32 = vmul.f32 %v1292_v42, %v1277_v30  ;;  %v1279_v39 = vpop.f32.mrb[3].mxu0 }
 0x36e   : > { %v1311_v34 = vadd.f32 %v1303_v28, %v1295_v29  ;;  %v1297_v35 = vmul.f32 %v1292_v42, %v1279_v39 }
 0x36f   : > { %v1314_v36 = vmul.f32 0.1, %v1310_v31  ;;  %v1312_v37 = vadd.f32 %v1308_v33, %v1296_v32 }
 0x370   : > { %v1315_v40 = vmul.f32 0.1, %v1311_v34  ;;  %v1313_v41 = vadd.f32 %v1308_v33, %v1297_v35 }
 0x371   : > { %v1318_v43 = vmax.f32 %v1310_v31, %v1314_v36  ;;  %v1316_v44 = vmul.f32 0.1, %v1312_v37 }
 0x372   : > { %v4875_v45 = vmax.f32 %v1311_v34, %v1315_v40  ;;  %v1317_v46 = vmul.f32 0.1, %v1313_v41 }
 0x373   : > { %v4877_v47 = vmax.f32 %v1312_v37, %v1316_v44  ;;  %v3721_v50 = vpack.i.bf16 %v1318_v43, %v4500_v49 }
 0x374   : > { %v4880_v51 = vmax.f32 %v1313_v41, %v1317_v46  ;;  %v3726_v52 = vpack.i.bf16 %v4500_v49, %v4875_v45  ;;  %v3741_v54 = vpack.i.bf16 %v4875_v45, %v1318_v43 }
 0x375   : > { %3722 = vrot.lane.b32.xlu0 %v3721_v50, %s5752_s30  ;;  %v2573_v55 = vpack.c.bf16 %v4877_v47, %v1318_v43  ;;  %v3746_v56 = vpack.i.bf16 %v4877_v47, %v4500_v49 }
 0x376   : > { %3727 = vrot.lane.b32.xlu1 %v3726_v52, %s5752_s30  ;;  %v2574_v53 = vpack.c.bf16 %v4880_v51, %v4875_v45  ;;  %v3751_v57 = vpack.i.bf16 %v4880_v51, %v4877_v47  ;;  %v3761_v58 = vpack.i.bf16 %v4500_v49, %v4880_v51 }
 0x378   : > { %2589 = vmatprep.subr.bf16.mxu0 %v2574_v53 }
 0x379   : > { %3742 = vrot.lane.b32.xlu0 %v3741_v54, %s4501_s0  ;;  %2590 = vmatpush1.bf16.msra.mxu0 %v2573_v55 }
 0x37a   : > { %3732 = vrot.lane.b32.xlu1 %v3741_v54, %s4502_s26 }
 0x37d   : > { %3747 = vrot.lane.b32.xlu0 %v3746_v56, %s4503_s2 }
 0x37e   : > { %3737 = vrot.lane.b32.xlu1 %v3741_v54, %s4503_s2 }
 0x381   : > { %3752 = vrot.lane.b32.xlu0 %v3751_v57, %s5752_s30 }
 0x382   : > { %3762 = vrot.lane.b32.xlu1 %v3761_v58, %s4503_s2 }
 0x385   : > { %3757 = vrot.lane.b32.xlu0 %v3751_v57, %s4502_s26 }
 0x386   : > { %3767 = vrot.lane.b32.xlu1 %v3746_v56, %s4501_s0 }
 0x389   : > { %3772 = vrot.lane.b32.xlu0 %v3761_v58, %s4501_s0 }
 0x3e7   : > { %v3723_v59 = vpop.permute.xlu0 %3722 }
 0x3e8   : > { %v3725_v60 = vunpack.i.h.bf16 %v3723_v59  ;;  %v3724_v61 = vunpack.i.l.bf16 %v3723_v59  ;;  %v3728_v1 = vpop.permute.xlu1 %3727 }
 0x3e9   : > { %v3729_v2 = vunpack.i.l.bf16 %v3728_v1  ;;  %v3730_v27 = vunpack.i.h.bf16 %v3728_v1 }
 0x3ea   : > { %v1351_v4 = vsel %vm5711_vm14, %v3724_v61, %v3725_v60 }
 0x3eb   : > { %v3743_v3 = vpop.permute.xlu0 %3742  ;;  %v1352_v6 = vsel %vm5711_vm14, %v3725_v60, %v3729_v2  ;;  %v1361_v9 = vmax.f32 %v1351_v4, -3.4028235e+38  ;;  %v1363_v32 = vmax.f32 %v4875_v45, %v3729_v2 }
 0x3ec   : > { %v3733_v5 = vpop.permute.xlu1 %3732  ;;  %v1362_v14 = vmax.f32 %v1318_v43, %v1352_v6  ;;  %v3745_v15 = vunpack.i.h.bf16 %v3743_v3  ;;  %v3744_v16 = vunpack.i.l.bf16 %v3743_v3 }
 0x3ed   : > { %v3735_v8 = vunpack.i.h.bf16 %v3733_v5  ;;  %v3734_v7 = vunpack.i.l.bf16 %v3733_v5 }
 0x3ee   : > { %v1444_v33 = vsel %vm5707_vm6, %v3744_v16, %v3745_v15 }
 0x3ef   : > { %v1376_v10 = vsel %vm5714_vm15, %v3734_v7, %v3735_v8  ;;  %v3748_v11 = vpop.permute.xlu0 %3747  ;;  %v1384_v19 = vmax.f32 %v1361_v9, %v3734_v7  ;;  %v1386_v41 = vmax.f32 %v1363_v32, %v3735_v8 }
 0x3f0   : > { %v3738_v18 = vpop.permute.xlu1 %3737  ;;  %v3749_v20 = vunpack.i.l.bf16 %v3748_v11  ;;  %v1385_v23 = vmax.f32 %v1362_v14, %v1376_v10  ;;  %v3750_v43 = vunpack.i.h.bf16 %v3748_v11 }
 0x3f1   : > { %v3740_v21 = vunpack.i.h.bf16 %v3738_v18  ;;  %v3739_v22 = vunpack.i.l.bf16 %v3738_v18 }
 0x3f3   : > { %v1415_v42 = vsel %vm5708_vm13, %v3739_v22, %v3740_v21  ;;  %v1425_v25 = vmax.f32 %v1384_v19, %v3739_v22  ;;  %v3753_v26 = vpop.permute.xlu0 %3752  ;;  %v1416_v39 = vsel %vm5708_vm13, %v3740_v21, %v3749_v20 }
 0x3f4   : > { %v3755_v28 = vunpack.i.h.bf16 %v3753_v26  ;;  %v3754_v29 = vunpack.i.l.bf16 %v3753_v26  ;;  %v3763_v30 = vpop.permute.xlu1 %3762  ;;  %v1426_v31 = vmax.f32 %v1385_v23, %v1415_v42  ;;  %v1427_v58 = vmax.f32 %v1386_v41, %v1416_v39 }
 0x3f5   : > { %v4912_v34 = vmax.f32 %v1425_v25, %v3744_v16  ;;  %v3764_v36 = vunpack.i.l.bf16 %v3763_v30  ;;  %v3765_v44 = vunpack.i.h.bf16 %v3763_v30 }
 0x3f6   : > { %v1354_v35 = vsel %vm5711_vm14, %v3754_v29, %v3755_v28  ;;  %v1353_v37 = vsel %vm5711_vm14, %v3730_v27, %v3754_v29  ;;  %v4916_v40 = vmax.f32 %v1426_v31, %v1444_v33  ;;  %v1366_v45 = vmax.f32 %v4880_v51, %v3755_v28 }
 0x3f7   : > { %v3758_v46 = vpop.permute.xlu0 %3757  ;;  %v1364_v50 = vmax.f32 %v1353_v37, -3.4028235e+38  ;;  %v1365_v56 = vmax.f32 %v4877_v47, %v1354_v35  ;;  %v1417_v59 = vsel %vm5708_vm13, %v3750_v43, %v3764_v36  ;;  %v1418_v51 = vsel %vm5708_vm13, %v3764_v36, %v3765_v44 }
 0x3f8   : > { %v3760_v52 = vunpack.i.h.bf16 %v3758_v46  ;;  %v3759_v53 = vunpack.i.l.bf16 %v3758_v46  ;;  %v3768_v54 = vpop.permute.xlu1 %3767  ;;  %v3776_v55 = vpack.i.bf16 %v4916_v40, %v4912_v34  ;;  %vm5709_vm13 = vcmp.le.s32.totalorder %v4772_v62, 13 }
 0x3f9   : > { %v3769_v57 = vunpack.i.l.bf16 %v3768_v54  ;;  %v3770_v3 = vunpack.i.h.bf16 %v3768_v54 }
 0x3fa   : > { %v1377_v60 = vsel %vm5714_vm15, %v3759_v53, %v3760_v52  ;;  %v1387_v61 = vmax.f32 %v1364_v50, %v3759_v53  ;;  %v1389_v1 = vmax.f32 %v1366_v45, %v3760_v52  ;;  %3777 = vrot.lane.b32.xlu1 %v3776_v55, %s4504_s3 }
 0x3fb   : > { %v1388_v2 = vmax.f32 %v1365_v56, %v1377_v60  ;;  %v3773_v4 = vpop.permute.xlu0 %3772  ;;  %v1445_v5 = vsel %vm5707_vm6, %v3745_v15, %v3769_v57 }
 0x3fc   : > { %v1430_v6 = vmax.f32 %v1389_v1, %v1418_v51  ;;  %v1428_v47 = vmax.f32 %v1387_v61, %v3750_v43  ;;  %v3775_v8 = vunpack.i.h.bf16 %v3773_v4  ;;  %v3774_v7 = vunpack.i.l.bf16 %v3773_v4 }
 0x3fd   : > { %v1429_v9 = vmax.f32 %v1388_v2, %v1417_v59  ;;  %v4929_v11 = vmax.f32 %v1427_v58, %v1445_v5 }
 0x3fe   : > { %v4927_v10 = vmax.f32 %v1428_v47, %v3770_v3  ;;  %v1446_v14 = vsel %vm5707_vm6, %v3770_v3, %v3774_v7  ;;  %v1447_v16 = vsel %vm5707_vm6, %v3774_v7, %v3775_v8  ;;  %vm5710_vm6 = vcmp.le.s32.totalorder %v4774_v63, 13 }
 0x3ff   : > { %v4933_v18 = vmax.f32 %v1429_v9, %v1446_v14  ;;  %v4935_v19 = vmax.f32 %v1430_v6, %v1447_v16 }
 0x400   : > { %v3781_v15 = vpack.i.bf16 %v4927_v10, %v4929_v11 }
 0x401   : > { %v3786_v20 = vpack.i.bf16 %v4935_v19, %v4933_v18 }
 0x402   : > { %3782 = vrot.lane.b32.xlu0 %v3781_v15, %s4504_s3 }
 0x403   : > { %3787 = vrot.lane.b32.xlu1 %v3786_v20, %s4504_s3 }
 0x46c   : > { %v3778_v21 = vpop.permute.xlu1 %3777 }
 0x46d   : > { %v3780_v22 = vunpack.i.h.bf16 %v3778_v21  ;;  %v3779_v23 = vunpack.i.l.bf16 %v3778_v21 }
 0x46f   : > { %v1479_v42 = vsel %vm5713_vm1, %v3779_v23, %v3780_v22 }
 0x470   : > { %v3791_v25 = vpack.i.bf16 %v1479_v42, %v4500_v49 }
 0x472   : > { %3792 = vrot.lane.b32.xlu0 %v3791_v25, %s5753_s29 }
 0x474   : > { %v3783_v26 = vpop.permute.xlu0 %3782 }
 0x475   : > { %v3785_v27 = vunpack.i.h.bf16 %v3783_v26  ;;  %v3784_v28 = vunpack.i.l.bf16 %v3783_v26  ;;  %v3788_v29 = vpop.permute.xlu1 %3787 }
 0x476   : > { %v3790_v30 = vunpack.i.h.bf16 %v3788_v29  ;;  %v3789_v31 = vunpack.i.l.bf16 %v3788_v29  ;;  %3807 = vrot.lane.b32.xlu0 %v3791_v25, %s4505_s27 }
 0x477   : > { %v1480_v32 = vsel %vm5713_vm1, %v3780_v22, %v3784_v28 }
 0x478   : > { %v3796_v39 = vpack.i.bf16 %v4500_v49, %v1480_v32  ;;  %v1481_v33 = vsel %vm5713_vm1, %v3785_v27, %v3789_v31  ;;  %v1482_v35 = vsel %vm5713_vm1, %v3789_v31, %v3790_v30  ;;  %v3801_v37 = vpack.i.bf16 %v1480_v32, %v1479_v42 }
 0x479   : > { %v3821_v36 = vpack.i.bf16 %v1482_v35, %v1481_v33  ;;  %v3826_v41 = vpack.i.bf16 %v1481_v33, %v4500_v49  ;;  %v3831_v43 = vpack.i.bf16 %v4500_v49, %v1482_v35 }
 0x47a   : > { %3797 = vrot.lane.b32.xlu1 %v3796_v39, %s5753_s29 }
 0x47b   : > { %3822 = vrot.lane.b32.xlu0 %v3821_v36, %s5753_s29 }
 0x47e   : > { %3802 = vrot.lane.b32.xlu1 %v3801_v37, %s5754_s5 }
 0x47f   : > { %3827 = vrot.lane.b32.xlu0 %v3826_v41, %s5754_s5 }
 0x482   : > { %3812 = vrot.lane.b32.xlu1 %v3796_v39, %s4505_s27 }
 0x483   : > { %3837 = vrot.lane.b32.xlu0 %v3821_v36, %s4505_s27 }
 0x486   : > { %3817 = vrot.lane.b32.xlu1 %v3801_v37, %s4506_s25 }
 0x487   : > { %3842 = vrot.lane.b32.xlu0 %v3826_v41, %s4506_s25 }
 0x48a   : > { %3832 = vrot.lane.b32.xlu1 %v3831_v43, %s5754_s5 }
 0x48e   : > { %3847 = vrot.lane.b32.xlu1 %v3831_v43, %s4506_s25 }
 0x4e4   : > { %v3793_v44 = vpop.permute.xlu0 %3792 }
 0x4e5   : > { %v3795_v46 = vunpack.i.h.bf16 %v3793_v44  ;;  %v3794_v50 = vunpack.i.l.bf16 %v3793_v44 }
 0x4e7   : > { %v1515_v53 = vsel %vm5704_vm10, %v3794_v50, %v3795_v46 }
 0x4e8   : > { %v3808_v45 = vpop.permute.xlu0 %3807  ;;  %v1523_v61 = vsel %vm5706_vm3, %v1515_v53, -3.4028235e+38 }
 0x4e9   : > { %v3810_v59 = vunpack.i.h.bf16 %v3808_v45  ;;  %v3809_v1 = vunpack.i.l.bf16 %v3808_v45 }
 0x4eb   : > { %v1628_v26 = vsel %vm1627_vm0, %v3809_v1, %v3810_v59 }
 0x4ec   : > { %v3798_v52 = vpop.permute.xlu1 %3797 }
 0x4ed   : > { %v3800_v54 = vunpack.i.h.bf16 %v3798_v52  ;;  %v3799_v55 = vunpack.i.l.bf16 %v3798_v52  ;;  %v3823_v56 = vpop.permute.xlu0 %3822 }
 0x4ee   : > { %v3825_v57 = vunpack.i.h.bf16 %v3823_v56  ;;  %v3824_v58 = vunpack.i.l.bf16 %v3823_v56 }
 0x4ef   : > { %v1516_v60 = vsel %vm5704_vm10, %v3795_v46, %v3799_v55 }
 0x4f0   : > { %v3803_v51 = vpop.permute.xlu1 %3802  ;;  %v1524_v2 = vsel %vm5705_vm2, %v1516_v60, -3.4028235e+38  ;;  %v1517_v3 = vsel %vm5704_vm10, %v3800_v54, %v3824_v58  ;;  %v1518_v4 = vsel %vm5704_vm10, %v3824_v58, %v3825_v57  ;;  %vm698_vm10 = vcmp.ge.s32.totalorder %v4774_v63, 2 }
 0x4f1   : > { %v3805_v5 = vunpack.i.h.bf16 %v3803_v51  ;;  %v3804_v6 = vunpack.i.l.bf16 %v3803_v51  ;;  %v3828_v47 = vpop.permute.xlu0 %3827  ;;  %v3851_v8 = vpack.i.bf16 %v1524_v2, %v1523_v61  ;;  %v1525_v7 = vsel %vm5706_vm3, %v1517_v3, -3.4028235e+38 }
 0x4f2   : > { %v3829_v9 = vunpack.i.l.bf16 %v3828_v47  ;;  %v1526_v14 = vsel %vm5705_vm2, %v1518_v4, -3.4028235e+38  ;;  %vm699_vm2 = vcmp.ge.s32.totalorder %v4772_v62, 2  ;;  %v1636_v30 = vsel %vm698_vm10, %v1628_v26, -3.4028235e+38 }
 0x4f3   : > { %3852 = vrot.lane.b32.xlu0 %v3851_v8, %s4502_s26  ;;  %v3871_v16 = vpack.i.bf16 %v1526_v14, %v1525_v7  ;;  %v1577_v15 = vsel %vm988_vm12, %v3804_v6, %v3805_v5  ;;  %vm5712_vm3 = vcmask 1031168   ;;  %v3830_v52 = vunpack.i.h.bf16 %v3828_v47 }
 0x4f4   : > { %v3813_v20 = vpop.permute.xlu1 %3812  ;;  %v1578_v21 = vsel %vm988_vm12, %v3805_v5, %v3829_v9  ;;  %v1585_v22 = vsel %vm700_vm8, %v1577_v15, -3.4028235e+38 }
 0x4f5   : > { %v3814_v23 = vunpack.i.l.bf16 %v3813_v20  ;;  %3872 = vrot.lane.b32.xlu1 %v3871_v16, %s4502_s26  ;;  %v3838_v42 = vpop.permute.xlu0 %3837  ;;  %v1586_v25 = vsel %vm701_vm7, %v1578_v21, -3.4028235e+38  ;;  %v3815_v37 = vunpack.i.h.bf16 %v3813_v20 }
 0x4f6   : > { %v3856_v27 = vpack.i.bf16 %v1586_v25, %v1585_v22  ;;  %v3840_v41 = vunpack.i.h.bf16 %v3838_v42  ;;  %v3839_v43 = vunpack.i.l.bf16 %v3838_v42 }
 0x4f7   : > { %v1629_v28 = vsel %vm1627_vm0, %v3810_v59, %v3814_v23 }
 0x4f8   : > { %v3818_v29 = vpop.permute.xlu1 %3817  ;;  %3857 = vrot.lane.b32.xlu0 %v3856_v27, %s4502_s26  ;;  %v1637_v31 = vsel %vm699_vm2, %v1629_v28, -3.4028235e+38  ;;  %v1630_v59 = vsel %vm1627_vm0, %v3815_v37, %v3839_v43  ;;  %v1631_v60 = vsel %vm1627_vm0, %v3839_v43, %v3840_v41 }
 0x4f9   : > { %v3820_v32 = vunpack.i.h.bf16 %v3818_v29  ;;  %v3819_v39 = vunpack.i.l.bf16 %v3818_v29  ;;  %v3843_v33 = vpop.permute.xlu0 %3842  ;;  %v3861_v35 = vpack.i.bf16 %v1637_v31, %v1636_v30  ;;  %v1638_v6 = vsel %vm698_vm10, %v1630_v59, -3.4028235e+38 }
 0x4fa   : > { %v3844_v36 = vunpack.i.l.bf16 %v3843_v33  ;;  %v3845_v2 = vunpack.i.h.bf16 %v3843_v33  ;;  %v1639_v47 = vsel %vm699_vm2, %v1631_v60, -3.4028235e+38 }
 0x4fb   : > { %v1679_v44 = vsel %vm5712_vm3, %v3819_v39, %v3820_v32  ;;  %v3881_v9 = vpack.i.bf16 %v1639_v47, %v1638_v6 }
 0x4fc   : > { %v3833_v46 = vpop.permute.xlu1 %3832  ;;  %3862 = vrot.lane.b32.xlu0 %v3861_v35, %s4502_s26  ;;  %v1680_v50 = vsel %vm5712_vm3, %v3820_v32, %v3844_v36  ;;  %v1687_v45 = vsel %vm5710_vm6, %v1679_v44, -3.4028235e+38 }
 0x4fd   : > { %v3835_v53 = vunpack.i.h.bf16 %v3833_v46  ;;  %v3834_v54 = vunpack.i.l.bf16 %v3833_v46  ;;  %v1688_v55 = vsel %vm5709_vm13, %v1680_v50, -3.4028235e+38 }
 0x4fe   : > { %v3866_v56 = vpack.i.bf16 %v1688_v55, %v1687_v45 }
 0x4ff   : > { %v1579_v57 = vsel %vm988_vm12, %v3830_v52, %v3834_v54  ;;  %v1580_v58 = vsel %vm988_vm12, %v3834_v54, %v3835_v53 }
 0x500   : > { %v3848_v61 = vpop.permute.xlu1 %3847  ;;  %3867 = vrot.lane.b32.xlu0 %v3866_v56, %s4502_s26  ;;  %v1587_v1 = vsel %vm700_vm8, %v1579_v57, -3.4028235e+38  ;;  %v1588_v51 = vsel %vm701_vm7, %v1580_v58, -3.4028235e+38 }
 0x501   : > { %v3850_v3 = vunpack.i.h.bf16 %v3848_v61  ;;  %v3849_v4 = vunpack.i.l.bf16 %v3848_v61  ;;  %v3876_v5 = vpack.i.bf16 %v1588_v51, %v1587_v1 }
 0x503   : > { %3877 = vrot.lane.b32.xlu1 %v3876_v5, %s4502_s26  ;;  %v1681_v8 = vsel %vm5712_vm3, %v3845_v2, %v3849_v4  ;;  %v1682_v7 = vsel %vm5712_vm3, %v3849_v4, %v3850_v3 }
 0x504   : > { %v1689_v14 = vsel %vm5710_vm6, %v1681_v8, -3.4028235e+38  ;;  %v1690_v16 = vsel %vm5709_vm13, %v1682_v7, -3.4028235e+38  ;;  %vm5755_vm13 = vcmask 654336   ;;  %vm5756_vm6 = vcmask 523264  }
 0x505   : > { %v3886_v15 = vpack.i.bf16 %v1690_v16, %v1689_v14  ;;  %vm5758_vm3 = vmmov %vm5755_vm13 }
 0x507   : > { %3882 = vrot.lane.b32.xlu1 %v3881_v9, %s4502_s26 }
 0x50b   : > { %3887 = vrot.lane.b32.xlu1 %v3886_v15, %s4502_s26 }
 0x565   : > { %v3853_v20 = vpop.permute.xlu0 %3852 }
 0x566   : > { %v3855_v21 = vunpack.i.h.bf16 %v3853_v20  ;;  %v3854_v22 = vunpack.i.l.bf16 %v3853_v20 }
 0x567   : > { %v3873_v39 = vpop.permute.xlu1 %3872 }
 0x568   : > { %v1539_v26 = vsel %vm5714_vm15, %v3854_v22, %v3855_v21  ;;  %v1547_v28 = vmax.f32 %v4912_v34, %v3854_v22  ;;  %v3875_v46 = vunpack.i.h.bf16 %v3873_v39  ;;  %v3874_v50 = vunpack.i.l.bf16 %v3873_v39 }
 0x569   : > { %v1548_v32 = vmax.f32 %v4916_v40, %v1539_v26  ;;  %v1549_v58 = vmax.f32 %v4929_v11, %v3855_v21 }
 0x56a   : > { %v3858_v23 = vpop.permute.xlu0 %3857  ;;  %v1540_v40 = vsel %vm5714_vm15, %v3874_v50, %v3875_v46  ;;  %v1552_v59 = vmax.f32 %v4935_v19, %v3875_v46  ;;  %v1550_v61 = vmax.f32 %v4927_v10, %v3874_v50 }
 0x56b   : > { %v3860_v42 = vunpack.i.h.bf16 %v3858_v23  ;;  %v3859_v25 = vunpack.i.l.bf16 %v3858_v23  ;;  %v1551_v3 = vmax.f32 %v4933_v18, %v1540_v40 }
 0x56d   : > { %v1601_v29 = vsel %vm5714_vm15, %v3859_v25, %v3860_v42  ;;  %v1609_v33 = vmax.f32 %v1547_v28, %v3859_v25  ;;  %v1611_v4 = vmax.f32 %v1549_v58, %v3860_v42 }
 0x56e   : > { %v3863_v27 = vpop.permute.xlu0 %3862  ;;  %v1610_v36 = vmax.f32 %v1548_v32, %v1601_v29 }
 0x56f   : > { %v3865_v30 = vunpack.i.h.bf16 %v3863_v27  ;;  %v3864_v31 = vunpack.i.l.bf16 %v3863_v27 }
 0x571   : > { %v1652_v35 = vsel %vm5714_vm15, %v3864_v31, %v3865_v30  ;;  %v1660_v41 = vmax.f32 %v1609_v33, %v3864_v31  ;;  %v1662_v8 = vmax.f32 %v1611_v4, %v3865_v30 }
 0x572   : > { %v3868_v37 = vpop.permute.xlu0 %3867  ;;  %v1661_v45 = vmax.f32 %v1610_v36, %v1652_v35 }
 0x573   : > { %v3870_v43 = vunpack.i.h.bf16 %v3868_v37  ;;  %v3869_v44 = vunpack.i.l.bf16 %v3868_v37 }
 0x575   : > { %v1711_v52 = vmax.f32 %v1660_v41, %v3869_v44  ;;  %v3878_v34 = vpop.permute.xlu1 %3877  ;;  %v1703_v53 = vsel %vm5714_vm15, %v3869_v44, %v3870_v43  ;;  %v1713_v15 = vmax.f32 %v1662_v8, %v3870_v43 }
 0x576   : > { %v3880_v54 = vunpack.i.h.bf16 %v3878_v34  ;;  %v3879_v55 = vunpack.i.l.bf16 %v3878_v34  ;;  %v1712_v56 = vmax.f32 %v1661_v45, %v1703_v53 }
 0x578   : > { %v3891_v57 = vpack.i.bf16 %v1712_v56, %v1711_v52  ;;  %v1602_v1 = vsel %vm5714_vm15, %v3879_v55, %v3880_v54  ;;  %v1612_v5 = vmax.f32 %v1550_v61, %v3879_v55  ;;  %v1614_v6 = vmax.f32 %v1552_v59, %v3880_v54 }
 0x579   : > { %v3883_v60 = vpop.permute.xlu1 %3882  ;;  %v1613_v11 = vmax.f32 %v1551_v3, %v1602_v1 }
 0x57a   : > { %v3885_v51 = vunpack.i.h.bf16 %v3883_v60  ;;  %v3884_v2 = vunpack.i.l.bf16 %v3883_v60  ;;  %3892 = vrot.lane.b32.xlu0 %v3891_v57, %s4504_s3 }
 0x57c   : > { %v1653_v47 = vsel %vm5714_vm15, %v3884_v2, %v3885_v51  ;;  %v1663_v19 = vmax.f32 %v1612_v5, %v3884_v2  ;;  %v1665_v9 = vmax.f32 %v1614_v6, %v3885_v51 }
 0x57d   : > { %v3888_v7 = vpop.permute.xlu1 %3887  ;;  %v1664_v16 = vmax.f32 %v1613_v11, %v1653_v47 }
 0x57e   : > { %v3890_v14 = vunpack.i.h.bf16 %v3888_v7  ;;  %v3889_v10 = vunpack.i.l.bf16 %v3888_v7 }
 0x580   : > { %v1714_v20 = vmax.f32 %v1663_v19, %v3889_v10  ;;  %v1716_v21 = vmax.f32 %v1665_v9, %v3890_v14  ;;  %v1704_v22 = vsel %vm5714_vm15, %v3889_v10, %v3890_v14 }
 0x581   : > { %v1715_v23 = vmax.f32 %v1664_v16, %v1704_v22 }
 0x582   : > { %v3896_v18 = vpack.i.bf16 %v1714_v20, %v1713_v15 }
 0x583   : > { %v3901_v42 = vpack.i.bf16 %v1716_v21, %v1715_v23 }
 0x584   : > { %3897 = vrot.lane.b32.xlu1 %v3896_v18, %s4504_s3 }
 0x585   : > { %3902 = vrot.lane.b32.xlu0 %v3901_v42, %s4504_s3 }
 0x5ec   : > { %v3893_v25 = vpop.permute.xlu0 %3892 }
 0x5ed   : > { %v3895_v26 = vunpack.i.h.bf16 %v3893_v25  ;;  %v3894_v27 = vunpack.i.l.bf16 %v3893_v25 }
 0x5ef   : > { %v1735_v28 = vsel %vm5713_vm1, %v3894_v27, %v3895_v26 }
 0x5f0   : > { %v3906_v29 = vpack.i.bf16 %v1735_v28, %v4500_v49 }
 0x5f2   : > { %3907 = vrot.lane.b32.xlu1 %v3906_v29, %s5752_s30 }
 0x5f6   : > { %v3898_v30 = vpop.permute.xlu1 %3897 }
 0x5f7   : > { %v3900_v31 = vunpack.i.h.bf16 %v3898_v30  ;;  %v3899_v32 = vunpack.i.l.bf16 %v3898_v30  ;;  %v3903_v39 = vpop.permute.xlu0 %3902 }
 0x5f8   : > { %v3905_v33 = vunpack.i.h.bf16 %v3903_v39  ;;  %v3904_v35 = vunpack.i.l.bf16 %v3903_v39 }
 0x5f9   : > { %v1736_v36 = vsel %vm5713_vm1, %v3895_v26, %v3899_v32 }
 0x5fa   : > { %v5045_v37 = vsel %vm5713_vm1, %v3900_v31, %v3904_v35  ;;  %v1738_v41 = vsel %vm5713_vm1, %v3904_v35, %v3905_v33  ;;  %v3911_v43 = vpack.i.bf16 %v4500_v49, %v1736_v36  ;;  %v3926_v44 = vpack.i.bf16 %v1736_v36, %v1735_v28 }
 0x5fb   : > { %v2576_v46 = vpack.c.bf16 %v1738_v41, %v1736_v36  ;;  %v2575_v50 = vpack.c.bf16 %v5045_v37, %v1735_v28  ;;  %v3931_v45 = vpack.i.bf16 %v1738_v41, %v5045_v37  ;;  %v3946_v52 = vpack.i.bf16 %v4500_v49, %v1738_v41 }
 0x5fc   : > { %3912 = vrot.lane.b32.xlu0 %v3911_v43, %s5752_s30  ;;  %3927 = vrot.lane.b32.xlu1 %v3926_v44, %s4501_s0  ;;  %v3941_v34 = vpack.i.bf16 %v5045_v37, %v4500_v49 }
 0x5fd   : > { %2591 = vmatprep.subr.bf16.mxu0 %v2576_v46 }
 0x5fe   : > { %2592 = vmatpush1.bf16.msra.mxu0 %v2575_v50 }
 0x600   : > { %3917 = vrot.lane.b32.xlu0 %v3926_v44, %s4502_s26  ;;  %3932 = vrot.lane.b32.xlu1 %v3931_v45, %s5752_s30 }
 0x604   : > { %3922 = vrot.lane.b32.xlu0 %v3926_v44, %s4503_s2  ;;  %3937 = vrot.lane.b32.xlu1 %v3931_v45, %s4502_s26 }
 0x608   : > { %3947 = vrot.lane.b32.xlu0 %v3946_v52, %s4503_s2  ;;  %3942 = vrot.lane.b32.xlu1 %v3941_v34, %s4503_s2 }
 0x60c   : > { %3952 = vrot.lane.b32.xlu0 %v3941_v34, %s4501_s0  ;;  %3957 = vrot.lane.b32.xlu1 %v3946_v52, %s4501_s0 }
 0x664   : > { %v3908_v53 = vpop.permute.xlu1 %3907 }
 0x665   : > { %v3910_v54 = vunpack.i.h.bf16 %v3908_v53  ;;  %v3909_v55 = vunpack.i.l.bf16 %v3908_v53 }
 0x667   : > { %v1771_v58 = vsel %vm5711_vm14, %v3909_v55, %v3910_v54 }
 0x668   : > { %v1781_v5 = vmax.f32 %v1771_v58, -3.4028235e+38 }
 0x66e   : > { %v3913_v56 = vpop.permute.xlu0 %3912  ;;  %v5064_v40 = vpop.permute.xlu1 %3927 }
 0x66f   : > { %v3914_v57 = vunpack.i.l.bf16 %v3913_v56  ;;  %v3915_v4 = vunpack.i.h.bf16 %v3913_v56  ;;  %v3930_v6 = vunpack.i.h.bf16 %v5064_v40  ;;  %v3929_v11 = vunpack.i.l.bf16 %v5064_v40 }
 0x671   : > { %v1772_v59 = vsel %vm5711_vm14, %v3910_v54, %v3914_v57  ;;  %v1783_v18 = vmax.f32 %v1736_v36, %v3914_v57  ;;  %v1861_v31 = vsel %vm5756_vm6, %v3929_v11, %v3930_v6 }
 0x672   : > { %v3918_v60 = vpop.permute.xlu0 %3917  ;;  %v3933_v61 = vpop.permute.xlu1 %3932  ;;  %v1782_v8 = vmax.f32 %v1735_v28, %v1772_v59 }
 0x673   : > { %v3920_v1 = vunpack.i.h.bf16 %v3918_v60  ;;  %v3919_v51 = vunpack.i.l.bf16 %v3918_v60  ;;  %v3935_v2 = vunpack.i.h.bf16 %v3933_v61  ;;  %v3934_v3 = vunpack.i.l.bf16 %v3933_v61 }
 0x675   : > { %v1795_v47 = vsel %vm5714_vm15, %v3919_v51, %v3920_v1  ;;  %v1803_v7 = vmax.f32 %v1781_v5, %v3919_v51  ;;  %v1773_v14 = vsel %vm5711_vm14, %v3915_v4, %v3934_v3  ;;  %v1774_v10 = vsel %vm5711_vm14, %v3934_v3, %v3935_v2  ;;  %vm5757_vm14 = vmmov %vm5755_vm13 }
 0x676   : > { %v3923_v19 = vpop.permute.xlu0 %3922  ;;  %v3938_v9 = vpop.permute.xlu1 %3937  ;;  %v1804_v21 = vmax.f32 %v1782_v8, %v1795_v47  ;;  %v1784_v23 = vmax.f32 %v1773_v14, -3.4028235e+38  ;;  %v1786_v26 = vmax.f32 %v1738_v41, %v3935_v2  ;;  %v1785_v27 = vmax.f32 %v5045_v37, %v1774_v10 }
 0x677   : > { %v3925_v16 = vunpack.i.h.bf16 %v3923_v19  ;;  %v3924_v15 = vunpack.i.l.bf16 %v3923_v19  ;;  %v3940_v20 = vunpack.i.h.bf16 %v3938_v9  ;;  %v3939_v22 = vunpack.i.l.bf16 %v3938_v9 }
 0x678   : > { %v1805_v50 = vmax.f32 %v1783_v18, %v3920_v1 }
 0x679   : > { %v1833_v42 = vsel %vm5755_vm13, %v3924_v15, %v3925_v16  ;;  %v1843_v25 = vmax.f32 %v1803_v7, %v3924_v15  ;;  %v1796_v32 = vsel %vm5714_vm15, %v3939_v22, %v3940_v20  ;;  %v1806_v43 = vmax.f32 %v1784_v23, %v3939_v22 }
 0x67a   : > { %v3948_v28 = vpop.permute.xlu0 %3947  ;;  %v3943_v29 = vpop.permute.xlu1 %3942  ;;  %v1844_v30 = vmax.f32 %v1804_v21, %v1833_v42  ;;  %v1808_v41 = vmax.f32 %v1786_v26, %v3940_v20  ;;  %v1807_v52 = vmax.f32 %v1785_v27, %v1796_v32 }
 0x67b   : > { %v3950_v39 = vunpack.i.h.bf16 %v3948_v28  ;;  %v3949_v33 = vunpack.i.l.bf16 %v3948_v28  ;;  %v3945_v35 = vunpack.i.h.bf16 %v3943_v29  ;;  %v3944_v44 = vunpack.i.l.bf16 %v3943_v29 }
 0x67c   : > { %v5077_v46 = vmax.f32 %v1843_v25, %v3929_v11  ;;  %v5079_v36 = vmax.f32 %v1844_v30, %v1861_v31 }
 0x67d   : > { %v1836_v37 = vsel %vm5755_vm13, %v3949_v33, %v3950_v39  ;;  %v1835_v45 = vsel %vm5757_vm14, %v3945_v35, %v3949_v33  ;;  %v1834_v34 = vsel %vm5758_vm3, %v3925_v16, %v3944_v44  ;;  %v1846_v53 = vmax.f32 %v1806_v43, %v3945_v35  ;;  %vm5759_vm3 = vmmov %vm5756_vm6 }
 0x67e   : > { %v3953_v54 = vpop.permute.xlu0 %3952  ;;  %v3958_v55 = vpop.permute.xlu1 %3957  ;;  %v3961_v56 = vpack.i.bf16 %v5079_v36, %v5077_v46  ;;  %v1845_v60 = vmax.f32 %v1805_v50, %v1834_v34  ;;  %v1847_v61 = vmax.f32 %v1807_v52, %v1835_v45  ;;  %v1848_v1 = vmax.f32 %v1808_v41, %v1836_v37  ;;  %vm5760_vm14 = vmmov %vm5759_vm3 }
 0x67f   : > { %v3955_v40 = vunpack.i.h.bf16 %v3953_v54  ;;  %v3954_v57 = vunpack.i.l.bf16 %v3953_v54  ;;  %v3960_v58 = vunpack.i.h.bf16 %v3958_v55  ;;  %v3959_v59 = vunpack.i.l.bf16 %v3958_v55 }
 0x680   : > { %3962 = vrot.lane.b32.xlu0 %v3961_v56, %s4504_s3  ;;  %vm5761_vm13 = vcmask 7168  }
 0x681   : > { %v5087_v51 = vmax.f32 %v1846_v53, %v3955_v40  ;;  %v1862_v2 = vsel %vm5756_vm6, %v3930_v6, %v3954_v57  ;;  %v1863_v3 = vsel %vm5759_vm3, %v3955_v40, %v3959_v59  ;;  %v1864_v4 = vsel %vm5760_vm14, %v3959_v59, %v3960_v58  ;;  %vm5762_vm6 = vmmov %vm5761_vm13 }
 0x682   : > { %v5092_v5 = vmax.f32 %v1845_v60, %v1862_v2  ;;  %v5094_v47 = vmax.f32 %v1847_v61, %v1863_v3  ;;  %v5096_v8 = vmax.f32 %v1848_v1, %v1864_v4  ;;  %vm5763_vm3 = vcmp.ge.s32.totalorder %v4774_v63, 1 }
 0x683   : > { %vm5764_vm14 = vcmp.ge.s32.totalorder %v4772_v62, 1 }
 0x684   : > { %v3966_v11 = vpack.i.bf16 %v5087_v51, %v5092_v5  ;;  %v3971_v7 = vpack.i.bf16 %v5096_v8, %v5094_v47 }
 0x686   : > { %3967 = vrot.lane.b32.xlu1 %v3966_v11, %s4504_s3  ;;  %3972 = vrot.lane.b32.xlu0 %v3971_v7, %s4504_s3 }
 0x6f2   : > { %v3963_v6 = vpop.permute.xlu0 %3962 }
 0x6f3   : > { %v3965_v19 = vunpack.i.h.bf16 %v3963_v6  ;;  %v3964_v9 = vunpack.i.l.bf16 %v3963_v6 }
 0x6f5   : > { %v1895_v14 = vsel %vm5713_vm1, %v3964_v9, %v3965_v19 }
 0x6f6   : > { %v3976_v10 = vpack.i.bf16 %v1895_v14, %v4500_v49 }
 0x6f8   : > { %v3968_v16 = vpop.permute.xlu1 %3967  ;;  %v3973_v15 = vpop.permute.xlu0 %3972  ;;  %3977 = vrot.lane.b32.xlu1 %v3976_v10, %s5753_s29 }
 0x6f9   : > { %v3970_v20 = vunpack.i.h.bf16 %v3968_v16  ;;  %v3969_v21 = vunpack.i.l.bf16 %v3968_v16  ;;  %v3975_v22 = vunpack.i.h.bf16 %v3973_v15  ;;  %v3974_v23 = vunpack.i.l.bf16 %v3973_v15 }
 0x6fb   : > { %v1896_v18 = vsel %vm5713_vm1, %v3965_v19, %v3969_v21  ;;  %v1897_v42 = vsel %vm5713_vm1, %v3970_v20, %v3974_v23  ;;  %v1898_v25 = vsel %vm5713_vm1, %v3974_v23, %v3975_v22  ;;  %vm5765_vm1 = vmmov %vm5762_vm6 }
 0x6fc   : > { %3992 = vrot.lane.b32.xlu1 %v3976_v10, %s4505_s27  ;;  %v3981_v26 = vpack.i.bf16 %v4500_v49, %v1896_v18  ;;  %v4006_v27 = vpack.i.bf16 %v1898_v25, %v1897_v42  ;;  %v3986_v28 = vpack.i.bf16 %v1896_v18, %v1895_v14  ;;  %v4011_v29 = vpack.i.bf16 %v1897_v42, %v4500_v49  ;;  %vm5766_vm15 = vmmov %vm5765_vm1 }
 0x6fd   : > { %v4016_v30 = vpack.i.bf16 %v4500_v49, %v1898_v25 }
 0x6fe   : > { %3982 = vrot.lane.b32.xlu0 %v3981_v26, %s5753_s29 }
 0x700   : > { %4007 = vrot.lane.b32.xlu1 %v4006_v27, %s5753_s29 }
 0x702   : > { %3987 = vrot.lane.b32.xlu0 %v3986_v28, %s5754_s5 }
 0x704   : > { %4012 = vrot.lane.b32.xlu1 %v4011_v29, %s5754_s5 }
 0x706   : > { %3997 = vrot.lane.b32.xlu0 %v3981_v26, %s4505_s27 }
 0x708   : > { %4022 = vrot.lane.b32.xlu1 %v4006_v27, %s4505_s27 }
 0x70a   : > { %4002 = vrot.lane.b32.xlu0 %v3986_v28, %s4506_s25 }
 0x70c   : > { %4027 = vrot.lane.b32.xlu1 %v4011_v29, %s4506_s25 }
 0x70e   : > { %4017 = vrot.lane.b32.xlu0 %v4016_v30, %s5754_s5 }
 0x712   : > { %4032 = vrot.lane.b32.xlu0 %v4016_v30, %s4506_s25 }
 0x76a   : > { %v3978_v31 = vpop.permute.xlu1 %3977 }
 0x76b   : > { %v3980_v32 = vunpack.i.h.bf16 %v3978_v31  ;;  %v3979_v39 = vunpack.i.l.bf16 %v3978_v31 }
 0x76d   : > { %v1931_v43 = vsel %vm5761_vm13, %v3979_v39, %v3980_v32  ;;  %vm5767_vm13 = vmmov %vm5763_vm3 }
 0x76e   : > { %v3993_v33 = vpop.permute.xlu1 %3992  ;;  %v1939_v53 = vsel %vm5763_vm3, %v1931_v43, -3.4028235e+38  ;;  %vm5771_vm3 = vcmp.le.s32.totalorder %v4774_v63, 13 }
 0x76f   : > { %v3995_v58 = vunpack.i.h.bf16 %v3993_v33  ;;  %v3994_v2 = vunpack.i.l.bf16 %v3993_v33 }
 0x770   : > { %v3983_v35 = vpop.permute.xlu0 %3982 }
 0x771   : > { %v3984_v44 = vunpack.i.l.bf16 %v3983_v35  ;;  %v3985_v41 = vunpack.i.h.bf16 %v3983_v35  ;;  %v2043_v16 = vsel %vm1627_vm0, %v3994_v2, %v3995_v58 }
 0x772   : > { %v4008_v50 = vpop.permute.xlu1 %4007  ;;  %v2051_v26 = vsel %vm698_vm10, %v2043_v16, -3.4028235e+38 }
 0x773   : > { %v1932_v37 = vsel %vm5762_vm6, %v3980_v32, %v3984_v44  ;;  %v4010_v45 = vunpack.i.h.bf16 %v4008_v50  ;;  %v4009_v52 = vunpack.i.l.bf16 %v4008_v50  ;;  %vm5768_vm6 = vmmov %vm5764_vm14 }
 0x774   : > { %v3988_v34 = vpop.permute.xlu0 %3987  ;;  %v1940_v54 = vsel %vm5764_vm14, %v1932_v37, -3.4028235e+38  ;;  %vm5772_vm14 = vcmp.le.s32.totalorder %v4772_v62, 13 }
 0x775   : > { %v1933_v55 = vsel %vm5765_vm1, %v3985_v41, %v4009_v52  ;;  %v1934_v56 = vsel %vm5766_vm15, %v4009_v52, %v4010_v45  ;;  %v3990_v40 = vunpack.i.h.bf16 %v3988_v34  ;;  %v3989_v57 = vunpack.i.l.bf16 %v3988_v34 }
 0x776   : > { %v4013_v59 = vpop.permute.xlu1 %4012  ;;  %v4036_v60 = vpack.i.bf16 %v1940_v54, %v1939_v53  ;;  %v1941_v61 = vsel %vm5767_vm13, %v1933_v55, -3.4028235e+38  ;;  %v1942_v1 = vsel %vm5768_vm6, %v1934_v56, -3.4028235e+38  ;;  %vm5769_vm1 = vcmask 1031168  }
 0x777   : > { %v1993_v3 = vsel %vm988_vm12, %v3989_v57, %v3990_v40  ;;  %v4014_v4 = vunpack.i.l.bf16 %v4013_v59  ;;  %v4056_v11 = vpack.i.bf16 %v1942_v1, %v1941_v61  ;;  %v4015_v39 = vunpack.i.h.bf16 %v4013_v59  ;;  %vm5770_vm15 = vmmov %vm5769_vm1 }
 0x778   : > { %4037 = vrot.lane.b32.xlu1 %v4036_v60, %s4502_s26  ;;  %v3998_v7 = vpop.permute.xlu0 %3997  ;;  %v2001_v10 = vsel %vm700_vm8, %v1993_v3, -3.4028235e+38  ;;  %vm5773_vm13 = vmmov %vm5769_vm1 }
 0x779   : > { %v1994_v6 = vsel %vm988_vm12, %v3990_v40, %v4014_v4  ;;  %v3999_v19 = vunpack.i.l.bf16 %v3998_v7  ;;  %4057 = vrot.lane.b32.xlu0 %v4056_v11, %s4502_s26  ;;  %v4000_v31 = vunpack.i.h.bf16 %v3998_v7  ;;  %vm5774_vm6 = vmmov %vm5769_vm1 }
 0x77a   : > { %v2002_v9 = vsel %vm701_vm7, %v1994_v6, -3.4028235e+38  ;;  %v4023_v14 = vpop.permute.xlu1 %4022 }
 0x77b   : > { %v2044_v15 = vsel %vm1627_vm0, %v3995_v58, %v3999_v19  ;;  %v4041_v20 = vpack.i.bf16 %v2002_v9, %v2001_v10  ;;  %v4024_v42 = vunpack.i.l.bf16 %v4023_v14  ;;  %v4025_v27 = vunpack.i.h.bf16 %v4023_v14 }
 0x77c   : > { %v4003_v21 = vpop.permute.xlu0 %4002  ;;  %v2052_v22 = vsel %vm699_vm2, %v2044_v15, -3.4028235e+38 }
 0x77d   : > { %v4005_v23 = vunpack.i.h.bf16 %v4003_v21  ;;  %v4004_v18 = vunpack.i.l.bf16 %v4003_v21  ;;  %4042 = vrot.lane.b32.xlu1 %v4041_v20, %s4502_s26  ;;  %v4046_v30 = vpack.i.bf16 %v2052_v22, %v2051_v26  ;;  %v2045_v44 = vsel %vm1627_vm0, %v4000_v31, %v4024_v42 }
 0x77e   : > { %v4028_v25 = vpop.permute.xlu1 %4027  ;;  %v2046_v37 = vsel %vm1627_vm0, %v4024_v42, %v4025_v27  ;;  %v2053_v59 = vsel %vm698_vm10, %v2045_v44, -3.4028235e+38 }
 0x77f   : > { %v2093_v28 = vsel %vm5769_vm1, %v4004_v18, %v4005_v23  ;;  %v4029_v29 = vunpack.i.l.bf16 %v4028_v25  ;;  %v4030_v56 = vunpack.i.h.bf16 %v4028_v25  ;;  %v2054_v60 = vsel %vm699_vm2, %v2046_v37, -3.4028235e+38  ;;  %vm5775_vm1 = vmmov %vm5771_vm3 }
 0x780   : > { %v4018_v32 = vpop.permute.xlu0 %4017  ;;  %v2101_v50 = vsel %vm5771_vm3, %v2093_v28, -3.4028235e+38  ;;  %v4066_v2 = vpack.i.bf16 %v2054_v60, %v2053_v59  ;;  %vm5777_vm3 = vcmask 785408  }
 0x781   : > { %v2094_v33 = vsel %vm5770_vm15, %v4005_v23, %v4029_v29  ;;  %v4020_v35 = vunpack.i.h.bf16 %v4018_v32  ;;  %v4019_v43 = vunpack.i.l.bf16 %v4018_v32  ;;  %4047 = vrot.lane.b32.xlu1 %v4046_v30, %s4502_s26  ;;  %vm5776_vm15 = vmmov %vm5772_vm14 }
 0x782   : > { %v2102_v41 = vsel %vm5772_vm14, %v2094_v33, -3.4028235e+38  ;;  %vm5778_vm14 = vmmov %vm5777_vm3 }
 0x783   : > { %v1995_v45 = vsel %vm988_vm12, %v4015_v39, %v4019_v43  ;;  %v1996_v52 = vsel %vm988_vm12, %v4019_v43, %v4020_v35  ;;  %v4051_v34 = vpack.i.bf16 %v2102_v41, %v2101_v50 }
 0x784   : > { %v2003_v53 = vsel %vm700_vm8, %v1995_v45, -3.4028235e+38  ;;  %v2004_v54 = vsel %vm701_vm7, %v1996_v52, -3.4028235e+38  ;;  %v4033_v55 = vpop.permute.xlu0 %4032 }
 0x785   : > { %v4035_v40 = vunpack.i.h.bf16 %v4033_v55  ;;  %v4034_v57 = vunpack.i.l.bf16 %v4033_v55  ;;  %4052 = vrot.lane.b32.xlu1 %v4051_v34, %s4502_s26  ;;  %v4061_v58 = vpack.i.bf16 %v2004_v54, %v2003_v53 }
 0x787   : > { %v2095_v61 = vsel %vm5773_vm13, %v4030_v56, %v4034_v57  ;;  %v2096_v1 = vsel %vm5774_vm6, %v4034_v57, %v4035_v40  ;;  %4062 = vrot.lane.b32.xlu0 %v4061_v58, %s4502_s26  ;;  %vm5779_vm13 = vmmov %vm5777_vm3 }
 0x788   : > { %v2103_v3 = vsel %vm5775_vm1, %v2095_v61, -3.4028235e+38  ;;  %v2104_v4 = vsel %vm5776_vm15, %v2096_v1, -3.4028235e+38  ;;  %vm5780_vm6 = vmmov %vm5777_vm3 }
 0x789   : > { %v4071_v11 = vpack.i.bf16 %v2104_v4, %v2103_v3  ;;  %vm5781_vm1 = vmmov %vm5777_vm3 }
 0x78a   : > { %vm5782_vm15 = vmmov %vm5781_vm1 }
 0x78b   : > { %4067 = vrot.lane.b32.xlu0 %v4066_v2, %s4502_s26 }
 0x78f   : > { %4072 = vrot.lane.b32.xlu0 %v4071_v11, %s4502_s26 }
 0x7ea   : > { %v4038_v7 = vpop.permute.xlu1 %4037 }
 0x7eb   : > { %v4040_v6 = vunpack.i.h.bf16 %v4038_v7  ;;  %v4039_v19 = vunpack.i.l.bf16 %v4038_v7  ;;  %v4058_v21 = vpop.permute.xlu0 %4057 }
 0x7ec   : > { %v4060_v27 = vunpack.i.h.bf16 %v4058_v21  ;;  %v4059_v30 = vunpack.i.l.bf16 %v4058_v21 }
 0x7ed   : > { %v1955_v16 = vsel %vm5777_vm3, %v4039_v19, %v4040_v6  ;;  %v1963_v20 = vmax.f32 %v5077_v46, %v4039_v19  ;;  %v1965_v37 = vmax.f32 %v5092_v5, %v4040_v6  ;;  %vm5783_vm3 = vmmov %vm5781_vm1 }
 0x7ee   : > { %v1964_v42 = vmax.f32 %v5079_v36, %v1955_v16  ;;  %v1956_v36 = vsel %vm5781_vm1, %v4059_v30, %v4060_v27  ;;  %v1968_v45 = vmax.f32 %v5096_v8, %v4060_v27  ;;  %v1966_v53 = vmax.f32 %v5087_v51, %v4059_v30 }
 0x7ef   : > { %v4043_v9 = vpop.permute.xlu1 %4042  ;;  %v1967_v40 = vmax.f32 %v5094_v47, %v1956_v36 }
 0x7f0   : > { %v4045_v14 = vunpack.i.h.bf16 %v4043_v9  ;;  %v4044_v10 = vunpack.i.l.bf16 %v4043_v9 }
 0x7f2   : > { %v2017_v22 = vsel %vm5778_vm14, %v4044_v10, %v4045_v14  ;;  %v2025_v25 = vmax.f32 %v1963_v20, %v4044_v10  ;;  %v2027_v57 = vmax.f32 %v1965_v37, %v4045_v14  ;;  %vm5784_vm14 = vmmov %vm5781_vm1 }
 0x7f3   : > { %v4048_v15 = vpop.permute.xlu1 %4047  ;;  %v2026_v28 = vmax.f32 %v1964_v42, %v2017_v22 }
 0x7f4   : > { %v4050_v23 = vunpack.i.h.bf16 %v4048_v15  ;;  %v4049_v18 = vunpack.i.l.bf16 %v4048_v15 }
 0x7f6   : > { %v2067_v26 = vsel %vm5779_vm13, %v4049_v18, %v4050_v23  ;;  %v2075_v31 = vmax.f32 %v2025_v25, %v4049_v18  ;;  %v2077_v5 = vmax.f32 %v2027_v57, %v4050_v23  ;;  %vm5785_vm13 = vcmask 261120  }
 0x7f7   : > { %v4053_v29 = vpop.permute.xlu1 %4052  ;;  %v2076_v33 = vmax.f32 %v2026_v28, %v2067_v26 }
 0x7f8   : > { %v4055_v32 = vunpack.i.h.bf16 %v4053_v29  ;;  %v4054_v39 = vunpack.i.l.bf16 %v4053_v29 }
 0x7f9   : > { %v4063_v35 = vpop.permute.xlu0 %4062 }
 0x7fa   : > { %v2117_v46 = vsel %vm5780_vm6, %v4054_v39, %v4055_v32  ;;  %v2125_v43 = vmax.f32 %v2075_v31, %v4054_v39  ;;  %v4065_v44 = vunpack.i.h.bf16 %v4063_v35  ;;  %v4064_v41 = vunpack.i.l.bf16 %v4063_v35  ;;  %vm5786_vm6 = vmmov %vm5785_vm13 }
 0x7fb   : > { %v2126_v50 = vmax.f32 %v2076_v33, %v2117_v46  ;;  %v2127_v11 = vmax.f32 %v2077_v5, %v4055_v32  ;;  %vm5787_vm1 = vmmov %vm5786_vm6 }
 0x7fc   : > { %v2018_v54 = vsel %vm5782_vm15, %v4064_v41, %v4065_v44  ;;  %v2028_v58 = vmax.f32 %v1966_v53, %v4064_v41  ;;  %v2030_v59 = vmax.f32 %v1968_v45, %v4065_v44  ;;  %vm5788_vm15 = vmmov %vm5787_vm1 }
 0x7fd   : > { %v4076_v52 = vpack.i.bf16 %v2126_v50, %v2125_v43  ;;  %v4068_v34 = vpop.permute.xlu0 %4067  ;;  %v2029_v61 = vmax.f32 %v1967_v40, %v2018_v54 }
 0x7fe   : > { %v4070_v55 = vunpack.i.h.bf16 %v4068_v34  ;;  %v4069_v56 = vunpack.i.l.bf16 %v4068_v34 }
 0x7ff   : > { %4077 = vrot.lane.b32.xlu1 %v4076_v52, %s4504_s3 }
 0x800   : > { %v2068_v60 = vsel %vm5783_vm3, %v4069_v56, %v4070_v55  ;;  %v2078_v1 = vmax.f32 %v2028_v58, %v4069_v56  ;;  %v2080_v2 = vmax.f32 %v2030_v59, %v4070_v55  ;;  %vm5789_vm3 = vcmask 916480  }
 0x801   : > { %v4073_v8 = vpop.permute.xlu0 %4072  ;;  %v2079_v4 = vmax.f32 %v2029_v61, %v2068_v60 }
 0x802   : > { %v4075_v3 = vunpack.i.h.bf16 %v4073_v8  ;;  %v4074_v51 = vunpack.i.l.bf16 %v4073_v8 }
 0x804   : > { %v2118_v7 = vsel %vm5784_vm14, %v4074_v51, %v4075_v3  ;;  %v2128_v6 = vmax.f32 %v2078_v1, %v4074_v51  ;;  %v2130_v47 = vmax.f32 %v2080_v2, %v4075_v3  ;;  %vm5790_vm14 = vmmov %vm5789_vm3 }
 0x805   : > { %v2129_v19 = vmax.f32 %v2079_v4, %v2118_v7 }
 0x806   : > { %v4081_v9 = vpack.i.bf16 %v2128_v6, %v2127_v11 }
 0x807   : > { %v4086_v14 = vpack.i.bf16 %v2130_v47, %v2129_v19 }
 0x808   : > { %4082 = vrot.lane.b32.xlu0 %v4081_v9, %s4504_s3 }
 0x809   : > { %4087 = vrot.lane.b32.xlu1 %v4086_v14, %s4504_s3 }
 0x871   : > { %v4078_v10 = vpop.permute.xlu1 %4077 }
 0x872   : > { %v4080_v16 = vunpack.i.h.bf16 %v4078_v10  ;;  %v4079_v15 = vunpack.i.l.bf16 %v4078_v10 }
 0x874   : > { %v2149_v20 = vsel %vm5785_vm13, %v4079_v15, %v4080_v16  ;;  %vm5791_vm13 = vcmask 785408  }
 0x875   : > { %v4091_v21 = vpack.i.bf16 %v2149_v20, %v4500_v49 }
 0x877   : > { %4092 = vrot.lane.b32.xlu0 %v4091_v21, %s5752_s30 }
 0x87a   : > { %v4083_v22 = vpop.permute.xlu0 %4082 }
 0x87b   : > { %v4085_v23 = vunpack.i.h.bf16 %v4083_v22  ;;  %v4084_v18 = vunpack.i.l.bf16 %v4083_v22  ;;  %v4088_v42 = vpop.permute.xlu1 %4087 }
 0x87c   : > { %v4090_v25 = vunpack.i.h.bf16 %v4088_v42  ;;  %v4089_v26 = vunpack.i.l.bf16 %v4088_v42 }
 0x87d   : > { %v2150_v27 = vsel %vm5786_vm6, %v4080_v16, %v4084_v18  ;;  %vm5792_vm6 = vmmov %vm5789_vm3 }
 0x87e   : > { %v5202_v28 = vsel %vm5787_vm1, %v4085_v23, %v4089_v26  ;;  %v2152_v29 = vsel %vm5788_vm15, %v4089_v26, %v4090_v25  ;;  %v4096_v30 = vpack.i.bf16 %v4500_v49, %v2150_v27  ;;  %v4111_v31 = vpack.i.bf16 %v2150_v27, %v2149_v20 }
 0x87f   : > { %v2578_v32 = vpack.c.bf16 %v2152_v29, %v2150_v27  ;;  %v2577_v39 = vpack.c.bf16 %v5202_v28, %v2149_v20  ;;  %v4116_v33 = vpack.i.bf16 %v2152_v29, %v5202_v28  ;;  %v4131_v35 = vpack.i.bf16 %v4500_v49, %v2152_v29 }
 0x880   : > { %4097 = vrot.lane.b32.xlu1 %v4096_v30, %s5752_s30  ;;  %4112 = vrot.lane.b32.xlu0 %v4111_v31, %s4501_s0  ;;  %v4126_v46 = vpack.i.bf16 %v5202_v28, %v4500_v49  ;;  %vm5793_vm1 = vcmask 654336   ;;  %vm5794_vm15 = vcmask 523264  }
 0x881   : > { %2593 = vmatprep.subr.bf16.mxu0 %v2578_v32 }
 0x882   : > { %2594 = vmatpush1.bf16.msra.mxu0 %v2577_v39 }
 0x884   : > { %4102 = vrot.lane.b32.xlu1 %v4111_v31, %s4502_s26  ;;  %4117 = vrot.lane.b32.xlu0 %v4116_v33, %s5752_s30 }
 0x888   : > { %4107 = vrot.lane.b32.xlu1 %v4111_v31, %s4503_s2  ;;  %4122 = vrot.lane.b32.xlu0 %v4116_v33, %s4502_s26 }
 0x88c   : > { %4132 = vrot.lane.b32.xlu1 %v4131_v35, %s4503_s2  ;;  %4127 = vrot.lane.b32.xlu0 %v4126_v46, %s4503_s2 }
 0x890   : > { %4137 = vrot.lane.b32.xlu1 %v4126_v46, %s4501_s0  ;;  %4142 = vrot.lane.b32.xlu0 %v4131_v35, %s4501_s0  ;;  %s5838_s0 = smov 113  }
 0x8e9   : > { %v4093_v43 = vpop.permute.xlu0 %4092 }
 0x8ea   : > { %v4095_v44 = vunpack.i.h.bf16 %v4093_v43  ;;  %v4094_v50 = vunpack.i.l.bf16 %v4093_v43 }
 0x8ec   : > { %v2185_v52 = vsel %vm5789_vm3, %v4094_v50, %v4095_v44 }
 0x8ed   : > { %v2195_v58 = vmax.f32 %v2185_v52, -3.4028235e+38 }
 0x8f2   : > { %v4098_v41 = vpop.permute.xlu1 %4097  ;;  %v5221_v36 = vpop.permute.xlu0 %4112 }
 0x8f3   : > { %v4099_v37 = vunpack.i.l.bf16 %v4098_v41  ;;  %v4100_v40 = vunpack.i.h.bf16 %v4098_v41  ;;  %v4115_v57 = vunpack.i.h.bf16 %v5221_v36  ;;  %v4114_v5 = vunpack.i.l.bf16 %v5221_v36 }
 0x8f5   : > { %v2186_v53 = vsel %vm5790_vm14, %v4095_v44, %v4099_v37  ;;  %v2197_v14 = vmax.f32 %v2150_v27, %v4099_v37  ;;  %v2275_v10 = vsel %vm5794_vm15, %v4114_v5, %v4115_v57  ;;  %vm5795_vm14 = vmmov %vm5791_vm13 }
 0x8f6   : > { %v4103_v45 = vpop.permute.xlu1 %4102  ;;  %v4118_v34 = vpop.permute.xlu0 %4117  ;;  %v2196_v60 = vmax.f32 %v2149_v20, %v2186_v53 }
 0x8f7   : > { %v4105_v54 = vunpack.i.h.bf16 %v4103_v45  ;;  %v4104_v55 = vunpack.i.l.bf16 %v4103_v45  ;;  %v4119_v56 = vunpack.i.l.bf16 %v4118_v34  ;;  %v4120_v61 = vunpack.i.h.bf16 %v4118_v34 }
 0x8f9   : > { %v2209_v59 = vsel %vm5791_vm13, %v4104_v55, %v4105_v54  ;;  %v2187_v2 = vsel %vm5792_vm6, %v4100_v40, %v4119_v56  ;;  %v2217_v3 = vmax.f32 %v2195_v58, %v4104_v55  ;;  %v2188_v16 = vsel %vm5789_vm3, %v4119_v56, %v4120_v61  ;;  %vm5796_vm13 = vmmov %vm5793_vm1 }
 0x8fa   : > { %v4108_v8 = vpop.permute.xlu1 %4107  ;;  %v4123_v1 = vpop.permute.xlu0 %4122  ;;  %v2218_v7 = vmax.f32 %v2196_v60, %v2209_v59  ;;  %v2198_v9 = vmax.f32 %v2187_v2, -3.4028235e+38  ;;  %v2200_v22 = vmax.f32 %v2152_v29, %v4120_v61  ;;  %v2219_v32 = vmax.f32 %v2197_v14, %v4105_v54  ;;  %vm5797_vm6 = vmmov %vm5793_vm1 }
 0x8fb   : > { %v4110_v51 = vunpack.i.h.bf16 %v4108_v8  ;;  %v4109_v4 = vunpack.i.l.bf16 %v4108_v8  ;;  %v4125_v11 = vunpack.i.h.bf16 %v4123_v1  ;;  %v4124_v6 = vunpack.i.l.bf16 %v4123_v1  ;;  %vm5798_vm3 = vmmov %vm5794_vm15 }
 0x8fc   : > { %v2199_v27 = vmax.f32 %v5202_v28, %v2188_v16 }
 0x8fd   : > { %v2247_v47 = vsel %vm5793_vm1, %v4109_v4, %v4110_v51  ;;  %v2257_v19 = vmax.f32 %v2217_v3, %v4109_v4  ;;  %v2210_v23 = vsel %vm5795_vm14, %v4124_v6, %v4125_v11  ;;  %v2220_v39 = vmax.f32 %v2198_v9, %v4124_v6  ;;  %vm5799_vm14 = vmmov %vm5798_vm3 }
 0x8fe   : > { %v2258_v15 = vmax.f32 %v2218_v7, %v2247_v47  ;;  %v4133_v20 = vpop.permute.xlu1 %4132  ;;  %v4128_v21 = vpop.permute.xlu0 %4127  ;;  %v2222_v33 = vmax.f32 %v2200_v22, %v4125_v11  ;;  %v2221_v50 = vmax.f32 %v2199_v27, %v2210_v23 }
 0x8ff   : > { %v4135_v18 = vunpack.i.h.bf16 %v4133_v20  ;;  %v4134_v42 = vunpack.i.l.bf16 %v4133_v20  ;;  %v5233_v25 = vmax.f32 %v2257_v19, %v4114_v5  ;;  %v4130_v30 = vunpack.i.h.bf16 %v4128_v21 }
 0x900   : > { %v5235_v26 = vmax.f32 %v2258_v15, %v2275_v10  ;;  %v4129_v31 = vunpack.i.l.bf16 %v4128_v21 }
 0x901   : > { %v2250_v35 = vsel %vm5796_vm13, %v4134_v42, %v4135_v18  ;;  %v2249_v46 = vsel %vm5797_vm6, %v4130_v30, %v4134_v42  ;;  %v2260_v41 = vmax.f32 %v2220_v39, %v4130_v30  ;;  %vm5800_vm13 = vcmask 261120  }
 0x902   : > { %v2248_v29 = vsel %vm5793_vm1, %v4110_v51, %v4129_v31  ;;  %v4138_v43 = vpop.permute.xlu1 %4137  ;;  %v4143_v44 = vpop.permute.xlu0 %4142  ;;  %v4146_v28 = vpack.i.bf16 %v5235_v26, %v5233_v25  ;;  %v2262_v53 = vmax.f32 %v2222_v33, %v2250_v35  ;;  %v2261_v54 = vmax.f32 %v2221_v50, %v2249_v46  ;;  %vm5801_vm6 = vmmov %vm5800_vm13 }
 0x903   : > { %v4140_v36 = vunpack.i.h.bf16 %v4138_v43  ;;  %v4139_v37 = vunpack.i.l.bf16 %v4138_v43  ;;  %v2259_v45 = vmax.f32 %v2219_v32, %v2248_v29  ;;  %v4145_v52 = vunpack.i.h.bf16 %v4143_v44  ;;  %vm5802_vm1 = vmmov %vm5801_vm6 }
 0x904   : > { %v4144_v34 = vunpack.i.l.bf16 %v4143_v44  ;;  %4147 = vrot.lane.b32.xlu1 %v4146_v28, %s4504_s3 }
 0x905   : > { %v2276_v55 = vsel %vm5794_vm15, %v4115_v57, %v4139_v37  ;;  %v5244_v56 = vmax.f32 %v2260_v41, %v4140_v36  ;;  %vm5803_vm15 = vmmov %vm5802_vm1 }
 0x906   : > { %v5246_v40 = vmax.f32 %v2259_v45, %v2276_v55  ;;  %v2277_v58 = vsel %vm5798_vm3, %v4140_v36, %v4144_v34  ;;  %v2278_v59 = vsel %vm5799_vm14, %v4144_v34, %v4145_v52  ;;  %vm5804_vm3 = vcmask 7168  }
 0x907   : > { %v5251_v60 = vmax.f32 %v2261_v54, %v2277_v58  ;;  %v5253_v5 = vmax.f32 %v2262_v53, %v2278_v59  ;;  %vm5805_vm14 = vmmov %vm5804_vm3 }
 0x908   : > { %v4151_v61 = vpack.i.bf16 %v5244_v56, %v5246_v40 }
 0x909   : > { %v4156_v57 = vpack.i.bf16 %v5253_v5, %v5251_v60 }
 0x90a   : > { %4152 = vrot.lane.b32.xlu0 %v4151_v61, %s4504_s3 }
 0x90b   : > { %4157 = vrot.lane.b32.xlu1 %v4156_v57, %s4504_s3 }
 0x976   : > { %v4148_v8 = vpop.permute.xlu1 %4147 }
 0x977   : > { %v4150_v1 = vunpack.i.h.bf16 %v4148_v8  ;;  %v4149_v2 = vunpack.i.l.bf16 %v4148_v8 }
 0x979   : > { %v2309_v3 = vsel %vm5800_vm13, %v4149_v2, %v4150_v1  ;;  %vm5806_vm13 = vcmp.ge.s32.totalorder %v4772_v62, 1 }
 0x97a   : > { %v4161_v4 = vpack.i.bf16 %v2309_v3, %v4500_v49 }
 0x97c   : > { %v4153_v51 = vpop.permute.xlu0 %4152  ;;  %4162 = vrot.lane.b32.xlu0 %v4161_v4, %s5753_s29 }
 0x97d   : > { %v4155_v11 = vunpack.i.h.bf16 %v4153_v51  ;;  %v4154_v7 = vunpack.i.l.bf16 %v4153_v51  ;;  %v4158_v6 = vpop.permute.xlu1 %4157 }
 0x97e   : > { %v4160_v47 = vunpack.i.h.bf16 %v4158_v6  ;;  %v4159_v19 = vunpack.i.l.bf16 %v4158_v6 }
 0x97f   : > { %v2310_v9 = vsel %vm5801_vm6, %v4150_v1, %v4154_v7  ;;  %vm5807_vm6 = vcmp.ge.s32.totalorder %v4774_v63, 1 }
 0x980   : > { %v4166_v14 = vpack.i.bf16 %v4500_v49, %v2310_v9  ;;  %v2311_v10 = vsel %vm5802_vm1, %v4155_v11, %v4159_v19  ;;  %v2312_v16 = vsel %vm5803_vm15, %v4159_v19, %v4160_v47  ;;  %4177 = vrot.lane.b32.xlu0 %v4161_v4, %s4505_s27  ;;  %v4171_v20 = vpack.i.bf16 %v2310_v9, %v2309_v3  ;;  %vm5808_vm1 = vmmov %vm5804_vm3 }
 0x981   : > { %v4191_v15 = vpack.i.bf16 %v2312_v16, %v2311_v10  ;;  %v4196_v21 = vpack.i.bf16 %v2311_v10, %v4500_v49  ;;  %v4201_v22 = vpack.i.bf16 %v4500_v49, %v2312_v16  ;;  %vm5809_vm15 = vmmov %vm5808_vm1 }
 0x982   : > { %4167 = vrot.lane.b32.xlu1 %v4166_v14, %s5753_s29 }
 0x984   : > { %4192 = vrot.lane.b32.xlu0 %v4191_v15, %s5753_s29 }
 0x986   : > { %4172 = vrot.lane.b32.xlu1 %v4171_v20, %s5754_s5 }
 0x988   : > { %4197 = vrot.lane.b32.xlu0 %v4196_v21, %s5754_s5 }
 0x98a   : > { %4182 = vrot.lane.b32.xlu1 %v4166_v14, %s4505_s27 }
 0x98c   : > { %4207 = vrot.lane.b32.xlu0 %v4191_v15, %s4505_s27  ;;  %s3498_s27 = sshll.u32 %s4645_s4, 9 }
 0x98e   : > { %4187 = vrot.lane.b32.xlu1 %v4171_v20, %s4506_s25 }
 0x990   : > { %4212 = vrot.lane.b32.xlu0 %v4196_v21, %s4506_s25 }
 0x992   : > { %4202 = vrot.lane.b32.xlu1 %v4201_v22, %s5754_s5 }
 0x996   : > { %4217 = vrot.lane.b32.xlu1 %v4201_v22, %s4506_s25 }
 0x9ee   : > { %v4163_v23 = vpop.permute.xlu0 %4162 }
 0x9ef   : > { %v4165_v18 = vunpack.i.h.bf16 %v4163_v23  ;;  %v4164_v42 = vunpack.i.l.bf16 %v4163_v23 }
 0x9f1   : > { %v2345_v27 = vsel %vm5804_vm3, %v4164_v42, %v4165_v18  ;;  %vm5810_vm3 = vmmov %vm5807_vm6 }
 0x9f2   : > { %v4178_v30 = vpop.permute.xlu0 %4177  ;;  %v2353_v46 = vsel %vm5807_vm6, %v2345_v27, -3.4028235e+38  ;;  %vm5813_vm6 = vcmp.le.s32.totalorder %v4774_v63, 13 }
 0x9f3   : > { %v4180_v54 = vunpack.i.h.bf16 %v4178_v30  ;;  %v4179_v55 = vunpack.i.l.bf16 %v4178_v30 }
 0x9f4   : > { %v4168_v31 = vpop.permute.xlu1 %4167 }
 0x9f5   : > { %v4169_v32 = vunpack.i.l.bf16 %v4168_v31  ;;  %v4170_v29 = vunpack.i.h.bf16 %v4168_v31  ;;  %v2457_v4 = vsel %vm1627_vm0, %v4179_v55, %v4180_v54 }
 0x9f6   : > { %v4193_v49 = vpop.permute.xlu0 %4192  ;;  %v2465_v10 = vsel %vm698_vm10, %v2457_v4, -3.4028235e+38 }
 0x9f7   : > { %v2346_v39 = vsel %vm5805_vm14, %v4165_v18, %v4169_v32  ;;  %v4195_v43 = vunpack.i.h.bf16 %v4193_v49  ;;  %v4194_v44 = vunpack.i.l.bf16 %v4193_v49  ;;  %vm5811_vm14 = vmmov %vm5806_vm13 }
 0x9f8   : > { %v2354_v33 = vsel %vm5806_vm13, %v2346_v39, -3.4028235e+38  ;;  %v4173_v35 = vpop.permute.xlu1 %4172  ;;  %vm5812_vm13 = vcmask 1031168  }
 0x9f9   : > { %v4175_v50 = vunpack.i.h.bf16 %v4173_v35  ;;  %v4174_v41 = vunpack.i.l.bf16 %v4173_v35  ;;  %v4221_v36 = vpack.i.bf16 %v2354_v33, %v2353_v46  ;;  %v2347_v37 = vsel %vm5808_vm1, %v4170_v29, %v4194_v44  ;;  %vm5814_vm1 = vmmov %vm5812_vm13 }
 0x9fa   : > { %v2348_v45 = vsel %vm5809_vm15, %v4194_v44, %v4195_v43  ;;  %v2355_v52 = vsel %vm5810_vm3, %v2347_v37, -3.4028235e+38  ;;  %v4198_v28 = vpop.permute.xlu0 %4197  ;;  %vm5815_vm15 = vcmp.le.s32.totalorder %v4772_v62, 13 }
 0x9fb   : > { %v2356_v34 = vsel %vm5811_vm14, %v2348_v45, -3.4028235e+38  ;;  %4222 = vrot.lane.b32.xlu0 %v4221_v36, %s4502_s26  ;;  %v4199_v58 = vunpack.i.l.bf16 %v4198_v28  ;;  %v2407_v61 = vsel %vm988_vm12, %v4174_v41, %v4175_v50  ;;  %v4200_v22 = vunpack.i.h.bf16 %v4198_v28 }
 0x9fc   : > { %v4183_v53 = vpop.permute.xlu1 %4182  ;;  %v4241_v57 = vpack.i.bf16 %v2356_v34, %v2355_v52  ;;  %v2415_v11 = vsel %vm700_vm8, %v2407_v61, -3.4028235e+38 }
 0x9fd   : > { %v4184_v59 = vunpack.i.l.bf16 %v4183_v53  ;;  %v2408_v8 = vsel %vm988_vm12, %v4175_v50, %v4199_v58  ;;  %v4185_v16 = vunpack.i.h.bf16 %v4183_v53 }
 0x9fe   : > { %v2416_v1 = vsel %vm701_vm7, %v2408_v8, -3.4028235e+38  ;;  %4242 = vrot.lane.b32.xlu1 %v4241_v57, %s4502_s26  ;;  %v4208_v3 = vpop.permute.xlu0 %4207 }
 0x9ff   : > { %v2458_v2 = vsel %vm1627_vm0, %v4180_v54, %v4184_v59  ;;  %v4210_v47 = vunpack.i.h.bf16 %v4208_v3  ;;  %v4209_v19 = vunpack.i.l.bf16 %v4208_v3  ;;  %v4226_v9 = vpack.i.bf16 %v2416_v1, %v2415_v11 }
 0xa00   : > { %v4188_v51 = vpop.permute.xlu1 %4187  ;;  %v2466_v14 = vsel %vm699_vm2, %v2458_v2, -3.4028235e+38 }
 0xa01   : > { %v4190_v7 = vunpack.i.h.bf16 %v4188_v51  ;;  %v4189_v6 = vunpack.i.l.bf16 %v4188_v51  ;;  %4227 = vrot.lane.b32.xlu0 %v4226_v9, %s4502_s26  ;;  %v2459_v30 = vsel %vm1627_vm0, %v4185_v16, %v4209_v19  ;;  %v2460_v31 = vsel %vm1627_vm0, %v4209_v19, %v4210_v47  ;;  %vm5816_vm0 = vmmov %vm5814_vm1 }
 0xa02   : > { %v4213_v20 = vpop.permute.xlu0 %4212  ;;  %v4231_v32 = vpack.i.bf16 %v2466_v14, %v2465_v10  ;;  %v2467_v45 = vsel %vm698_vm10, %v2459_v30, -3.4028235e+38  ;;  %v2468_v52 = vsel %vm699_vm2, %v2460_v31, -3.4028235e+38  ;;  %vm5817_vm3 = vmmov %vm5816_vm0  ;;  %vm5820_vm2 = vcmask 785408  }
 0xa03   : > { %v2507_v15 = vsel %vm5812_vm13, %v4189_v6, %v4190_v7  ;;  %v4214_v23 = vunpack.i.l.bf16 %v4213_v20  ;;  %v4215_v35 = vunpack.i.h.bf16 %v4213_v20  ;;  %v4251_v53 = vpack.i.bf16 %v2468_v52, %v2467_v45  ;;  %vm5821_vm10 = vmmov %vm5820_vm2 }
 0xa04   : > { %v4203_v21 = vpop.permute.xlu1 %4202  ;;  %v2515_v27 = vsel %vm5813_vm6, %v2507_v15, -3.4028235e+38  ;;  %vm5822_vm14 = vmmov %vm5820_vm2 }
 0xa05   : > { %v4205_v18 = vunpack.i.h.bf16 %v4203_v21  ;;  %v4204_v42 = vunpack.i.l.bf16 %v4203_v21  ;;  %v2508_v39 = vsel %vm5814_vm1, %v4190_v7, %v4214_v23  ;;  %4232 = vrot.lane.b32.xlu0 %v4231_v32, %s4502_s26  ;;  %vm5823_vm13 = vmmov %vm5820_vm2 }
 0xa06   : > { %v2516_v46 = vsel %vm5815_vm15, %v2508_v39, -3.4028235e+38  ;;  %vm5825_vm1 = vmmov %vm5820_vm2 }
 0xa07   : > { %v2409_v33 = vsel %vm988_vm12, %v4200_v22, %v4204_v42  ;;  %v2410_v49 = vsel %vm988_vm12, %v4204_v42, %v4205_v18  ;;  %v4236_v36 = vpack.i.bf16 %v2516_v46, %v2515_v27 }
 0xa08   : > { %v2417_v29 = vsel %vm700_vm8, %v2409_v33, -3.4028235e+38  ;;  %v2418_v43 = vsel %vm701_vm7, %v2410_v49, -3.4028235e+38  ;;  %v4218_v44 = vpop.permute.xlu1 %4217  ;;  %vm5818_vm7 = vmmov %vm5813_vm6 }
 0xa09   : > { %v4220_v50 = vunpack.i.h.bf16 %v4218_v44  ;;  %v4219_v41 = vunpack.i.l.bf16 %v4218_v44  ;;  %v4246_v37 = vpack.i.bf16 %v2418_v43, %v2417_v29  ;;  %4237 = vrot.lane.b32.xlu0 %v4236_v36, %s4502_s26  ;;  %vm5819_vm8 = vmmov %vm5815_vm15 }
 0xa0a   : > { %vm5824_vm6 = vmmov %vm5820_vm2 }
 0xa0b   : > { %v2509_v34 = vsel %vm5816_vm0, %v4215_v35, %v4219_v41  ;;  %v2510_v28 = vsel %vm5817_vm3, %v4219_v41, %v4220_v50  ;;  %4247 = vrot.lane.b32.xlu1 %v4246_v37, %s4502_s26  ;;  %vm5826_vm15 = vmmov %vm5825_vm1  ;;  %vm5829_vm3 = vcmask 130048  }
 0xa0c   : > { %v2517_v54 = vsel %vm5818_vm7, %v2509_v34, -3.4028235e+38  ;;  %v2518_v55 = vsel %vm5819_vm8, %v2510_v28, -3.4028235e+38  ;;  %vm5827_vm0 = vmmov %vm5825_vm1  ;;  %vm5831_vm7 = vcmask 261120  }
 0xa0d   : > { %v4256_v58 = vpack.i.bf16 %v2518_v55, %v2517_v54  ;;  %vm5832_vm8 = vmmov %vm5831_vm7 }
 0xa0f   : > { %4252 = vrot.lane.b32.xlu1 %v4251_v53, %s4502_s26 }
 0xa13   : > { %4257 = vrot.lane.b32.xlu1 %v4256_v58, %s4502_s26 }
 0xa6d   : > { %v4223_v59 = vpop.permute.xlu0 %4222 }
 0xa6e   : > { %v4225_v61 = vunpack.i.h.bf16 %v4223_v59  ;;  %v4224_v57 = vunpack.i.l.bf16 %v4223_v59 }
 0xa70   : > { %v2369_v3 = vsel %vm5820_vm2, %v4224_v57, %v4225_v61  ;;  %v4243_v51 = vpop.permute.xlu1 %4242  ;;  %v2379_v63 = vmax.f32 %v5246_v40, %v4225_v61  ;;  %v2377_v40 = vmax.f32 %v5233_v25, %v4224_v57  ;;  %v2633_v57 = vld [vmem:[%s5660_s12 + $0x8] sm:$0xff]  ;;  %vm5833_vm2 = vmmov %vm5831_vm7 }
 0xa71   : > { %v2378_v6 = vmax.f32 %v5235_v26, %v2369_v3  ;;  %v4245_v47 = vunpack.i.h.bf16 %v4243_v51  ;;  %v4244_v19 = vunpack.i.l.bf16 %v4243_v51  ;;  %v4372_v3 = vld [vmem:[%s5828_s10] sm:$0xff]   ;;  %s5837_s10 = smov 15  }
 0xa72   : > { %3489 = vmatmul.mubr.msk.bf16.vlgmr.msra.gmra.mrb[8].mxu1 %vm5829_vm3, %v4372_v3 }
 0xa73   : > { %v4228_v8 = vpop.permute.xlu0 %4227  ;;  %v2370_v42 = vsel %vm5823_vm13, %v4244_v19, %v4245_v47  ;;  %v2382_v26 = vmax.f32 %v5253_v5, %v4245_v47  ;;  %v2380_v31 = vmax.f32 %v5244_v56, %v4244_v19  ;;  %3338 = vmatprep.mubr.bf16.mxu1 %v4489_v0  ;;  %vm5839_vm13 = vmmov %vm5829_vm3  ;;  %vm5845_vm3 = vcmask 121856  }
 0xa74   : > { %v4230_v1 = vunpack.i.h.bf16 %v4228_v8  ;;  %v4229_v2 = vunpack.i.l.bf16 %v4228_v8  ;;  %v2381_v29 = vmax.f32 %v5251_v60, %v2370_v42  ;;  %v2632_v8 = vld [vmem:[%s5660_s12] sm:$0xff] }
 0xa76   : > { %v2431_v62 = vsel %vm5821_vm10, %v4229_v2, %v4230_v1  ;;  %v2441_v9 = vmax.f32 %v2379_v63, %v4230_v1  ;;  %v2439_v43 = vmax.f32 %v2377_v40, %v4229_v2  ;;  %v2649_v1 = vld [vmem:[%s5661_s13 + $0x8] sm:$0xff]  ;;  %v2648_v2 = vld [vmem:[%s5661_s13] sm:$0xff]  ;;  %vm5834_vm10 = vmmov %vm5833_vm2 }
 0xa77   : > { %v4233_v4 = vpop.permute.xlu0 %4232  ;;  %v2440_v16 = vmax.f32 %v2378_v6, %v2431_v62 }
 0xa78   : > { %v4235_v11 = vunpack.i.h.bf16 %v4233_v4  ;;  %v4234_v7 = vunpack.i.l.bf16 %v4233_v4 }
 0xa7a   : > { %v2481_v14 = vsel %vm5822_vm14, %v4234_v7, %v4235_v11  ;;  %v2491_v22 = vmax.f32 %v2441_v9, %v4235_v11  ;;  %v2489_v5 = vmax.f32 %v2439_v43, %v4234_v7  ;;  %vm5835_vm14 = vcmask 523264  }
 0xa7b   : > { %v4238_v15 = vpop.permute.xlu0 %4237  ;;  %v2490_v30 = vmax.f32 %v2440_v16, %v2481_v14 }
 0xa7c   : > { %v4240_v23 = vunpack.i.h.bf16 %v4238_v15  ;;  %v4239_v18 = vunpack.i.l.bf16 %v4238_v15 }
 0xa7d   : > { %v4248_v10 = vpop.permute.xlu1 %4247 }
 0xa7e   : > { %v4250_v20 = vunpack.i.h.bf16 %v4248_v10  ;;  %v4249_v21 = vunpack.i.l.bf16 %v4248_v10  ;;  %v2531_v32 = vsel %vm5824_vm6, %v4239_v18, %v4240_v23  ;;  %v2541_v27 = vmax.f32 %v2491_v22, %v4240_v23 }
 0xa7f   : > { %v2540_v33 = vmax.f32 %v2490_v30, %v2531_v32  ;;  %v2539_v53 = vmax.f32 %v2489_v5, %v4239_v18  ;;  %vm5841_vm6 = vcmask 138240  }
 0xa80   : > { %v2432_v49 = vsel %vm5825_vm1, %v4249_v21, %v4250_v20  ;;  %v2442_v44 = vmax.f32 %v2380_v31, %v4249_v21  ;;  %v2444_v50 = vmax.f32 %v2382_v26, %v4250_v20  ;;  %v4371_v20 = vld [vmem:[%s5659_s11] sm:$0xff]   ;;  %vm5842_vm1 = vmmov %vm5841_vm6 }
 0xa81   : > { %v4253_v39 = vpop.permute.xlu1 %4252  ;;  %v4261_v25 = vpack.i.bf16 %v2541_v27, %v2540_v33  ;;  %v2443_v36 = vmax.f32 %v2381_v29, %v2432_v49 }
 0xa82   : > { %v4255_v35 = vunpack.i.h.bf16 %v4253_v39  ;;  %v4254_v46 = vunpack.i.l.bf16 %v4253_v39 }
 0xa83   : > { %4262 = vrot.lane.b32.xlu0 %v4261_v25, %s4504_s3 }
 0xa84   : > { %v2482_v41 = vsel %vm5826_vm15, %v4254_v46, %v4255_v35  ;;  %v2492_v37 = vmax.f32 %v2442_v44, %v4254_v46  ;;  %v2494_v45 = vmax.f32 %v2444_v50, %v4255_v35  ;;  %vm5843_vm15 = vmmov %vm5842_vm1 }
 0xa85   : > { %v4258_v56 = vpop.permute.xlu1 %4257  ;;  %v2493_v28 = vmax.f32 %v2443_v36, %v2482_v41 }
 0xa86   : > { %v4260_v52 = vunpack.i.h.bf16 %v4258_v56  ;;  %v4259_v34 = vunpack.i.l.bf16 %v4258_v56 }
 0xa88   : > { %v2532_v54 = vsel %vm5827_vm0, %v4259_v34, %v4260_v52  ;;  %v2542_v60 = vmax.f32 %v2492_v37, %v4259_v34  ;;  %v2544_v55 = vmax.f32 %v2494_v45, %v4260_v52  ;;  %vm5844_vm0 = vmmov %vm5842_vm1 }
 0xa89   : > { %v2543_v58 = vmax.f32 %v2493_v28, %v2532_v54  ;;  %v3047_v54 = vld [vmem:[%s5663_s15] sm:$0xff] }
 0xa8a   : > { %v4271_v59 = vpack.i.bf16 %v2542_v60, %v2539_v53  ;;  %v3063_v60 = vld [vmem:[%s5664_s16] sm:$0xff] }
 0xa8b   : > { %v4266_v61 = vpack.i.bf16 %v2544_v55, %v2543_v58  ;;  %v3064_v55 = vld [vmem:[%s5664_s16 + $0x8] sm:$0xff]  ;;  %v3140_v58 = vld [vmem:[%s5665_s17] sm:$0xff] }
 0xa8c   : > { %4272 = vrot.lane.b32.xlu0 %v4271_v59, %s4504_s3  ;;  %v3141_v59 = vld [vmem:[%s5665_s17 + $0x8] sm:$0xff] }
 0xa8d   : > { %4267 = vrot.lane.b32.xlu1 %v4266_v61, %s4504_s3  ;;  %v3172_v61 = vld [vmem:[%s5666_s18] sm:$0xff] }
 0xa90   : > { %2641 = vperm.xlu0 %3629, %v2633_v57  }
 0xa91   : > { %2636 = vperm.xlu1 %3630, %v2632_v8  }
 0xa94   : > { %2657 = vperm.xlu0 %3629, %v2649_v1   ;;  %v3173_v1 = vld [vmem:[%s5666_s18 + $0x8] sm:$0xff] }
 0xa95   : > { %2652 = vperm.xlu1 %3630, %v2648_v2   ;;  %v3142_v2 = vld [vmem:[%s5665_s17 + $0x10] sm:$0xff] }
 0xa98   : > { %2728 = vrot.lane.b32.xlu0 %v4492_v13, %s5830_s1 }
 0xa99   : > { %4277 = vrot.lane.b32.xlu1 %v4490_v12, %s5836_s9 }
 0xa9d   : > { %4282 = vrot.lane.b32.xlu1 %v4490_v12, %s5837_s10 }
 0xaf5   : > { %v4263_v51 = vpop.permute.xlu0 %4262 }
 0xaf6   : > { %v4265_v4 = vunpack.i.h.bf16 %v4263_v51  ;;  %v4264_v63 = vunpack.i.l.bf16 %v4263_v51  ;;  %v3143_v51 = vld [vmem:[%s5665_s17 + $0x18] sm:$0xff] }
 0xaf8   : > { %v2564_v10 = vsel %vm5833_vm2, %v4264_v63, %v4265_v4  ;;  %v3174_v4 = vld [vmem:[%s5666_s18 + $0x10] sm:$0xff] }
 0xafe   : > { %v4273_v62 = vpop.permute.xlu0 %4272 }
 0xaff   : > { %v4275_v11 = vunpack.i.h.bf16 %v4273_v62  ;;  %v4274_v7 = vunpack.i.l.bf16 %v4273_v62  ;;  %v4268_v6 = vpop.permute.xlu1 %4267  ;;  %v3175_v62 = vld [vmem:[%s5666_s18 + $0x18] sm:$0xff] }
 0xb00   : > { %v4270_v47 = vunpack.i.h.bf16 %v4268_v6  ;;  %v4269_v19 = vunpack.i.l.bf16 %v4268_v6  ;;  %v3365_v6 = vld [vmem:[%s5669_s21] sm:$0xff] }
 0xb01   : > { %v2563_v9 = vsel %vm5831_vm7, %v4274_v7, %v4264_v63  ;;  %v3350_v7 = vld [vmem:[%s5668_s20 + $0x8] sm:$0xff]  ;;  %vm5846_vm7 = vmmov %vm5845_vm3 }
 0xb02   : > { %v2565_v14 = vsel %vm5832_vm8, %v4275_v11, %v4269_v19  ;;  %v2566_v0 = vsel %vm5834_vm10, %v4269_v19, %v4270_v47  ;;  %v3349_v11 = vld [vmem:[%s5668_s20] sm:$0xff]  ;;  %v3366_v47 = vld [vmem:[%s5669_s21 + $0x8] sm:$0xff]  ;;  %vm5847_vm8 = vmmov %vm5839_vm13 }
 0xb03   : > { %v2579_v16 = vpack.c.bf16 %v2565_v14, %v2563_v9  ;;  %v2580_v15 = vpack.c.bf16 %v2566_v0, %v2564_v10  ;;  %vm5848_vm2 = vmmov %vm5847_vm8 }
 0xb04   : > { %vm5849_vm10 = vmmov %vm5845_vm3 }
 0xb05   : > { %2595 = vmatprep.subr.bf16.mxu0 %v2580_v15 }
 0xb06   : > { %2596 = vmatpush1.bf16.msra.mxu0 %v2579_v16 }
 0xb09   : > { %3484 = vmatmul.mubr.msk.bf16.vlgmr.msra.gmra.mrb[4].mxu0 %vm5835_vm14, %v4371_v20  ;;  %vm5850_vm14 = vcmask 7168  }
 0xb0f   : > { %v2642_v22 = vpop.permute.xlu0 %2641 }
 0xb10   : > { %v2637_v21 = vpop.permute.xlu1 %2636 }
 0xb13   : > { %v2658_v39 = vpop.permute.xlu0 %2657 }
 0xb14   : > { %v2653_v42 = vpop.permute.xlu1 %2652 }
 0xb17   : > { %v2729_v14 = vpop.permute.xlu0 %2728 }
 0xb18   : > { %v4278_v19 = vpop.permute.xlu1 %4277 }
 0xb1c   : > { %v4283_v9 = vpop.permute.xlu1 %4282 }
 0xb45   : > { %v5443_v57 = vpop.f32.mrb[8].mxu1 }
 0xb46   : > { %v5445_v8 = vpop.f32.mrb[9].mxu1 }
 0xb47   : > { %v5453_v3 = vpop.f32.mrb[10].mxu1 }
 0xb48   : > { %v5461_v63 = vpop.f32.mrb[11].mxu1 }
 0xbdc   : > { %v2623_v23 = vpop.f32.mrb[4].mxu0 }
 0xbdd   : > { %v2644_v18 = vmul.f32 %v2637_v21, %v2623_v23  ;;  %v2625_v40 = vpop.f32.mrb[5].mxu0  ;;  %v4279_v23 = vunpack.i.l.bf16 %v4278_v19 }
 0xbde   : > { %v2645_v30 = vmul.f32 %v2637_v21, %v2625_v40  ;;  %v2627_v26 = vpop.f32.mrb[6].mxu0 }
 0xbdf   : > { %v2660_v31 = vadd.f32 %v2653_v42, %v2644_v18  ;;  %v2646_v32 = vmul.f32 %v2642_v22, %v2627_v26  ;;  %v2629_v27 = vpop.f32.mrb[7].mxu0 }
 0xbe0   : > { %v2661_v33 = vadd.f32 %v2653_v42, %v2645_v30  ;;  %v2647_v49 = vmul.f32 %v2642_v22, %v2629_v27  ;;  %v4280_v22 = vunpack.i.h.bf16 %v4278_v19 }
 0xbe1   : > { %v2664_v35 = vmul.f32 0.1, %v2660_v31  ;;  %v2662_v46 = vadd.f32 %v2658_v39, %v2646_v32 }
 0xbe2   : > { %v2665_v29 = vmul.f32 0.1, %v2661_v33  ;;  %v2663_v43 = vadd.f32 %v2658_v39, %v2647_v49 }
 0xbe3   : > { %v2668_v25 = vmax.f32 %v2660_v31, %v2664_v35  ;;  %v2666_v44 = vmul.f32 0.1, %v2662_v46 }
 0xbe4   : > { %v2669_v50 = vmax.f32 %v2661_v33, %v2665_v29  ;;  %v2667_v41 = vmul.f32 0.1, %v2663_v43 }
 0xbe5   : > { %v2670_v5 = vmax.f32 %v2662_v46, %v2666_v44 }
 0xbe6   : > { %v2671_v36 = vmax.f32 %v2663_v43, %v2667_v41  ;;  %v4296_v56 = vpack.i.bf16 %v2669_v50, %v2668_v25  ;;  %v4321_v28 = vpack.i.bf16 %v4490_v12, %v2669_v50 }
 0xbe7   : > { %v5385_v37 = vpack.c.bf16 %v2670_v5, %v2668_v25  ;;  %v4331_v45 = vpack.i.bf16 %v2670_v5, %v2668_v25  ;;  %v4285_v25 = vunpack.i.h.bf16 %v4283_v9 }
 0xbe8   : > { %4297 = vrot.lane.b32.xlu0 %v4296_v56, %s5753_s29  ;;  %4287 = vrot.lane.b32.xlu1 %v4296_v56, %s5836_s9  ;;  %v4301_v52 = vpack.i.bf16 %v2671_v36, %v2670_v5  ;;  %v5389_v34 = vpack.c.bf16 %v2671_v36, %v2669_v50  ;;  %v4326_v53 = vpack.i.bf16 %v4490_v12, %v2671_v36 }
 0xbec   : > { %4292 = vrot.lane.b32.xlu1 %v4296_v56, %s5837_s10  ;;  %4302 = vrot.lane.b32.xlu0 %v4301_v52, %s5836_s9  ;;  %s4429_s9 = sshll.u32 %s4507_s8, 4  ;;  %s4430_s9 = int_to_ptr.vmem [resolvable:$false] %s4429_s9 }
 0xbf0   : > { %4307 = vrot.lane.b32.xlu0 %v4301_v52, %s5837_s10  ;;  %2732 = vrot.lane.b32.xlu1 %v5389_v34, %s5830_s1  ;;  %s4431_s10 = scalar_lea.vmem %s4430_s9, 1024 }
 0xbf4   : > { %2730 = vrot.lane.b32.xlu0 %v5385_v37, %s5830_s1  ;;  %4312 = vrot.lane.b32.xlu1 %v4301_v52, %s5753_s29 }
 0xbf8   : > { %4317 = vrot.lane.b32.xlu0 %v4490_v12, %s5753_s29  ;;  %4322 = vrot.lane.b32.xlu1 %v4321_v28, %s5754_s5  ;;  %v4373_v12 = vld [vmem:[%s5662_s14 + $0x4] ss:$8 sps:$4 sm:$0xff]   ;;  %s674_s29 = sand.u32 1, %s4479_s28  }
 0xbf9   : > { %3487 = vmatprep.mubr.msk.bf16.mxu0 %vm5839_vm13, %v4373_v12  ;;  %vm5851_vm13 = vmmov %vm5845_vm3  ;;  %s3473_s26 = sshll.u32 %s674_s29, 5  ;;  %s5606_s4 = scalar_lea.sflag [#allocation6], %s674_s29 }
 0xbfc   : > { %4327 = vrot.lane.b32.xlu0 %v4326_v53, %s5754_s5  ;;  %4332 = vrot.lane.b32.xlu1 %v4331_v45, %s5754_s5  ;;  %s5840_s5 = smov 111  }
 0xc00   : > { %4337 = vrot.lane.b32.xlu0 %v4321_v28, %s5838_s0  ;;  %4342 = vrot.lane.b32.xlu1 %v4326_v53, %s5838_s0 }
 0xc04   : > { %4347 = vrot.lane.b32.xlu0 %v4331_v45, %s5838_s0  ;;  %2920 = vrot.lane.b32.xlu1 %v5385_v37, %s5752_s30 }
 0xc08   : > { %2924 = vrot.lane.b32.xlu0 %v4492_v13, %s5752_s30  ;;  %2922 = vrot.lane.b32.xlu1 %v5389_v34, %s5752_s30  ;;  %v3048_v13 = vld [vmem:[%s5663_s15 + $0x8] sm:$0xff]  ;;  %s5602_s30 = scalar_lea.hbm %s5670_s22, %s3498_s27 }
 0xc0c   : > { %4352 = vrot.lane.b32.xlu0 %v4321_v28, %s5840_s5  ;;  %4357 = vrot.lane.b32.xlu1 %v4326_v53, %s5840_s5  ;;  %v4284_v53 = vunpack.i.l.bf16 %v4283_v9 }
 0xc10   : > { %4362 = vrot.lane.b32.xlu0 %v4331_v45, %s5840_s5  ;;  %3051 = vperm.xlu1 %3630, %v3047_v54   ;;  %s676_s5 = scalar_lea.vmem [#allocation5], %s3473_s26 }
 0xc11   : > { %s3407_s2 = sshll.u32 %s676_s5, 4  ;;  %s5597_s2 = int_to_ptr.vmem [resolvable:$true] %s3407_s2 }
 0xc12   : > { %s4425_s7 = scalar_lea.vmem %s5597_s2, 512  ;;  %p4432_p0 = scmp.lt.s32.totalorder %s5597_s2, %s4430_s9 }
 0xc13   : > { %p4426_p11 = scmp.ne.s32.totalorder %s5597_s2, %s4425_s7  ;;  %p4433_p1 = scmp.lt.s32.totalorder %s4431_s10, %s4425_s7 }
 0xc14   : > { %3056 = vperm.xlu0 %3629, %v3048_v13   ;;  %3067 = vperm.xlu1 %3630, %v3063_v60  }
 0xc15   : > { %p4427_p12 = pnand %p4426_p11, %p4662_p5  ;;  %p4434_p2 = por %p4433_p1, %p4432_p0 }
 0xc17   : > { %p4428_p13 = pneg %p4427_p12 }
 0xc18   : > { %3072 = vperm.xlu0 %3629, %v3064_v55   ;;  %3146 = vperm.xlu1 %3630, %v3140_v58  }
 0xc19   : > { %p4435_p3 = pnand %p4434_p2, %p4428_p13 }
 0xc1c   : > { %3151 = vperm.xlu0 %3629, %v3141_v59   ;;  %3178 = vperm.xlu1 %3630, %v3172_v61  }
 0xc20   : > { %3183 = vperm.xlu0 %3629, %v3173_v1   ;;  %3156 = vperm.xlu1 %3630, %v3142_v2  }
 0xc24   : > { %3161 = vperm.xlu0 %3629, %v3143_v51   ;;  %3188 = vperm.xlu1 %3630, %v3174_v4  }
 0xc28   : > { %3193 = vperm.xlu0 %3629, %v3175_v62   ;;  %3353 = vperm.xlu1 %3630, %v3349_v11  }
 0xc2c   : > { %3358 = vperm.xlu0 %3629, %v3350_v7   ;;  %3369 = vperm.xlu1 %3630, %v3365_v6  }
 0xc30   : > { %3374 = vperm.xlu0 %3629, %v3366_v47  }
 0xc5a   : > { %v4298_v10 = vpop.permute.xlu0 %4297  ;;  %v4288_v0 = vpop.permute.xlu1 %4287 }
 0xc5b   : > { %v4290_v16 = vunpack.i.h.bf16 %v4288_v0  ;;  %v4289_v15 = vunpack.i.l.bf16 %v4288_v0  ;;  %v4300_v44 = vunpack.i.h.bf16 %v4298_v10  ;;  %v4299_v50 = vunpack.i.l.bf16 %v4298_v10 }
 0xc5d   : > { %v2700_v42 = vsel %vm5841_vm6, %v4279_v23, %v4289_v15  ;;  %v2701_v30 = vsel %vm5842_vm1, %v4289_v15, %v4290_v16  ;;  %vm5852_vm6 = vmmov %vm5850_vm14 }
 0xc5e   : > { %v4293_v20 = vpop.permute.xlu1 %4292  ;;  %v4303_v21 = vpop.permute.xlu0 %4302  ;;  %v2805_v59 = vsel %vm5852_vm6, %v4299_v50, %v4300_v44  ;;  %vm5853_vm1 = vmmov %vm5852_vm6 }
 0xc5f   : > { %v4305_v18 = vunpack.i.h.bf16 %v4303_v21  ;;  %v4304_v40 = vunpack.i.l.bf16 %v4303_v21  ;;  %v4295_v32 = vunpack.i.h.bf16 %v4293_v20  ;;  %v4294_v27 = vunpack.i.l.bf16 %v4293_v20 }
 0xc61   : > { %v2702_v26 = vsel %vm5843_vm15, %v4280_v22, %v4304_v40  ;;  %v2703_v31 = vsel %vm5844_vm0, %v4304_v40, %v4305_v18  ;;  %v2765_v41 = vsel %vm5846_vm7, %v4294_v27, %v4295_v32  ;;  %v2764_v60 = vsel %vm5851_vm13, %v4284_v53, %v4294_v27  ;;  %vm5854_vm15 = vmmov %vm5853_vm1 }
 0xc62   : > { %v3536_v39 = vpack.c.bf16 %v2703_v31, %v2701_v30  ;;  %v3539_v33 = vpack.c.bf16 %v2702_v26, %v2700_v42  ;;  %v4308_v49 = vpop.permute.xlu0 %4307  ;;  %v2733_v35 = vpop.permute.xlu1 %2732  ;;  %vm5855_vm0 = vcmask 924672  }
 0xc63   : > { %v4310_v46 = vunpack.i.h.bf16 %v4308_v49  ;;  %v4309_v29 = vunpack.i.l.bf16 %v4308_v49  ;;  %vm5857_vm7 = vmmov %vm5855_vm0 }
 0xc64   : > { %3537 = vmatprep.subr.msk.bf16.mxu0 %vm4785_vm4, %v3536_v39 }
 0xc65   : > { %v2767_v43 = vsel %vm5845_vm3, %v4309_v29, %v4310_v46  ;;  %3540 = vmatpush1.bf16.msk.msra.mxu0 %vm4792_vm5, %v3539_v33  ;;  %v2766_v12 = vsel %vm5849_vm10, %v4285_v25, %v4309_v29  ;;  %vm5856_vm3 = vmmov %vm5855_vm0  ;;  %vm5861_vm10 = vcmask 908288  }
 0xc66   : > { %v2731_v5 = vpop.permute.xlu0 %2730  ;;  %v4313_v36 = vpop.permute.xlu1 %4312  ;;  %v3542_v54 = vpack.c.bf16 %v2767_v43, %v2765_v41  ;;  %v3545_v61 = vpack.c.bf16 %v2766_v12, %v2764_v60 }
 0xc67   : > { %v2734_v56 = vsel %vm5847_vm8, %v2729_v14, %v2731_v5  ;;  %v4315_v45 = vunpack.i.h.bf16 %v4313_v36  ;;  %v4314_v52 = vunpack.i.l.bf16 %v4313_v36  ;;  %v2735_v28 = vsel %vm5848_vm2, %v2731_v5, %v2733_v35  ;;  %vm5858_vm8 = vmmov %vm5855_vm0 }
 0xc68   : > { %3006 = vmatprep.subr.bf16.mxu0 %v2735_v28 }
 0xc69   : > { %v2807_v13 = vsel %vm5850_vm14, %v4314_v52, %v4315_v45  ;;  %3007 = vmatpush1.bf16.msra.mxu0 %v2734_v56  ;;  %vm5862_vm14 = vmmov %vm5861_vm10 }
 0xc6a   : > { %v4318_v55 = vpop.permute.xlu0 %4317  ;;  %3543 = vmatprep.subr.msk.bf16.mxu0 %vm4811_vm9, %v3542_v54  ;;  %v4323_v58 = vpop.permute.xlu1 %4322  ;;  %v3548_v51 = vpack.c.bf16 %v2807_v13, %v2805_v59 }
 0xc6b   : > { %v4320_v1 = vunpack.i.h.bf16 %v4318_v55  ;;  %v4319_v2 = vunpack.i.l.bf16 %v4318_v55  ;;  %v4325_v7 = vunpack.i.h.bf16 %v4323_v58  ;;  %v4324_v6 = vunpack.i.l.bf16 %v4323_v58  ;;  %v4375_v58 = vld [vmem:[%s5662_s14] ss:$8 sps:$4 sm:$0xff]  }
 0xc6d   : > { %v2804_v4 = vsel %vm5853_vm1, %v4319_v2, %v4299_v50  ;;  %v2806_v62 = vsel %vm5854_vm15, %v4320_v1, %v4314_v52  ;;  %3546 = vmatpush1.bf16.msk.msra.mxu0 %vm4823_vm11, %v3545_v61  ;;  %v2853_v15 = vsel %vm988_vm12, %v4324_v6, %v4325_v7 }
 0xc6e   : > { %v3551_v11 = vpack.c.bf16 %v2806_v62, %v2804_v4  ;;  %v4328_v47 = vpop.permute.xlu0 %4327  ;;  %v4333_v19 = vpop.permute.xlu1 %4332  ;;  %3549 = vmatprep.subr.msk.bf16.mxu0 %vm4785_vm4, %v3548_v51 }
 0xc6f   : > { %v4330_v9 = vunpack.i.h.bf16 %v4328_v47  ;;  %v4329_v14 = vunpack.i.l.bf16 %v4328_v47  ;;  %v4335_v10 = vunpack.i.h.bf16 %v4333_v19  ;;  %v4334_v0 = vunpack.i.l.bf16 %v4333_v19 }
 0xc71   : > { %v2855_v16 = vsel %vm988_vm12, %v4329_v14, %v4330_v9  ;;  %3552 = vmatpush1.bf16.msk.msra.mxu0 %vm4792_vm5, %v3551_v11  ;;  %v2854_v30 = vsel %vm988_vm12, %v4335_v10, %v4329_v14  ;;  %v2852_v26 = vsel %vm988_vm12, %v4334_v0, %v4324_v6  ;;  %vm5859_vm12 = vcmask 916480  }
 0xc72   : > { %v4338_v20 = vpop.permute.xlu0 %4337  ;;  %v4343_v21 = vpop.permute.xlu1 %4342  ;;  %3012 = vmatprep.subr.bf16.mxu0 %v5389_v34  ;;  %v3554_v42 = vpack.c.bf16 %v2855_v16, %v2853_v15  ;;  %v3557_v34 = vpack.c.bf16 %v2854_v30, %v2852_v26  ;;  %vm5860_vm2 = vmmov %vm5859_vm12 }
 0xc73   : > { %v4340_v22 = vunpack.i.h.bf16 %v4338_v20  ;;  %v4339_v23 = vunpack.i.l.bf16 %v4338_v20  ;;  %v4345_v18 = vunpack.i.h.bf16 %v4343_v21  ;;  %v4344_v40 = vunpack.i.l.bf16 %v4343_v21 }
 0xc75   : > { %v2893_v31 = vsel %vm5855_vm0, %v4339_v23, %v4340_v22  ;;  %v2895_v32 = vsel %vm5856_vm3, %v4344_v40, %v4345_v18  ;;  %3013 = vmatpush1.bf16.msra.mxu0 %v5385_v37 }
 0xc76   : > { %v4348_v27 = vpop.permute.xlu0 %4347  ;;  %v2921_v39 = vpop.permute.xlu1 %2920  ;;  %3555 = vmatprep.subr.msk.bf16.mxu0 %vm4811_vm9, %v3554_v42  ;;  %v3560_v35 = vpack.c.bf16 %v2895_v32, %v2893_v31 }
 0xc77   : > { %v4350_v33 = vunpack.i.h.bf16 %v4348_v27  ;;  %v4349_v49 = vunpack.i.l.bf16 %v4348_v27 }
 0xc79   : > { %v2892_v46 = vsel %vm5857_vm7, %v4349_v49, %v4339_v23  ;;  %v2894_v29 = vsel %vm5858_vm8, %v4350_v33, %v4344_v40  ;;  %3558 = vmatpush1.bf16.msk.msra.mxu0 %vm4823_vm11, %v3557_v34 }
 0xc7a   : > { %v3563_v43 = vpack.c.bf16 %v2894_v29, %v2892_v46  ;;  %v2925_v25 = vpop.permute.xlu0 %2924  ;;  %v2923_v44 = vpop.permute.xlu1 %2922  ;;  %3561 = vmatprep.subr.msk.bf16.mxu0 %vm4785_vm4, %v3560_v35  ;;  %vm5863_vm4 = vmmov %vm5861_vm10 }
 0xc7b   : > { %v2927_v37 = vsel %vm5859_vm12, %v2923_v44, %v2925_v25  ;;  %v2926_v52 = vsel %vm5860_vm2, %v2921_v39, %v2923_v44 }
 0xc7d   : > { %3564 = vmatpush1.bf16.msk.msra.mxu0 %vm4792_vm5, %v3563_v43  ;;  %vm5864_vm5 = vmmov %vm5863_vm4 }
 0xc7e   : > { %v4353_v50 = vpop.permute.xlu0 %4352  ;;  %v4358_v41 = vpop.permute.xlu1 %4357  ;;  %3018 = vmatprep.subr.bf16.mxu0 %v2927_v37 }
 0xc7f   : > { %v4355_v5 = vunpack.i.h.bf16 %v4353_v50  ;;  %v4354_v36 = vunpack.i.l.bf16 %v4353_v50  ;;  %v4360_v56 = vunpack.i.h.bf16 %v4358_v41  ;;  %v4359_v45 = vunpack.i.l.bf16 %v4358_v41 }
 0xc81   : > { %v2957_v28 = vsel %vm5861_vm10, %v4354_v36, %v4355_v5  ;;  %v2959_v53 = vsel %vm5862_vm14, %v4359_v45, %v4360_v56  ;;  %3019 = vmatpush1.bf16.msra.mxu0 %v2926_v52 }
 0xc82   : > { %v3566_v17 = vpack.c.bf16 %v2959_v53, %v2957_v28  ;;  %v4363_v12 = vpop.permute.xlu0 %4362 }
 0xc83   : > { %v4365_v24 = vunpack.i.h.bf16 %v4363_v12  ;;  %v4364_v54 = vunpack.i.l.bf16 %v4363_v12 }
 0xc84   : > { %3567 = vmatprep.subr.msk.bf16.mxu0 %vm4811_vm9, %v3566_v17  ;;  %vm5865_vm9 = vcmask 261120  }
 0xc85   : > { %v2956_v13 = vsel %vm5863_vm4, %v4364_v54, %v4354_v36  ;;  %v2958_v60 = vsel %vm5864_vm5, %v4365_v24, %v4359_v45 }
 0xc86   : > { %v3569_v55 = vpack.c.bf16 %v2958_v60, %v2956_v13 }
 0xc88   : > { %3570 = vmatpush1.bf16.msk.msra.mxu0 %vm4823_vm11, %v3569_v55 }
 0xc8b   : > { %3037 = vmatmul.mubr.bf16.vlgmr.msra.gmra.mrb[8].mxu0 %v4375_v58 }
 0xc8f   : > { %v5535_v59 = vpop.permute.xlu1 %3051 }
 0xc93   : > { %v5537_v61 = vpop.permute.xlu0 %3056  ;;  %v5539_v1 = vpop.permute.xlu1 %3067 }
 0xc97   : > { %v5541_v38 = vpop.permute.xlu0 %3072  ;;  %v5543_v2 = vpop.permute.xlu1 %3146 }
 0xc9b   : > { %v5545_v51 = vpop.permute.xlu0 %3151  ;;  %v5547_v4 = vpop.permute.xlu1 %3178 }
 0xc9f   : > { %v5549_v62 = vpop.permute.xlu0 %3183  ;;  %v3157_v11 = vpop.permute.xlu1 %3156 }
 0xca0   : > { %v3168_v48 = vmul.f32 %v3157_v11, %v5443_v57  ;;  %v3169_v7 = vmul.f32 %v3157_v11, %v5445_v8 }
 0xca3   : > { %v3162_v6 = vpop.permute.xlu0 %3161  ;;  %v3189_v47 = vpop.permute.xlu1 %3188 }
 0xca4   : > { %v3200_v19 = vadd.f32 %v3189_v47, %v3168_v48  ;;  %v3201_v9 = vadd.f32 %v3189_v47, %v3169_v7  ;;  %v3170_v14 = vmul.f32 %v3162_v6, %v5453_v3  ;;  %v3171_v10 = vmul.f32 %v3162_v6, %v5461_v63 }
 0xca6   : > { %v3216_v0 = vand.u32 2147483647, %v3200_v19  ;;  %v3217_v16 = vand.u32 2147483647, %v3201_v9  ;;  %v3208_v43 = vmax.f32 %v3200_v19, 0.0  ;;  %v3209_v44 = vmax.f32 %v3201_v9, 0.0 }
 0xca7   : > { %v3194_v15 = vpop.permute.xlu0 %3193 }
 0xca8   : > { %v3224_v20 = vsub.f32 0.0, %v3216_v0  ;;  %v3225_v21 = vsub.f32 0.0, %v3217_v16  ;;  %v3202_v22 = vadd.f32 %v3194_v15, %v3170_v14  ;;  %v3203_v23 = vadd.f32 %v3194_v15, %v3171_v10 }
 0xcaa   : > { %v3236_v18 = vmul.f32 1.442695, %v3224_v20  ;;  %v3238_v40 = vmul.f32 1.442695, %v3225_v21  ;;  %v3218_v57 = vand.u32 2147483647, %v3202_v22 }
 0xcab   : > { %v3219_v42 = vand.u32 2147483647, %v3203_v23  ;;  %v3210_v36 = vmax.f32 %v3202_v22, 0.0  ;;  %v3211_v45 = vmax.f32 %v3203_v23, 0.0 }
 0xcac   : > { %4377 = vpow2.f32 %v3236_v18  ;;  %v3226_v8 = vsub.f32 0.0, %v3218_v57 }
 0xcad   : > { %4379 = vpow2.f32 %v3238_v40  ;;  %v3227_v30 = vsub.f32 0.0, %v3219_v42 }
 0xcae   : > { %v3240_v26 = vmul.f32 1.442695, %v3226_v8 }
 0xcaf   : > { %v3242_v31 = vmul.f32 1.442695, %v3227_v30 }
 0xcb0   : > { %4381 = vpow2.f32 %v3240_v26 }
 0xcb1   : > { %4383 = vpow2.f32 %v3242_v31 }
 0xcb6   : > { %v4378_v3 = vpop.eup %4377 }
 0xcb7   : > { %v4380_v63 = vpop.eup %4379  ;;  %v3248_v32 = vadd.f32 1.0, %v4378_v3 }
 0xcb8   : > { %v3249_v27 = vadd.f32 1.0, %v4380_v63 }
 0xcb9   : > { %4385 = vlog2.f32 %v3248_v32 }
 0xcba   : > { %4387 = vlog2.f32 %v3249_v27  ;;  %v4382_v39 = vpop.eup %4381 }
 0xcbb   : > { %v4384_v34 = vpop.eup %4383  ;;  %v3250_v33 = vadd.f32 1.0, %v4382_v39 }
 0xcbc   : > { %v3251_v49 = vadd.f32 1.0, %v4384_v34 }
 0xcbd   : > { %4389 = vlog2.f32 %v3250_v33 }
 0xcbe   : > { %4391 = vlog2.f32 %v3251_v49 }
 0xcc3   : > { %v4386_v35 = vpop.eup %4385 }
 0xcc4   : > { %v4388_v46 = vpop.eup %4387  ;;  %v3261_v29 = vmul.f32 0.6931472, %v4386_v35 }
 0xcc5   : > { %v3263_v25 = vmul.f32 0.6931472, %v4388_v46 }
 0xcc6   : > { %v3272_v37 = vadd.f32 %v3261_v29, %v3208_v43 }
 0xcc7   : > { %v4390_v50 = vpop.eup %4389  ;;  %v3273_v41 = vadd.f32 %v3263_v25, %v3209_v44 }
 0xcc8   : > { %v4392_v5 = vpop.eup %4391  ;;  %v3265_v56 = vmul.f32 0.6931472, %v4390_v50  ;;  %4393 = vtanh.f32 %v3272_v37 }
 0xcc9   : > { %v3267_v52 = vmul.f32 0.6931472, %v4392_v5  ;;  %4395 = vtanh.f32 %v3273_v41 }
 0xcca   : > { %v3274_v28 = vadd.f32 %v3265_v56, %v3210_v36 }
 0xccb   : > { %v3275_v53 = vadd.f32 %v3267_v52, %v3211_v45 }
 0xccc   : > { %4397 = vtanh.f32 %v3274_v28 }
 0xccd   : > { %4399 = vtanh.f32 %v3275_v53 }
 0xcd2   : > { %v4394_v17 = vpop.eup %4393 }
 0xcd3   : > { %v4396_v12 = vpop.eup %4395  ;;  %v5555_v13 = vmul.f32 %v4394_v17, %v3200_v19 }
 0xcd4   : > { %v5559_v55 = vmul.f32 %v4396_v12, %v3201_v9 }
 0xcd6   : > { %v4398_v24 = vpop.eup %4397 }
 0xcd7   : > { %v4400_v54 = vpop.eup %4399  ;;  %v5557_v60 = vmul.f32 %v4398_v24, %v3202_v22 }
 0xcd8   : > { %v5561_v58 = vmul.f32 %v4400_v54, %v3203_v23 }
 0xcd9   : > { %v3296_v11 = vpack.c.bf16 %v5557_v60, %v5555_v13 }
 0xcda   : > { %v3297_v48 = vpack.c.bf16 %v5561_v58, %v5559_v55 }
 0xd5e   : > { %v3038_v7 = vpop.f32.mrb[8].mxu0 }
 0xd5f   : > { %v3059_v6 = vmul.f32 %v5535_v59, %v3038_v7  ;;  %v3040_v47 = vpop.f32.mrb[9].mxu0 }
 0xd60   : > { %v3060_v14 = vmul.f32 %v5535_v59, %v3040_v47  ;;  %v3042_v19 = vpop.f32.mrb[10].mxu0 }
 0xd61   : > { %v3075_v10 = vadd.f32 %v5539_v1, %v3059_v6  ;;  %v3061_v9 = vmul.f32 %v5537_v61, %v3042_v19  ;;  %v3044_v0 = vpop.f32.mrb[11].mxu0 }
 0xd62   : > { %v3076_v16 = vadd.f32 %v5539_v1, %v3060_v14  ;;  %v3062_v15 = vmul.f32 %v5537_v61, %v3044_v0 }
 0xd63   : > { %v3079_v20 = vmul.f32 0.1, %v3075_v10  ;;  %v3077_v21 = vadd.f32 %v5541_v38, %v3061_v9 }
 0xd64   : > { %v3080_v22 = vmul.f32 0.1, %v3076_v16  ;;  %v3078_v23 = vadd.f32 %v5541_v38, %v3062_v15 }
 0xd65   : > { %v3083_v18 = vmax.f32 %v3075_v10, %v3079_v20  ;;  %v3081_v40 = vmul.f32 0.1, %v3077_v21 }
 0xd66   : > { %v3084_v57 = vmax.f32 %v3076_v16, %v3080_v22  ;;  %v3082_v59 = vmul.f32 0.1, %v3078_v23 }
 0xd67   : > { %v3164_v42 = vmul.f32 %v5543_v2, %v3083_v18  ;;  %v3085_v8 = vmax.f32 %v3077_v21, %v3081_v40 }
 0xd68   : > { %v3165_v30 = vmul.f32 %v5543_v2, %v3084_v57  ;;  %v3086_v26 = vmax.f32 %v3078_v23, %v3082_v59  ;;  %v4376_v57 = vld [vmem:[%s5667_s19] sm:$0xff]   ;;  %v3354_v59 = vpop.permute.xlu1 %3353 }
 0xd69   : > { %v3196_v1 = vadd.f32 %v5547_v4, %v3164_v42  ;;  %v3166_v61 = vmul.f32 %v5545_v51, %v3085_v8  ;;  %v3359_v42 = vpop.permute.xlu0 %3358 }
 0xd6a   : > { %v3197_v31 = vadd.f32 %v5547_v4, %v3165_v30  ;;  %v3167_v3 = vmul.f32 %v5545_v51, %v3086_v26 }
 0xd6b   : > { %v3212_v63 = vand.u32 2147483647, %v3196_v1  ;;  %v3198_v38 = vadd.f32 %v5549_v62, %v3166_v61  ;;  %v3204_v45 = vmax.f32 %v3196_v1, 0.0 }
 0xd6c   : > { %v3213_v32 = vand.u32 2147483647, %v3197_v31  ;;  %v3199_v27 = vadd.f32 %v5549_v62, %v3167_v3  ;;  %v3205_v53 = vmax.f32 %v3197_v31, 0.0 }
 0xd6d   : > { %v3220_v39 = vsub.f32 0.0, %v3212_v63  ;;  %v3214_v34 = vand.u32 2147483647, %v3198_v38  ;;  %v3206_v54 = vmax.f32 %v3198_v38, 0.0  ;;  %v3375_v3 = vpop.permute.xlu0 %3374 }
 0xd6e   : > { %v3221_v33 = vsub.f32 0.0, %v3213_v32  ;;  %v3215_v49 = vand.u32 2147483647, %v3199_v27  ;;  %v3207_v47 = vmax.f32 %v3199_v27, 0.0 }
 0xd6f   : > { %v3228_v2 = vmul.f32 1.442695, %v3220_v39  ;;  %v3222_v35 = vsub.f32 0.0, %v3214_v34 }
 0xd70   : > { %v3230_v46 = vmul.f32 1.442695, %v3221_v33  ;;  %v3223_v29 = vsub.f32 0.0, %v3215_v49 }
 0xd71   : > { %4401 = vpow2.f32 %v3228_v2  ;;  %v3232_v43 = vmul.f32 1.442695, %v3222_v35 }
 0xd72   : > { %4403 = vpow2.f32 %v3230_v46  ;;  %v3234_v4 = vmul.f32 1.442695, %v3223_v29 }
 0xd73   : > { %4405 = vpow2.f32 %v3232_v43 }
 0xd74   : > { %4407 = vpow2.f32 %v3234_v4 }
 0xd7b   : > { %v4402_v51 = vpop.eup %4401 }
 0xd7c   : > { %v4404_v25 = vpop.eup %4403  ;;  %v3244_v44 = vadd.f32 1.0, %v4402_v51 }
 0xd7d   : > { %v4406_v37 = vpop.eup %4405  ;;  %v3245_v50 = vadd.f32 1.0, %v4404_v25 }
 0xd7e   : > { %v4408_v62 = vpop.eup %4407  ;;  %4409 = vlog2.f32 %v3244_v44  ;;  %v3246_v41 = vadd.f32 1.0, %v4406_v37 }
 0xd7f   : > { %4411 = vlog2.f32 %v3245_v50  ;;  %v3247_v5 = vadd.f32 1.0, %v4408_v62 }
 0xd80   : > { %4413 = vlog2.f32 %v3246_v41 }
 0xd81   : > { %4415 = vlog2.f32 %v3247_v5 }
 0xd88   : > { %v4410_v36 = vpop.eup %4409 }
 0xd89   : > { %v4412_v56 = vpop.eup %4411  ;;  %v3253_v52 = vmul.f32 0.6931472, %v4410_v36 }
 0xd8a   : > { %v4414_v28 = vpop.eup %4413  ;;  %v3255_v17 = vmul.f32 0.6931472, %v4412_v56 }
 0xd8b   : > { %v4416_v12 = vpop.eup %4415  ;;  %v3268_v24 = vadd.f32 %v3253_v52, %v3204_v45  ;;  %v3257_v7 = vmul.f32 0.6931472, %v4414_v28 }
 0xd8c   : > { %v3269_v6 = vadd.f32 %v3255_v17, %v3205_v53  ;;  %v3259_v14 = vmul.f32 0.6931472, %v4416_v12 }
 0xd8d   : > { %4417 = vtanh.f32 %v3268_v24  ;;  %v3270_v19 = vadd.f32 %v3257_v7, %v3206_v54 }
 0xd8e   : > { %4419 = vtanh.f32 %v3269_v6  ;;  %v3271_v10 = vadd.f32 %v3259_v14, %v3207_v47 }
 0xd8f   : > { %4421 = vtanh.f32 %v3270_v19 }
 0xd90   : > { %4423 = vtanh.f32 %v3271_v10 }
 0xd97   : > { %v4418_v9 = vpop.eup %4417 }
 0xd98   : > { %v4420_v0 = vpop.eup %4419  ;;  %v3284_v20 = vmul.f32 %v4418_v9, %v3196_v1  ;;  %v3370_v1 = vpop.permute.xlu1 %3369 }
 0xd99   : > { %v4422_v16 = vpop.eup %4421  ;;  %v3285_v22 = vmul.f32 %v4420_v0, %v3197_v31 }
 0xd9a   : > { %v4424_v15 = vpop.eup %4423  ;;  %v3286_v21 = vmul.f32 %v4422_v16, %v3198_v38 }
 0xd9b   : > { %v3287_v23 = vmul.f32 %v4424_v15, %v3199_v27 }
 0xd9c   : > { %v3294_v18 = vpack.c.bf16 %v3286_v21, %v3284_v20 }
 0xd9d   : > { %v3295_v40 = vpack.c.bf16 %v3287_v23, %v3285_v22 }
 0xd9f   : > { %3306 = vmatprep.subr.bf16.mxu1 %v3295_v40 }
 0xda0   : > { %3307 = vmatpush1.bf16.msra.mxu1 %v3294_v18 }
 0xda1   : > { %3308 = vmatprep.subr.bf16.mxu1 %v3297_v48 }
 0xda4   : > { %3309 = vmatpush1.bf16.msra.mxu1 %v3296_v11 }
 0xda7   : > { %3491 = vmatmul.mubr.msk.bf16.vlgmr.msra.gmra.mrb[12].mxu1 %vm5865_vm9, %v4376_v57 }
 0xe7a   : > { %v3340_v8 = vpop.f32.mrb[12].mxu1 }
 0xe7b   : > { %v3361_v30 = vmul.f32 %v3354_v59, %v3340_v8  ;;  %v3342_v26 = vpop.f32.mrb[13].mxu1 }
 0xe7c   : > { %v3362_v55 = vmul.f32 %v3354_v59, %v3342_v26  ;;  %v3344_v58 = vpop.f32.mrb[14].mxu1 }
 0xe7d   : > { %v3377_v48 = vadd.f32 %v3370_v1, %v3361_v30  ;;  %v3363_v61 = vmul.f32 %v3359_v42, %v3344_v58  ;;  %v3346_v31 = vpop.f32.mrb[15].mxu1 }
 0xe7e   : > { %v3378_v13 = vadd.f32 %v3370_v1, %v3362_v55  ;;  %v3364_v60 = vmul.f32 %v3359_v42, %v3346_v31 }
 0xe7f   : > { %v3381_v11 = vmul.f32 0.1, %v3377_v48  ;;  %v3379_v63 = vadd.f32 %v3375_v3, %v3363_v61 }
 0xe80   : > { %v3382_v38 = vmul.f32 0.1, %v3378_v13  ;;  %v3380_v32 = vadd.f32 %v3375_v3, %v3364_v60 }
 0xe81   : > { %v3385_v27 = vmax.f32 %v3377_v48, %v3381_v11  ;;  %v3383_v39 = vmul.f32 0.1, %v3379_v63 }
 0xe82   : > { %v3386_v34 = vmax.f32 %v3378_v13, %v3382_v38  ;;  %v3384_v33 = vmul.f32 0.1, %v3380_v32 }
 0xe83   : > { %3389 = vst [vmem:[%s676_s5] sm:$0xff] %v3385_v27  ;;  %v3387_v49 = vmax.f32 %v3379_v63, %v3383_v39 }
 0xe84   : > { %3390 = vst [vmem:[%s676_s5 + $0x8] sm:$0xff] %v3386_v34  ;;  %v3388_v2 = vmax.f32 %v3380_v32, %v3384_v33 }
 0xe85   : > { %3391 = vst [vmem:[%s676_s5 + $0x10] sm:$0xff] %v3387_v49 }
 0xe86   : > { %3392 = vst [vmem:[%s676_s5 + $0x18] sm:$0xff] %v3388_v2 }
 0xe87   : > { %4438 = shalt.err (!%p4435_p3)
}
 0xe88   : > { %s4439_s0 = scalar_lea.hbm %s5602_s30, 512  ;;  %s4443_s5 = scalar_lea.hbm %s5670_s22, 1024 }
 0xe89   : > { %p4440_p4 = scmp.ne.s32.totalorder %s5602_s30, %s4439_s0  ;;  %p4444_p9 = scmp.lt.u32.totalorder %s5602_s30, %s5670_s22 }
 0xe8a   : > { %p4445_p10 = scmp.lt.u32.totalorder %s4443_s5, %s4439_s0  ;;  %p4447_p12 = scmp.lt.u32.totalorder %s4439_s0, %s5602_s30 }
 0xe8b   : > { %p4441_p7 = pnand %p4440_p4, %p4662_p5 }
 0xe8c   : > { %p4446_p11 = por %p4445_p10, %p4444_p9 }
 0xe8d   : > { %p4442_p8 = pneg %p4441_p7 }
 0xe8e   : > { %p4448_p13 = por %p4447_p12, %p4446_p11 }
 0xe90   : > { %p4449_p0 = pnand %p4448_p13, %p4442_p8 }
 0xe92   : > { %4452 = shalt.err (!%p4449_p0)
}
 0xe93   : > { %s4508_s3 = smov 256  }
 0xe94   : > { %3571 = dma.vmem_to_hbm [thread:$0]  (%p4662_p5), %s5597_s2, 512, %s5602_s30, %s5606_s4, %s4508_s3, %s4508_s3, %s5830_s1  }
 0xe95 PF: > { %s5866_s7 = sld [smem:[#allocation10_spill]]  ;;  %s5867_s8 = sld [smem:[#allocation8_spill]] }
 0xe9b   : > { %p3577_p1 = scmp.ge.s32.totalorder %s5866_s7, 2  ;;  %s3422_s10 = sand.u32 1, %s5867_s8  }
 0xe9c   : > { %s3423_s0 = scalar_lea.sflag [#allocation6], %s3422_s10 }
 0xe9d   : > { %p3574_p2 = pnand %p3577_p1, %p4666_p6 }
 0xe9f   : > { %4470 = dma.done.wait (!%p3574_p2), %s3423_s0, 512  }
 0xea0   : > { %4472 = vsyncadd (!%p3574_p2), %s3423_s0, 4294966784  ;;  %s5869_s30 = sld [smem:[#allocation11_spill]]  ;;  %s5870_s29 = sld [smem:[#allocation9_spill]] }
 0xea1   : > { %s5871_s6 = sld [smem:[#allocation12_spill]]  ;;  %s5872_s3 = smov %s4479_s28 }
 0xea6   : > { %p32_p3 = scmp.ge.s32.totalorder %s5869_s30, 4   ;;  %s5873_s28 = smov %s5870_s29 }
 0xea7   : > { %s5874_s29 = smov %s5871_s6 }
 0xea8   :  { %34 = sbr.rel (!%p32_p3) target bundleno = 15 (0xf), region = 143 }
 0xeaf   :  { %3428 = vsyncpa [#allocation6], 1 }
 0xeb0   :  { %3430 = vsyncpa [#allocation6 + $0x1], 1 }

</bundles_post_ra>
